<compile_context>
chip_gen: v6e
topology: v6e:2x2x1
jax: 0.10.0
libtpu: 0.0.40
codegen_flags: <defaults>
</compile_context>

<pallas_src>
import functools

import jax
import jax.numpy as jnp
from jax.experimental import pallas as pl
from jax.experimental.pallas import tpu as pltpu

NEG_SLOPE = 0.01  # PyTorch F.leaky_relu default


def _round_up(x, m):
    return (x + m - 1) // m * m


def _conv_size_out(size, k, s):
    return (size - (k - 1) - 1) // s + 1


# ----------------------------------------------------------------------------
# Kernel 1: fused matmul + bias + leaky_relu, single block (no K/M/N grid).
# ----------------------------------------------------------------------------
def _matmul_bias_lrelu_kernel(x_ref, w_ref, b_ref, o_ref, *, slope):
    out = jnp.dot(x_ref[...], w_ref[...], preferred_element_type=jnp.float32)
    out = out + b_ref[...]
    out = jnp.where(out >= 0.0, out, slope * out)
    o_ref[...] = out.astype(o_ref.dtype)


def matmul_bias_lrelu(x, w, b):
    """leaky_relu(x @ w + b).  x: (M, K) bf16, w: (K, N) bf16, b: (1, N) f32 -> (M, N) bf16."""
    M, K = x.shape
    Kw, N = w.shape
    assert K == Kw, (K, Kw)
    # Cheap insurance: keep the sublane dim a multiple of 8 (few KB of padding).
    Mp = _round_up(max(M, 8), 8)
    if Mp != M:
        x = jnp.pad(x, ((0, Mp - M), (0, 0)))

    out = pl.pallas_call(
        functools.partial(_matmul_bias_lrelu_kernel, slope=NEG_SLOPE),
        out_shape=jax.ShapeDtypeStruct((Mp, N), jnp.bfloat16),
        grid=(1,),
        in_specs=[
            pl.BlockSpec((Mp, K), lambda i: (0, 0)),
            pl.BlockSpec((K, N), lambda i: (0, 0)),
            pl.BlockSpec((1, N), lambda i: (0, 0)),
        ],
        out_specs=pl.BlockSpec((Mp, N), lambda i: (0, 0)),
        compiler_params=pltpu.CompilerParams(dimension_semantics=("arbitrary",)),
    )(x, w, b)
    return out if Mp == M else out[:M]


# ----------------------------------------------------------------------------
# Kernel 2: fused FC head — fc3 + fcc3 + (implicit concat) + fc4.
#   grid iterates over tiles of the fc4 output dim; the hidden activations are
#   computed once (j == 0) into VMEM scratch and reused for every output tile.
# ----------------------------------------------------------------------------
def _fc_head_kernel(x_ref, c_ref, w3_ref, b3_ref, wc_ref, bc_ref,
                    w4a_ref, w4b_ref, b4_ref, o_ref, h3_ref, hc_ref, *, slope):
    @pl.when(pl.program_id(0) == 0)
    def _():
        h3 = jnp.dot(x_ref[...], w3_ref[...], preferred_element_type=jnp.float32)
        h3 = h3 + b3_ref[...]
        h3_ref[...] = jnp.where(h3 >= 0.0, h3, slope * h3).astype(h3_ref.dtype)
        hc = jnp.dot(c_ref[...], wc_ref[...], preferred_element_type=jnp.float32)
        hc = hc + bc_ref[...]
        hc_ref[...] = jnp.where(hc >= 0.0, hc, slope * hc).astype(hc_ref.dtype)

    out = jnp.dot(h3_ref[...], w4a_ref[...], preferred_element_type=jnp.float32)
    out = out + jnp.dot(hc_ref[...], w4b_ref[...], preferred_element_type=jnp.float32)
    o_ref[...] = out + b4_ref[...]


def fc_head(x_flat, ctrl, kp):
    """Returns (B, Np4) f32 where Np4 = round_up(action_dim, 128)."""
    B, Kf = x_flat.shape
    Cd = ctrl.shape[1]
    Bp = _round_up(max(B, 8), 8)
    if Bp != B:
        x_flat = jnp.pad(x_flat, ((0, Bp - B), (0, 0)))
        ctrl = jnp.pad(ctrl, ((0, Bp - B), (0, 0)))

    H3 = kp["fc3_bk"].shape[1]      # 1024
    Hc = kp["fcc3_bk"].shape[1]     # 64
    Np4 = kp["fc4_bk"].shape[1]     # round_up(action_dim, 128)
    tn4 = next(c for c in (512, 384, 256, 128) if Np4 % c == 0)

    out = pl.pallas_call(
        functools.partial(_fc_head_kernel, slope=NEG_SLOPE),
        out_shape=jax.ShapeDtypeStruct((Bp, Np4), jnp.float32),
        grid=(Np4 // tn4,),
        in_specs=[
            pl.BlockSpec((Bp, Kf), lambda j: (0, 0)),     # flattened conv features
            pl.BlockSpec((Bp, Cd), lambda j: (0, 0)),     # control state
            pl.BlockSpec((Kf, H3), lambda j: (0, 0)),     # W3
            pl.BlockSpec((1, H3), lambda j: (0, 0)),      # b3
            pl.BlockSpec((Cd, Hc), lambda j: (0, 0)),     # Wc
            pl.BlockSpec((1, Hc), lambda j: (0, 0)),      # bc
            pl.BlockSpec((H3, tn4), lambda j: (0, j)),    # W4[:1024] tile
            pl.BlockSpec((Hc, tn4), lambda j: (0, j)),    # W4[1024:] tile
            pl.BlockSpec((1, tn4), lambda j: (0, j)),     # b4 tile
        ],
        out_specs=pl.BlockSpec((Bp, tn4), lambda j: (0, j)),
        scratch_shapes=[
            pltpu.VMEM((Bp, H3), jnp.bfloat16),           # fc3 hidden
            pltpu.VMEM((Bp, Hc), jnp.bfloat16),           # fcc3 hidden
        ],
        compiler_params=pltpu.CompilerParams(dimension_semantics=("arbitrary",)),
    )(x_flat, ctrl, kp["fc3_wk"], kp["fc3_bk"], kp["fcc3_wk"], kp["fcc3_bk"],
      kp["fc4_wak"], kp["fc4_wbk"], kp["fc4_bk"])
    return out[:B]


# ----------------------------------------------------------------------------
# Conv2d (VALID, stride s) as NHWC im2col + Pallas matmul (no transposes).
# ----------------------------------------------------------------------------
def conv_lrelu_nhwc(x, w_k, b_k, kh, kw, stride):
    # x: (B, H, W, C) bf16; w_k: (kh*kw*C, Cout) bf16 (rows ordered (i, j, c)).
    B, H, W, C = x.shape
    OH = (H - kh) // stride + 1
    OW = (W - kw) // stride + 1
    cols = []
    for i in range(kh):
        for j in range(kw):
            cols.append(x[:, i:i + stride * OH:stride, j:j + stride * OW:stride, :])
    cols = jnp.stack(cols, axis=3)                     # (B, OH, OW, kh*kw, C)
    cols = cols.reshape(B * OH * OW, kh * kw * C)
    y = matmul_bias_lrelu(cols, w_k, b_k)              # (B*OH*OW, Cout) bf16
    return y.reshape(B, OH, OW, -1)                    # stays NHWC


# ----------------------------------------------------------------------------
# Parameters: raw (PyTorch layout, f32) + preprocessed kernel layout.
# ----------------------------------------------------------------------------
def init_params(key, height, width, channels, action_dim, control_dim):
    convw = _conv_size_out(_conv_size_out(_conv_size_out(width, 8, 4), 4, 2), 3, 1)
    convh = _conv_size_out(_conv_size_out(_conv_size_out(height, 8, 4), 4, 2), 3, 1)
    flat = convh * convw * 64

    layer_shapes = {
        "conv1": ((32, channels, 8, 8), (32,)),
        "conv2": ((64, 32, 4, 4), (64,)),
        "conv3": ((64, 64, 3, 3), (64,)),
        "fc3": ((1024, flat), (1024,)),
        "fcc3": ((64, control_dim), (64,)),
        "fc4": ((action_dim, 1024 + 64), (action_dim,)),
    }
    params = {}
    keys = jax.random.split(key, 2 * len(layer_shapes))
    for idx, (name, (w_shape, b_shape)) in enumerate(layer_shapes.items()):
        fan_in = 1
        for d in w_shape[1:]:
            fan_in *= d
        bound = 1.0 / (fan_in ** 0.5)
        params[name + "_w"] = jax.random.uniform(
            keys[2 * idx], w_shape, jnp.float32, minval=-bound, maxval=bound)
        params[name + "_b"] = jax.random.uniform(
            keys[2 * idx + 1], b_shape, jnp.float32, minval=-bound, maxval=bound)
    return params


def prepare_kernel_params(raw, height, width):
    """One-time weight preprocessing: transpose/reorder/pad/cast to kernel layout."""
    convw = _conv_size_out(_conv_size_out(_conv_size_out(width, 8, 4), 4, 2), 3, 1)
    convh = _conv_size_out(_conv_size_out(_conv_size_out(height, 8, 4), 4, 2), 3, 1)

    kp = {}
    for name in ("conv1", "conv2", "conv3"):
        w = raw[name + "_w"]                              # (Cout, Cin, kh, kw)
        Cout, Cin, kh, kw = w.shape
        kp[name + "_wk"] = jnp.transpose(w, (2, 3, 1, 0)).reshape(
            kh * kw * Cin, Cout).astype(jnp.bfloat16)     # K rows ordered (i, j, c)
        kp[name + "_bk"] = raw[name + "_b"].reshape(1, Cout).astype(jnp.float32)

    # fc3: (1024, flat_chw) -> (flat_hwc, 1024), rows reordered chw -> hwc so the
    # kernel can consume the NHWC flatten directly.
    fc3_w = raw["fc3_w"]
    flat = convh * convw * 64
    assert fc3_w.shape[1] == flat, (fc3_w.shape, flat)
    w3 = fc3_w.reshape(1024, 64, convh, convw).transpose(2, 3, 1, 0).reshape(flat, 1024)
    kp["fc3_wk"] = w3.astype(jnp.bfloat16)
    kp["fc3_bk"] = raw["fc3_b"].reshape(1, -1).astype(jnp.float32)

    # fcc3: (64, control_dim) -> (control_dim, 64)
    kp["fcc3_wk"] = raw["fcc3_w"].T.astype(jnp.bfloat16)
    kp["fcc3_bk"] = raw["fcc3_b"].reshape(1, -1).astype(jnp.float32)

    # fc4: (action_dim, 1088) -> (1088, Np4) padded, split into the fc3 / fcc3 halves
    # so the concat is never materialized.
    fc4_w = raw["fc4_w"]
    action_dim = fc4_w.shape[0]
    np4 = _round_up(action_dim, 128)
    w4 = jnp.zeros((1024 + 64, np4), jnp.float32).at[:, :action_dim].set(fc4_w.T)
    kp["fc4_wak"] = w4[:1024].astype(jnp.bfloat16)
    kp["fc4_wbk"] = w4[1024:].astype(jnp.bfloat16)
    kp["fc4_bk"] = jnp.zeros((1, np4), jnp.float32).at[0, :action_dim].set(raw["fc4_b"])
    return kp


# ----------------------------------------------------------------------------
# Forward
# ----------------------------------------------------------------------------
def qnetwork_forward(kp, state, control_state, *, action_dim):
    # state: (B, C, H, W) NCHW f32; control_state: (B, control_dim) f32
    x = jnp.transpose(state, (0, 2, 3, 1)).astype(jnp.bfloat16)   # NCHW -> NHWC once
    x = conv_lrelu_nhwc(x, kp["conv1_wk"], kp["conv1_bk"], 8, 8, 4)
    x = conv_lrelu_nhwc(x, kp["conv2_wk"], kp["conv2_bk"], 4, 4, 2)
    x = conv_lrelu_nhwc(x, kp["conv3_wk"], kp["conv3_bk"], 3, 3, 1)
    B = x.shape[0]
    x_flat = x.reshape(B, -1)                     # NHWC flatten (fc3 cols pre-reordered)
    ctrl = control_state.astype(jnp.bfloat16)
    out = fc_head(x_flat, ctrl, kp)               # fused fc3/fcc3/fc4, (B, Np4) f32
    return out[:, :action_dim]


# ----------------------------------------------------------------------------
# Pure-JAX reference (PyTorch semantics, f32 HIGHEST) for correctness check
# ----------------------------------------------------------------------------
def reference_forward(params, state, control_state):
    def lrelu(v):
        return jnp.where(v >= 0, v, NEG_SLOPE * v)

    def conv(v, w, b, s):
        y = jax.lax.conv_general_dilated(
            v, w, (s, s), "VALID",
            dimension_numbers=("NCHW", "OIHW", "NCHW"),
            precision=jax.lax.Precision.HIGHEST)
        return y + b[None, :, None, None]

    x = lrelu(conv(state, params["conv1_w"], params["conv1_b"], 4))
    x = lrelu(conv(x, params["conv2_w"], params["conv2_b"], 2))
    x = lrelu(conv(x, params["conv3_w"], params["conv3_b"], 1))
    x = x.reshape(x.shape[0], -1)
    hp = jax.lax.Precision.HIGHEST
    x = lrelu(jnp.dot(x, params["fc3_w"].T, precision=hp) + params["fc3_b"])
    y = lrelu(jnp.dot(control_state, params["fcc3_w"].T, precision=hp) + params["fcc3_b"])
    z = jnp.concatenate([x, y], axis=1)
    return jnp.dot(z, params["fc4_w"].T, precision=hp) + params["fc4_b"]


if __name__ == "__main__":
    # Small shapes consistent with the module's forward:
    batch, channels, height, width = 2, 4, 64, 64
    action_dim, control_dim = 256, 4

    key = jax.random.PRNGKey(0)
    kseed, ks, kc = jax.random.split(key, 3)
    raw_params = init_params(kseed, height, width, channels, action_dim, control_dim)
    kernel_params = prepare_kernel_params(raw_params, height, width)

    state = jax.random.normal(ks, (batch, channels, height, width), jnp.float32)
    control_state = jax.random.normal(kc, (batch, control_dim), jnp.float32)

    fwd = jax.jit(functools.partial(qnetwork_forward, action_dim=action_dim))
    out = jax.block_until_ready(fwd(kernel_params, state, control_state))

    ref = jax.block_until_ready(reference_forward(raw_params, state, control_state))
    assert out.shape == (batch, action_dim), out.shape
    assert jnp.all(jnp.isfinite(out))
    assert jnp.allclose(out, ref, rtol=5e-2, atol=5e-2), float(jnp.max(jnp.abs(out - ref)))

    print("KERNEL_OK")
</pallas_src>

<mosaic_0001>
module attributes {stable_mosaic.version = 11 : i64} {
  func.func @_matmul_bias_lrelu_kernel(%arg0: i32, %arg1: memref<456x256xbf16, #tpu.memory_space<vmem>>, %arg2: memref<256x32xbf16, #tpu.memory_space<vmem>>, %arg3: memref<1x32xf32, #tpu.memory_space<vmem>>, %arg4: memref<456x32xbf16, #tpu.memory_space<vmem>>) attributes {dimension_semantics = [#tpu.dimension_semantics<arbitrary>], iteration_bounds = array<i64: 1>, scalar_prefetch = 0 : i64, scratch_operands = 0 : i64, tpu.core_type = #tpu.core_type<tc>, window_params = [{pipeline_mode = #tpu.pipeline_mode<synchronous>, transform_indices = @transform_0, window_bounds = array<i64: 456, 256>}, {pipeline_mode = #tpu.pipeline_mode<synchronous>, transform_indices = @transform_1, window_bounds = array<i64: 256, 32>}, {pipeline_mode = #tpu.pipeline_mode<synchronous>, transform_indices = @transform_2, window_bounds = array<i64: 1, 32>}, {pipeline_mode = #tpu.pipeline_mode<synchronous>, transform_indices = @transform_3, window_bounds = array<i64: 456, 32>}]} {
    %c0 = arith.constant 0 : index
    %c0_0 = arith.constant 0 : index
    %0 = vector.load %arg1[%c0, %c0_0] : memref<456x256xbf16, #tpu.memory_space<vmem>>, vector<456x256xbf16>
    %c0_1 = arith.constant 0 : index
    %c0_2 = arith.constant 0 : index
    %1 = vector.load %arg2[%c0_1, %c0_2] : memref<256x32xbf16, #tpu.memory_space<vmem>>, vector<256x32xbf16>
    %cst = arith.constant dense<0.000000e+00> : vector<456x32xf32>
    %2 = tpu.matmul %0, %1, %cst {dimension_numbers = #tpu.dot_dimension_numbers<[1], [0], [0], [1], [0, 0, 1, 1], [], []>} : vector<456x256xbf16>, vector<256x32xbf16>, vector<456x32xf32> -> vector<456x32xf32>
    %c0_3 = arith.constant 0 : index
    %c0_4 = arith.constant 0 : index
    %3 = vector.load %arg3[%c0_3, %c0_4] : memref<1x32xf32, #tpu.memory_space<vmem>>, vector<1x32xf32>
    %4 = vector.broadcast %3 : vector<1x32xf32> to vector<456x32xf32>
    %5 = arith.addf %2, %4 : vector<456x32xf32>
    %cst_5 = arith.constant 0.000000e+00 : f32
    %6 = vector.broadcast %cst_5 : f32 to vector<456x32xf32>
    %7 = arith.cmpf oge, %5, %6 : vector<456x32xf32>
    %cst_6 = arith.constant 0.00999999977 : f32
    %8 = vector.broadcast %cst_6 : f32 to vector<456x32xf32>
    %9 = arith.mulf %8, %5 : vector<456x32xf32>
    %10 = arith.select %7, %5, %9 : vector<456x32xi1>, vector<456x32xf32>
    %11 = arith.truncf %10 : vector<456x32xf32> to vector<456x32xbf16>
    %c0_7 = arith.constant 0 : index
    %c0_8 = arith.constant 0 : index
    %12 = vector.load %arg4[%c0_7, %c0_8] : memref<456x32xbf16, #tpu.memory_space<vmem>>, vector<456x32xbf16>
    tpu.vector_store %arg4[%c0_7, %c0_8], %11 {strides = array<i32>} : memref<456x32xbf16, #tpu.memory_space<vmem>>, vector<456x32xbf16>,
    return
  }
  func.func @transform_0(%arg0: i32) -> (i32, i32) {
    %c0_i32 = arith.constant 0 : i32
    %c0_i32_0 = arith.constant 0 : i32
    %c0_i32_1 = arith.constant 0 : i32
    return %c0_i32, %c0_i32_0 : i32, i32
  }
  func.func @transform_1(%arg0: i32) -> (i32, i32) {
    %c0_i32 = arith.constant 0 : i32
    %c0_i32_0 = arith.constant 0 : i32
    %c0_i32_1 = arith.constant 0 : i32
    return %c0_i32, %c0_i32_0 : i32, i32
  }
  func.func @transform_2(%arg0: i32) -> (i32, i32) {
    %c0_i32 = arith.constant 0 : i32
    %c0_i32_0 = arith.constant 0 : i32
    %c0_i32_1 = arith.constant 0 : i32
    return %c0_i32, %c0_i32_0 : i32, i32
  }
  func.func @transform_3(%arg0: i32) -> (i32, i32) {
    %c0_i32 = arith.constant 0 : i32
    %c0_i32_0 = arith.constant 0 : i32
    %c0_i32_1 = arith.constant 0 : i32
    return %c0_i32, %c0_i32_0 : i32, i32
  }
}

module attributes {stable_mosaic.version = 11 : i64} {
  func.func @_matmul_bias_lrelu_kernel(%arg0: i32, %arg1: memref<72x512xbf16, #tpu.memory_space<vmem>>, %arg2: memref<512x64xbf16, #tpu.memory_space<vmem>>, %arg3: memref<1x64xf32, #tpu.memory_space<vmem>>, %arg4: memref<72x64xbf16, #tpu.memory_space<vmem>>) attributes {dimension_semantics = [#tpu.dimension_semantics<arbitrary>], iteration_bounds = array<i64: 1>, scalar_prefetch = 0 : i64, scratch_operands = 0 : i64, tpu.core_type = #tpu.core_type<tc>, window_params = [{pipeline_mode = #tpu.pipeline_mode<synchronous>, transform_indices = @transform_0, window_bounds = array<i64: 72, 512>}, {pipeline_mode = #tpu.pipeline_mode<synchronous>, transform_indices = @transform_1, window_bounds = array<i64: 512, 64>}, {pipeline_mode = #tpu.pipeline_mode<synchronous>, transform_indices = @transform_2, window_bounds = array<i64: 1, 64>}, {pipeline_mode = #tpu.pipeline_mode<synchronous>, transform_indices = @transform_3, window_bounds = array<i64: 72, 64>}]} {
    %c0 = arith.constant 0 : index
    %c0_0 = arith.constant 0 : index
    %0 = vector.load %arg1[%c0, %c0_0] : memref<72x512xbf16, #tpu.memory_space<vmem>>, vector<72x512xbf16>
    %c0_1 = arith.constant 0 : index
    %c0_2 = arith.constant 0 : index
    %1 = vector.load %arg2[%c0_1, %c0_2] : memref<512x64xbf16, #tpu.memory_space<vmem>>, vector<512x64xbf16>
    %cst = arith.constant dense<0.000000e+00> : vector<72x64xf32>
    %2 = tpu.matmul %0, %1, %cst {dimension_numbers = #tpu.dot_dimension_numbers<[1], [0], [0], [1], [0, 0, 1, 1], [], []>} : vector<72x512xbf16>, vector<512x64xbf16>, vector<72x64xf32> -> vector<72x64xf32>
    %c0_3 = arith.constant 0 : index
    %c0_4 = arith.constant 0 : index
    %3 = vector.load %arg3[%c0_3, %c0_4] : memref<1x64xf32, #tpu.memory_space<vmem>>, vector<1x64xf32>
    %4 = vector.broadcast %3 : vector<1x64xf32> to vector<72x64xf32>
    %5 = arith.addf %2, %4 : vector<72x64xf32>
    %cst_5 = arith.constant 0.000000e+00 : f32
    %6 = vector.broadcast %cst_5 : f32 to vector<72x64xf32>
    %7 = arith.cmpf oge, %5, %6 : vector<72x64xf32>
    %cst_6 = arith.constant 0.00999999977 : f32
    %8 = vector.broadcast %cst_6 : f32 to vector<72x64xf32>
    %9 = arith.mulf %8, %5 : vector<72x64xf32>
    %10 = arith.select %7, %5, %9 : vector<72x64xi1>, vector<72x64xf32>
    %11 = arith.truncf %10 : vector<72x64xf32> to vector<72x64xbf16>
    %c0_7 = arith.constant 0 : index
    %c0_8 = arith.constant 0 : index
    %12 = vector.load %arg4[%c0_7, %c0_8] : memref<72x64xbf16, #tpu.memory_space<vmem>>, vector<72x64xbf16>
    tpu.vector_store %arg4[%c0_7, %c0_8], %11 {strides = array<i32>} : memref<72x64xbf16, #tpu.memory_space<vmem>>, vector<72x64xbf16>,
    return
  }
  func.func @transform_0(%arg0: i32) -> (i32, i32) {
    %c0_i32 = arith.constant 0 : i32
    %c0_i32_0 = arith.constant 0 : i32
    %c0_i32_1 = arith.constant 0 : i32
    return %c0_i32, %c0_i32_0 : i32, i32
  }
  func.func @transform_1(%arg0: i32) -> (i32, i32) {
    %c0_i32 = arith.constant 0 : i32
    %c0_i32_0 = arith.constant 0 : i32
    %c0_i32_1 = arith.constant 0 : i32
    return %c0_i32, %c0_i32_0 : i32, i32
  }
  func.func @transform_2(%arg0: i32) -> (i32, i32) {
    %c0_i32 = arith.constant 0 : i32
    %c0_i32_0 = arith.constant 0 : i32
    %c0_i32_1 = arith.constant 0 : i32
    return %c0_i32, %c0_i32_0 : i32, i32
  }
  func.func @transform_3(%arg0: i32) -> (i32, i32) {
    %c0_i32 = arith.constant 0 : i32
    %c0_i32_0 = arith.constant 0 : i32
    %c0_i32_1 = arith.constant 0 : i32
    return %c0_i32, %c0_i32_0 : i32, i32
  }
}

module attributes {stable_mosaic.version = 11 : i64} {
  func.func @_matmul_bias_lrelu_kernel(%arg0: i32, %arg1: memref<32x576xbf16, #tpu.memory_space<vmem>>, %arg2: memref<576x64xbf16, #tpu.memory_space<vmem>>, %arg3: memref<1x64xf32, #tpu.memory_space<vmem>>, %arg4: memref<32x64xbf16, #tpu.memory_space<vmem>>) attributes {dimension_semantics = [#tpu.dimension_semantics<arbitrary>], iteration_bounds = array<i64: 1>, scalar_prefetch = 0 : i64, scratch_operands = 0 : i64, tpu.core_type = #tpu.core_type<tc>, window_params = [{pipeline_mode = #tpu.pipeline_mode<synchronous>, transform_indices = @transform_0, window_bounds = array<i64: 32, 576>}, {pipeline_mode = #tpu.pipeline_mode<synchronous>, transform_indices = @transform_1, window_bounds = array<i64: 576, 64>}, {pipeline_mode = #tpu.pipeline_mode<synchronous>, transform_indices = @transform_2, window_bounds = array<i64: 1, 64>}, {pipeline_mode = #tpu.pipeline_mode<synchronous>, transform_indices = @transform_3, window_bounds = array<i64: 32, 64>}]} {
    %c0 = arith.constant 0 : index
    %c0_0 = arith.constant 0 : index
    %0 = vector.load %arg1[%c0, %c0_0] : memref<32x576xbf16, #tpu.memory_space<vmem>>, vector<32x576xbf16>
    %c0_1 = arith.constant 0 : index
    %c0_2 = arith.constant 0 : index
    %1 = vector.load %arg2[%c0_1, %c0_2] : memref<576x64xbf16, #tpu.memory_space<vmem>>, vector<576x64xbf16>
    %cst = arith.constant dense<0.000000e+00> : vector<32x64xf32>
    %2 = tpu.matmul %0, %1, %cst {dimension_numbers = #tpu.dot_dimension_numbers<[1], [0], [0], [1], [0, 0, 1, 1], [], []>} : vector<32x576xbf16>, vector<576x64xbf16>, vector<32x64xf32> -> vector<32x64xf32>
    %c0_3 = arith.constant 0 : index
    %c0_4 = arith.constant 0 : index
    %3 = vector.load %arg3[%c0_3, %c0_4] : memref<1x64xf32, #tpu.memory_space<vmem>>, vector<1x64xf32>
    %4 = vector.broadcast %3 : vector<1x64xf32> to vector<32x64xf32>
    %5 = arith.addf %2, %4 : vector<32x64xf32>
    %cst_5 = arith.constant 0.000000e+00 : f32
    %6 = vector.broadcast %cst_5 : f32 to vector<32x64xf32>
    %7 = arith.cmpf oge, %5, %6 : vector<32x64xf32>
    %cst_6 = arith.constant 0.00999999977 : f32
    %8 = vector.broadcast %cst_6 : f32 to vector<32x64xf32>
    %9 = arith.mulf %8, %5 : vector<32x64xf32>
    %10 = arith.select %7, %5, %9 : vector<32x64xi1>, vector<32x64xf32>
    %11 = arith.truncf %10 : vector<32x64xf32> to vector<32x64xbf16>
    %c0_7 = arith.constant 0 : index
    %c0_8 = arith.constant 0 : index
    %12 = vector.load %arg4[%c0_7, %c0_8] : memref<32x64xbf16, #tpu.memory_space<vmem>>, vector<32x64xbf16>
    tpu.vector_store %arg4[%c0_7, %c0_8], %11 {strides = array<i32>} : memref<32x64xbf16, #tpu.memory_space<vmem>>, vector<32x64xbf16>,
    return
  }
  func.func @transform_0(%arg0: i32) -> (i32, i32) {
    %c0_i32 = arith.constant 0 : i32
    %c0_i32_0 = arith.constant 0 : i32
    %c0_i32_1 = arith.constant 0 : i32
    return %c0_i32, %c0_i32_0 : i32, i32
  }
  func.func @transform_1(%arg0: i32) -> (i32, i32) {
    %c0_i32 = arith.constant 0 : i32
    %c0_i32_0 = arith.constant 0 : i32
    %c0_i32_1 = arith.constant 0 : i32
    return %c0_i32, %c0_i32_0 : i32, i32
  }
  func.func @transform_2(%arg0: i32) -> (i32, i32) {
    %c0_i32 = arith.constant 0 : i32
    %c0_i32_0 = arith.constant 0 : i32
    %c0_i32_1 = arith.constant 0 : i32
    return %c0_i32, %c0_i32_0 : i32, i32
  }
  func.func @transform_3(%arg0: i32) -> (i32, i32) {
    %c0_i32 = arith.constant 0 : i32
    %c0_i32_0 = arith.constant 0 : i32
    %c0_i32_1 = arith.constant 0 : i32
    return %c0_i32, %c0_i32_0 : i32, i32
  }
}

module attributes {stable_mosaic.version = 11 : i64} {
  func.func @_fc_head_kernel(%arg0: i32, %arg1: memref<8x1024xbf16, #tpu.memory_space<vmem>>, %arg2: memref<8x4xbf16, #tpu.memory_space<vmem>>, %arg3: memref<1024x1024xbf16, #tpu.memory_space<vmem>>, %arg4: memref<1x1024xf32, #tpu.memory_space<vmem>>, %arg5: memref<4x64xbf16, #tpu.memory_space<vmem>>, %arg6: memref<1x64xf32, #tpu.memory_space<vmem>>, %arg7: memref<1024x256xbf16, #tpu.memory_space<vmem>>, %arg8: memref<64x256xbf16, #tpu.memory_space<vmem>>, %arg9: memref<1x256xf32, #tpu.memory_space<vmem>>, %arg10: memref<8x256xf32, #tpu.memory_space<vmem>>, %arg11: memref<8x1024xbf16, #tpu.memory_space<vmem>>, %arg12: memref<8x64xbf16, #tpu.memory_space<vmem>>) attributes {dimension_semantics = [#tpu.dimension_semantics<arbitrary>], iteration_bounds = array<i64: 1>, scalar_prefetch = 0 : i64, scratch_operands = 2 : i64, tpu.core_type = #tpu.core_type<tc>, window_params = [{pipeline_mode = #tpu.pipeline_mode<synchronous>, transform_indices = @transform_0, window_bounds = array<i64: 8, 1024>}, {pipeline_mode = #tpu.pipeline_mode<synchronous>, transform_indices = @transform_1, window_bounds = array<i64: 8, 4>}, {pipeline_mode = #tpu.pipeline_mode<synchronous>, transform_indices = @transform_2, window_bounds = array<i64: 1024, 1024>}, {pipeline_mode = #tpu.pipeline_mode<synchronous>, transform_indices = @transform_3, window_bounds = array<i64: 1, 1024>}, {pipeline_mode = #tpu.pipeline_mode<synchronous>, transform_indices = @transform_4, window_bounds = array<i64: 4, 64>}, {pipeline_mode = #tpu.pipeline_mode<synchronous>, transform_indices = @transform_5, window_bounds = array<i64: 1, 64>}, {transform_indices = @transform_6, window_bounds = array<i64: 1024, 256>}, {transform_indices = @transform_7, window_bounds = array<i64: 64, 256>}, {transform_indices = @transform_8, window_bounds = array<i64: 1, 256>}, {transform_indices = @transform_9, window_bounds = array<i64: 8, 256>}]} {
    %c0_i32 = arith.constant 0 : i32
    %0 = arith.cmpi eq, %arg0, %c0_i32 : i32
    %1 = arith.extui %0 : i1 to i32
    %c0_i32_0 = arith.constant 0 : i32
    %2 = arith.cmpi ne, %1, %c0_i32_0 : i32
    scf.if %2 {
      %c0_13 = arith.constant 0 : index
      %c0_14 = arith.constant 0 : index
      %14 = vector.load %arg1[%c0_13, %c0_14] : memref<8x1024xbf16, #tpu.memory_space<vmem>>, vector<8x1024xbf16>
      %c0_15 = arith.constant 0 : index
      %c0_16 = arith.constant 0 : index
      %15 = vector.load %arg3[%c0_15, %c0_16] : memref<1024x1024xbf16, #tpu.memory_space<vmem>>, vector<1024x1024xbf16>
      %cst_17 = arith.constant dense<0.000000e+00> : vector<8x1024xf32>
      %16 = tpu.matmul %14, %15, %cst_17 {dimension_numbers = #tpu.dot_dimension_numbers<[1], [0], [0], [1], [0, 0, 1, 1], [], []>} : vector<8x1024xbf16>, vector<1024x1024xbf16>, vector<8x1024xf32> -> vector<8x1024xf32>
      %c0_18 = arith.constant 0 : index
      %c0_19 = arith.constant 0 : index
      %17 = vector.load %arg4[%c0_18, %c0_19] : memref<1x1024xf32, #tpu.memory_space<vmem>>, vector<1x1024xf32>
      %18 = vector.broadcast %17 : vector<1x1024xf32> to vector<8x1024xf32>
      %19 = arith.addf %16, %18 : vector<8x1024xf32>
      %cst_20 = arith.constant 0.000000e+00 : f32
      %20 = vector.broadcast %cst_20 : f32 to vector<8x1024xf32>
      %21 = arith.cmpf oge, %19, %20 : vector<8x1024xf32>
      %cst_21 = arith.constant 0.00999999977 : f32
      %22 = vector.broadcast %cst_21 : f32 to vector<8x1024xf32>
      %23 = arith.mulf %22, %19 : vector<8x1024xf32>
      %24 = arith.select %21, %19, %23 : vector<8x1024xi1>, vector<8x1024xf32>
      %25 = arith.truncf %24 : vector<8x1024xf32> to vector<8x1024xbf16>
      %c0_22 = arith.constant 0 : index
      %c0_23 = arith.constant 0 : index
      %26 = vector.load %arg11[%c0_22, %c0_23] : memref<8x1024xbf16, #tpu.memory_space<vmem>>, vector<8x1024xbf16>
      tpu.vector_store %arg11[%c0_22, %c0_23], %25 {strides = array<i32>} : memref<8x1024xbf16, #tpu.memory_space<vmem>>, vector<8x1024xbf16>,
      %c0_24 = arith.constant 0 : index
      %c0_25 = arith.constant 0 : index
      %27 = vector.load %arg2[%c0_24, %c0_25] : memref<8x4xbf16, #tpu.memory_space<vmem>>, vector<8x4xbf16>
      %c0_26 = arith.constant 0 : index
      %c0_27 = arith.constant 0 : index
      %28 = vector.load %arg5[%c0_26, %c0_27] : memref<4x64xbf16, #tpu.memory_space<vmem>>, vector<4x64xbf16>
      %cst_28 = arith.constant dense<0.000000e+00> : vector<8x64xf32>
      %29 = tpu.matmul %27, %28, %cst_28 {dimension_numbers = #tpu.dot_dimension_numbers<[1], [0], [0], [1], [0, 0, 1, 1], [], []>} : vector<8x4xbf16>, vector<4x64xbf16>, vector<8x64xf32> -> vector<8x64xf32>
      %c0_29 = arith.constant 0 : index
      %c0_30 = arith.constant 0 : index
      %30 = vector.load %arg6[%c0_29, %c0_30] : memref<1x64xf32, #tpu.memory_space<vmem>>, vector<1x64xf32>
      %31 = vector.broadcast %30 : vector<1x64xf32> to vector<8x64xf32>
      %32 = arith.addf %29, %31 : vector<8x64xf32>
      %cst_31 = arith.constant 0.000000e+00 : f32
      %33 = vector.broadcast %cst_31 : f32 to vector<8x64xf32>
      %34 = arith.cmpf oge, %32, %33 : vector<8x64xf32>
      %cst_32 = arith.constant 0.00999999977 : f32
      %35 = vector.broadcast %cst_32 : f32 to vector<8x64xf32>
      %36 = arith.mulf %35, %32 : vector<8x64xf32>
      %37 = arith.select %34, %32, %36 : vector<8x64xi1>, vector<8x64xf32>
      %38 = arith.truncf %37 : vector<8x64xf32> to vector<8x64xbf16>
      %c0_33 = arith.constant 0 : index
      %c0_34 = arith.constant 0 : index
      %39 = vector.load %arg12[%c0_33, %c0_34] : memref<8x64xbf16, #tpu.memory_space<vmem>>, vector<8x64xbf16>
      tpu.vector_store %arg12[%c0_33, %c0_34], %38 {strides = array<i32>} : memref<8x64xbf16, #tpu.memory_space<vmem>>, vector<8x64xbf16>,
    } else {
    }
    %c0 = arith.constant 0 : index
    %c0_1 = arith.constant 0 : index
    %3 = vector.load %arg11[%c0, %c0_1] : memref<8x1024xbf16, #tpu.memory_space<vmem>>, vector<8x1024xbf16>
    %c0_2 = arith.constant 0 : index
    %c0_3 = arith.constant 0 : index
    %4 = vector.load %arg7[%c0_2, %c0_3] : memref<1024x256xbf16, #tpu.memory_space<vmem>>, vector<1024x256xbf16>
    %cst = arith.constant dense<0.000000e+00> : vector<8x256xf32>
    %5 = tpu.matmul %3, %4, %cst {dimension_numbers = #tpu.dot_dimension_numbers<[1], [0], [0], [1], [0, 0, 1, 1], [], []>} : vector<8x1024xbf16>, vector<1024x256xbf16>, vector<8x256xf32> -> vector<8x256xf32>
    %c0_4 = arith.constant 0 : index
    %c0_5 = arith.constant 0 : index
    %6 = vector.load %arg12[%c0_4, %c0_5] : memref<8x64xbf16, #tpu.memory_space<vmem>>, vector<8x64xbf16>
    %c0_6 = arith.constant 0 : index
    %c0_7 = arith.constant 0 : index
    %7 = vector.load %arg8[%c0_6, %c0_7] : memref<64x256xbf16, #tpu.memory_space<vmem>>, vector<64x256xbf16>
    %cst_8 = arith.constant dense<0.000000e+00> : vector<8x256xf32>
    %8 = tpu.matmul %6, %7, %cst_8 {dimension_numbers = #tpu.dot_dimension_numbers<[1], [0], [0], [1], [0, 0, 1, 1], [], []>} : vector<8x64xbf16>, vector<64x256xbf16>, vector<8x256xf32> -> vector<8x256xf32>
    %9 = arith.addf %5, %8 : vector<8x256xf32>
    %c0_9 = arith.constant 0 : index
    %c0_10 = arith.constant 0 : index
    %10 = vector.load %arg9[%c0_9, %c0_10] : memref<1x256xf32, #tpu.memory_space<vmem>>, vector<1x256xf32>
    %11 = vector.broadcast %10 : vector<1x256xf32> to vector<8x256xf32>
    %12 = arith.addf %9, %11 : vector<8x256xf32>
    %c0_11 = arith.constant 0 : index
    %c0_12 = arith.constant 0 : index
    %13 = vector.load %arg10[%c0_11, %c0_12] : memref<8x256xf32, #tpu.memory_space<vmem>>, vector<8x256xf32>
    tpu.vector_store %arg10[%c0_11, %c0_12], %12 {strides = array<i32>} : memref<8x256xf32, #tpu.memory_space<vmem>>, vector<8x256xf32>,
    return
  }
  func.func @transform_0(%arg0: i32) -> (i32, i32) {
    %c0_i32 = arith.constant 0 : i32
    %c0_i32_0 = arith.constant 0 : i32
    %c0_i32_1 = arith.constant 0 : i32
    return %c0_i32, %c0_i32_0 : i32, i32
  }
  func.func @transform_1(%arg0: i32) -> (i32, i32) {
    %c0_i32 = arith.constant 0 : i32
    %c0_i32_0 = arith.constant 0 : i32
    %c0_i32_1 = arith.constant 0 : i32
    return %c0_i32, %c0_i32_0 : i32, i32
  }
  func.func @transform_2(%arg0: i32) -> (i32, i32) {
    %c0_i32 = arith.constant 0 : i32
    %c0_i32_0 = arith.constant 0 : i32
    %c0_i32_1 = arith.constant 0 : i32
    return %c0_i32, %c0_i32_0 : i32, i32
  }
  func.func @transform_3(%arg0: i32) -> (i32, i32) {
    %c0_i32 = arith.constant 0 : i32
    %c0_i32_0 = arith.constant 0 : i32
    %c0_i32_1 = arith.constant 0 : i32
    return %c0_i32, %c0_i32_0 : i32, i32
  }
  func.func @transform_4(%arg0: i32) -> (i32, i32) {
    %c0_i32 = arith.constant 0 : i32
    %c0_i32_0 = arith.constant 0 : i32
    %c0_i32_1 = arith.constant 0 : i32
    return %c0_i32, %c0_i32_0 : i32, i32
  }
  func.func @transform_5(%arg0: i32) -> (i32, i32) {
    %c0_i32 = arith.constant 0 : i32
    %c0_i32_0 = arith.constant 0 : i32
    %c0_i32_1 = arith.constant 0 : i32
    return %c0_i32, %c0_i32_0 : i32, i32
  }
  func.func @transform_6(%arg0: i32) -> (i32, i32) {
    %c0_i32 = arith.constant 0 : i32
    %c0_i32_0 = arith.constant 0 : i32
    return %c0_i32, %arg0 : i32, i32
  }
  func.func @transform_7(%arg0: i32) -> (i32, i32) {
    %c0_i32 = arith.constant 0 : i32
    %c0_i32_0 = arith.constant 0 : i32
    return %c0_i32, %arg0 : i32, i32
  }
  func.func @transform_8(%arg0: i32) -> (i32, i32) {
    %c0_i32 = arith.constant 0 : i32
    %c0_i32_0 = arith.constant 0 : i32
    return %c0_i32, %arg0 : i32, i32
  }
  func.func @transform_9(%arg0: i32) -> (i32, i32) {
    %c0_i32 = arith.constant 0 : i32
    %c0_i32_0 = arith.constant 0 : i32
    return %c0_i32, %arg0 : i32, i32
  }
}

</mosaic_0001>

<bundles_post_ra>
// kernel: qnetwork_forward.4
= control target key start
LH: loop header
LB: loop body
LE: loop exit
PB: predicated region body
PF: predicated region fallthrough
CT: control target
= control target key end

     0   :  { %v1544_v0 = vmov 0   ;;  %vm1158_vm2 = vcmask 257024   ;;  %s2106_s1 = inlined_call_operand.vmem [shape: bf16[256,32], index: 1, kind: input, shape index: {}]   ;;  %s2107_s0 = inlined_call_operand.vmem [shape: bf16[456,256], index: 0, kind: input, shape index: {}]   ;;  %s2108_s2 = inlined_call_operand.vmem [shape: f32[1,32], index: 2, kind: input, shape index: {}]   ;;  %s2109_s3 = inlined_call_operand.vmem [shape: bf16[456,32], index: 3, kind: output, shape index: {}]  }
   0x1   :  { %494 = vmatprep.subr.bf16.mxu0 %v1544_v0  ;;  %v1442_v1 = vld [vmem:[%s2106_s1 + $0x38] sm:$0xff]   ;;  %1409 = vmatprep.subr.bf16.mxu1 %v1544_v0  ;;  %v1443_v2 = vld [vmem:[%s2106_s1 + $0x30] sm:$0xff]   ;;  %v1444_v3 = vld [vmem:[%s2106_s1 + $0x28] sm:$0xff]  }
   0x2   :  { %495 = vmatpush1.bf16.msra.mxu0 %v1442_v1  ;;  %1425 = vmatpush1.bf16.msra.mxu1 %v1442_v1  ;;  %v1445_v4 = vld [vmem:[%s2106_s1 + $0x20] sm:$0xff]   ;;  %v1446_v5 = vld [vmem:[%s2106_s1 + $0x18] sm:$0xff]   ;;  %v1447_v7 = vld [vmem:[%s2106_s1 + $0x10] sm:$0xff]  }
   0x3   :  { %496 = vmatprep.subr.bf16.mxu0 %v1544_v0  ;;  %1410 = vmatprep.subr.bf16.mxu1 %v1544_v0  ;;  %v1460_v6 = vld [vmem:[%s2107_s0 + $0x4] ss:$8 sps:$4 sm:$0xff]   ;;  %v1463_v8 = vld [vmem:[%s2107_s0 + $0xf4] ss:$8 sps:$4 sm:$0xff]   ;;  %v1458_v19 = vld [vmem:[%s2107_s0] ss:$8 sps:$4 sm:$0xff]  }
   0x4   :  { %526 = vmatprep.mubr.bf16.mxu0 %v1460_v6  ;;  %646 = vmatprep.mubr.bf16.mxu1 %v1463_v8  ;;  %v1448_v9 = vld [vmem:[%s2106_s1 + $0x8] sm:$0xff]   ;;  %v1449_v10 = vld [vmem:[%s2106_s1] sm:$0xff]   ;;  %v1450_v11 = vld [vmem:[%s2106_s1 + $0x78] sm:$0xff]  }
   0x5   :  { %v1451_v12 = vld [vmem:[%s2106_s1 + $0x70] sm:$0xff]   ;;  %v1452_v13 = vld [vmem:[%s2106_s1 + $0x68] sm:$0xff]   ;;  %v1453_v14 = vld [vmem:[%s2106_s1 + $0x60] sm:$0xff]  }
   0x6   :  { %497 = vmatpush1.bf16.msra.mxu0 %v1443_v2  ;;  %1426 = vmatpush1.bf16.msra.mxu1 %v1443_v2  ;;  %v1454_v15 = vld [vmem:[%s2106_s1 + $0x58] sm:$0xff]   ;;  %v1455_v16 = vld [vmem:[%s2106_s1 + $0x50] sm:$0xff]   ;;  %v1456_v17 = vld [vmem:[%s2106_s1 + $0x48] sm:$0xff]  }
   0x7   :  { %498 = vmatprep.subr.bf16.mxu0 %v1544_v0  ;;  %1411 = vmatprep.subr.bf16.mxu1 %v1544_v0  ;;  %v1457_v18 = vld [vmem:[%s2106_s1 + $0x40] sm:$0xff]   ;;  %v1461_v20 = vld [vmem:[%s2107_s0 + $0xf0] ss:$8 sps:$4 sm:$0xff]   ;;  %v1464_v21 = vld [vmem:[%s2107_s0 + $0x14] ss:$8 sps:$4 sm:$0xff]  }
   0x8   :  { %v1467_v22 = vld [vmem:[%s2107_s0 + $0x104] ss:$8 sps:$4 sm:$0xff]   ;;  %v1466_v23 = vld [vmem:[%s2107_s0 + $0x10] ss:$8 sps:$4 sm:$0xff]   ;;  %v1469_v24 = vld [vmem:[%s2107_s0 + $0x100] ss:$8 sps:$4 sm:$0xff]  }
   0x9   :  { %v1470_v25 = vld [vmem:[%s2107_s0 + $0x24] ss:$8 sps:$4 sm:$0xff]   ;;  %v1473_v26 = vld [vmem:[%s2107_s0 + $0x114] ss:$8 sps:$4 sm:$0xff]   ;;  %v1472_v27 = vld [vmem:[%s2107_s0 + $0x20] ss:$8 sps:$4 sm:$0xff]  }
   0xa   :  { %499 = vmatpush1.bf16.msra.mxu0 %v1444_v3  ;;  %1427 = vmatpush1.bf16.msra.mxu1 %v1444_v3  ;;  %v1475_v28 = vld [vmem:[%s2107_s0 + $0x110] ss:$8 sps:$4 sm:$0xff]   ;;  %v1476_v29 = vld [vmem:[%s2107_s0 + $0x34] ss:$8 sps:$4 sm:$0xff]   ;;  %v1479_v30 = vld [vmem:[%s2107_s0 + $0x124] ss:$8 sps:$4 sm:$0xff]  }
   0xb   :  { %500 = vmatprep.subr.bf16.mxu0 %v1544_v0  ;;  %1412 = vmatprep.subr.bf16.mxu1 %v1544_v0  ;;  %v1478_v31 = vld [vmem:[%s2107_s0 + $0x30] ss:$8 sps:$4 sm:$0xff]   ;;  %v1481_v32 = vld [vmem:[%s2107_s0 + $0x120] ss:$8 sps:$4 sm:$0xff]   ;;  %v1482_v33 = vld [vmem:[%s2107_s0 + $0x44] ss:$8 sps:$4 sm:$0xff]  }
   0xc   :  { %v1485_v34 = vld [vmem:[%s2107_s0 + $0x134] ss:$8 sps:$4 sm:$0xff]   ;;  %v1484_v35 = vld [vmem:[%s2107_s0 + $0x40] ss:$8 sps:$4 sm:$0xff]   ;;  %v1487_v36 = vld [vmem:[%s2107_s0 + $0x130] ss:$8 sps:$4 sm:$0xff]  }
   0xd   :  { %v1488_v37 = vld [vmem:[%s2107_s0 + $0x54] ss:$8 sps:$4 sm:$0xff]   ;;  %v1491_v38 = vld [vmem:[%s2107_s0 + $0x144] ss:$8 sps:$4 sm:$0xff]   ;;  %v1490_v39 = vld [vmem:[%s2107_s0 + $0x50] ss:$8 sps:$4 sm:$0xff]  }
   0xe   :  { %501 = vmatpush1.bf16.msra.mxu0 %v1445_v4  ;;  %1428 = vmatpush1.bf16.msra.mxu1 %v1445_v4  ;;  %v1493_v40 = vld [vmem:[%s2107_s0 + $0x140] ss:$8 sps:$4 sm:$0xff]   ;;  %v1494_v41 = vld [vmem:[%s2107_s0 + $0x64] ss:$8 sps:$4 sm:$0xff]   ;;  %v1497_v42 = vld [vmem:[%s2107_s0 + $0x154] ss:$8 sps:$4 sm:$0xff]  }
   0xf   :  { %502 = vmatprep.subr.bf16.mxu0 %v1544_v0  ;;  %1413 = vmatprep.subr.bf16.mxu1 %v1544_v0  ;;  %v1496_v43 = vld [vmem:[%s2107_s0 + $0x60] ss:$8 sps:$4 sm:$0xff]   ;;  %v1499_v44 = vld [vmem:[%s2107_s0 + $0x150] ss:$8 sps:$4 sm:$0xff]   ;;  %v1500_v45 = vld [vmem:[%s2107_s0 + $0x74] ss:$8 sps:$4 sm:$0xff]  }
  0x10   :  { %v1503_v46 = vld [vmem:[%s2107_s0 + $0x164] ss:$8 sps:$4 sm:$0xff]   ;;  %v1502_v47 = vld [vmem:[%s2107_s0 + $0x70] ss:$8 sps:$4 sm:$0xff]   ;;  %v1505_v48 = vld [vmem:[%s2107_s0 + $0x160] ss:$8 sps:$4 sm:$0xff]  }
  0x11   :  { %v1506_v49 = vld [vmem:[%s2107_s0 + $0x84] ss:$8 sps:$4 sm:$0xff]   ;;  %v1509_v50 = vld [vmem:[%s2107_s0 + $0x174] ss:$8 sps:$4 sm:$0xff]   ;;  %v1508_v51 = vld [vmem:[%s2107_s0 + $0x80] ss:$8 sps:$4 sm:$0xff]  }
  0x12   :  { %503 = vmatpush1.bf16.msra.mxu0 %v1446_v5  ;;  %1429 = vmatpush1.bf16.msra.mxu1 %v1446_v5  ;;  %v1511_v52 = vld [vmem:[%s2107_s0 + $0x170] ss:$8 sps:$4 sm:$0xff]   ;;  %v1512_v53 = vld [vmem:[%s2107_s0 + $0x94] ss:$8 sps:$4 sm:$0xff]   ;;  %v1515_v54 = vld [vmem:[%s2107_s0 + $0x184] ss:$8 sps:$4 sm:$0xff]  }
  0x13   :  { %504 = vmatprep.subr.bf16.mxu0 %v1544_v0  ;;  %1414 = vmatprep.subr.bf16.mxu1 %v1544_v0  ;;  %v1514_v55 = vld [vmem:[%s2107_s0 + $0x90] ss:$8 sps:$4 sm:$0xff]   ;;  %v1517_v56 = vld [vmem:[%s2107_s0 + $0x180] ss:$8 sps:$4 sm:$0xff]   ;;  %v1518_v57 = vld [vmem:[%s2107_s0 + $0xa4] ss:$8 sps:$4 sm:$0xff]  }
  0x14   :  { %v1521_v58 = vld [vmem:[%s2107_s0 + $0x194] ss:$8 sps:$4 sm:$0xff]   ;;  %v1520_v59 = vld [vmem:[%s2107_s0 + $0xa0] ss:$8 sps:$4 sm:$0xff]   ;;  %v1523_v60 = vld [vmem:[%s2107_s0 + $0x190] ss:$8 sps:$4 sm:$0xff]  }
  0x15   :  { %v1524_v61 = vld [vmem:[%s2107_s0 + $0xb4] ss:$8 sps:$4 sm:$0xff]   ;;  %v1527_v62 = vld [vmem:[%s2107_s0 + $0x1a4] ss:$8 sps:$4 sm:$0xff]   ;;  %v1526_v63 = vld [vmem:[%s2107_s0 + $0xb0] ss:$8 sps:$4 sm:$0xff]  }
  0x16   :  { %505 = vmatpush1.bf16.msra.mxu0 %v1447_v7  ;;  %1430 = vmatpush1.bf16.msra.mxu1 %v1447_v7  ;;  %v1530_v1 = vld [vmem:[%s2107_s0 + $0xc4] ss:$8 sps:$4 sm:$0xff]   ;;  %v1533_v2 = vld [vmem:[%s2107_s0 + $0x1b4] ss:$8 sps:$4 sm:$0xff]   ;;  %v1532_v4 = vld [vmem:[%s2107_s0 + $0xc0] ss:$8 sps:$4 sm:$0xff]  }
  0x17   :  { %506 = vmatprep.subr.bf16.mxu0 %v1544_v0  ;;  %1415 = vmatprep.subr.bf16.mxu1 %v1544_v0  ;;  %v71_v3 = vld [vmem:[%s2107_s0 + $0x1c0] sm:$0xff]  ;;  %v1535_v5 = vld [vmem:[%s2107_s0 + $0x1b0] ss:$8 sps:$4 sm:$0xff]   ;;  %v1536_v6 = vld [vmem:[%s2107_s0 + $0xd4] ss:$8 sps:$4 sm:$0xff]  }
  0x18   :  { %v1278_v7 = vcombine.high %v71_v3, %v71_v3  ;;  %v1538_v8 = vld [vmem:[%s2107_s0 + $0xd0] ss:$8 sps:$4 sm:$0xff]  }
  0x1a   :  { %507 = vmatpush1.bf16.msra.mxu0 %v1448_v9  ;;  %1431 = vmatpush1.bf16.msra.mxu1 %v1448_v9  ;;  %v1277_v9 = vcombine.low %v71_v3, %v71_v3 }
  0x1b   :  { %508 = vmatprep.subr.bf16.mxu0 %v1544_v0  ;;  %1416 = vmatprep.subr.bf16.mxu1 %v1544_v0 }
  0x1e   :  { %509 = vmatpush1.bf16.msra.mxu0 %v1449_v10  ;;  %1432 = vmatpush1.bf16.msra.mxu1 %v1449_v10  ;;  %v1541_v10 = vld [vmem:[%s2107_s0 + $0xe4] ss:$8 sps:$4 sm:$0xff]  }
  0x1f   :  { %510 = vmatprep.subr.bf16.mxu0 %v1544_v0  ;;  %1417 = vmatprep.subr.bf16.mxu1 %v1544_v0 }
  0x22   :  { %511 = vmatpush2.bf16.msra.mxu0 %v1450_v11  ;;  %1433 = vmatpush2.bf16.msra.mxu1 %v1450_v11  ;;  %v1543_v11 = vld [vmem:[%s2107_s0 + $0xe0] ss:$8 sps:$4 sm:$0xff]  }
  0x23   :  { %512 = vmatprep.subr.bf16.mxu0 %v1544_v0  ;;  %1418 = vmatprep.subr.bf16.mxu1 %v1544_v0 }
  0x26   :  { %513 = vmatpush2.bf16.msra.mxu0 %v1451_v12  ;;  %1434 = vmatpush2.bf16.msra.mxu1 %v1451_v12  ;;  %v1819_v12 = vld [vmem:[%s2108_s2] ss:$0 sm:$0xff] }
  0x27   :  { %514 = vmatprep.subr.bf16.mxu0 %v1544_v0  ;;  %1419 = vmatprep.subr.bf16.mxu1 %v1544_v0 }
  0x2a   :  { %515 = vmatpush2.bf16.msra.mxu0 %v1452_v13  ;;  %1435 = vmatpush2.bf16.msra.mxu1 %v1452_v13 }
  0x2b   :  { %516 = vmatprep.subr.bf16.mxu0 %v1544_v0  ;;  %1420 = vmatprep.subr.bf16.mxu1 %v1544_v0 }
  0x2e   :  { %517 = vmatpush2.bf16.msra.mxu0 %v1453_v14  ;;  %1436 = vmatpush2.bf16.msra.mxu1 %v1453_v14 }
  0x2f   :  { %518 = vmatprep.subr.bf16.mxu0 %v1544_v0  ;;  %1421 = vmatprep.subr.bf16.mxu1 %v1544_v0 }
  0x32   :  { %519 = vmatpush2.bf16.msra.mxu0 %v1454_v15  ;;  %1437 = vmatpush2.bf16.msra.mxu1 %v1454_v15 }
  0x33   :  { %520 = vmatprep.subr.bf16.mxu0 %v1544_v0  ;;  %1422 = vmatprep.subr.bf16.mxu1 %v1544_v0 }
  0x36   :  { %521 = vmatpush2.bf16.msra.mxu0 %v1455_v16  ;;  %1438 = vmatpush2.bf16.msra.mxu1 %v1455_v16 }
  0x37   :  { %522 = vmatprep.subr.bf16.mxu0 %v1544_v0  ;;  %1423 = vmatprep.subr.bf16.mxu1 %v1544_v0 }
  0x3a   :  { %523 = vmatpush2.bf16.msra.mxu0 %v1456_v17  ;;  %1439 = vmatpush2.bf16.msra.mxu1 %v1456_v17 }
  0x3b   :  { %524 = vmatprep.subr.bf16.mxu0 %v1544_v0  ;;  %1424 = vmatprep.subr.bf16.mxu1 %v1544_v0  ;;  %v1529_v0 = vld [vmem:[%s2107_s0 + $0x1a0] ss:$8 sps:$4 sm:$0xff]  }
  0x3e   :  { %525 = vmatpush2.bf16.msra.mxu0 %v1457_v18  ;;  %1440 = vmatpush2.bf16.msra.mxu1 %v1457_v18 }
  0x41   :  { %527 = vmatmul.mubr.bf16.vlgmr.msra.gmra.mxu0 %v1458_v19  ;;  %647 = vmatmul.mubr.bf16.vlgmr.msra.gmra.mxu1 %v1461_v20 }
  0x42   :  { %534 = vmatprep.mubr.bf16.mxu0 %v1464_v21  ;;  %654 = vmatprep.mubr.bf16.mxu1 %v1467_v22 }
  0x49   :  { %535 = vmatmul.mubr.bf16.gmra.mxu0 %v1466_v23  ;;  %655 = vmatmul.mubr.bf16.gmra.mxu1 %v1469_v24 }
  0x4a   :  { %542 = vmatprep.mubr.bf16.mxu0 %v1470_v25  ;;  %662 = vmatprep.mubr.bf16.mxu1 %v1473_v26 }
  0x51   :  { %543 = vmatmul.mubr.bf16.gmra.mxu0 %v1472_v27  ;;  %663 = vmatmul.mubr.bf16.gmra.mxu1 %v1475_v28 }
  0x52   :  { %550 = vmatprep.mubr.bf16.mxu0 %v1476_v29  ;;  %670 = vmatprep.mubr.bf16.mxu1 %v1479_v30 }
  0x59   :  { %551 = vmatmul.mubr.bf16.gmra.mxu0 %v1478_v31  ;;  %671 = vmatmul.mubr.bf16.gmra.mxu1 %v1481_v32 }
  0x5a   :  { %558 = vmatprep.mubr.bf16.mxu0 %v1482_v33  ;;  %678 = vmatprep.mubr.bf16.mxu1 %v1485_v34 }
  0x61   :  { %559 = vmatmul.mubr.bf16.gmra.mxu0 %v1484_v35  ;;  %679 = vmatmul.mubr.bf16.gmra.mxu1 %v1487_v36 }
  0x62   :  { %566 = vmatprep.mubr.bf16.mxu0 %v1488_v37  ;;  %686 = vmatprep.mubr.bf16.mxu1 %v1491_v38 }
  0x69   :  { %567 = vmatmul.mubr.bf16.gmra.mxu0 %v1490_v39  ;;  %687 = vmatmul.mubr.bf16.gmra.mxu1 %v1493_v40 }
  0x6a   :  { %574 = vmatprep.mubr.bf16.mxu0 %v1494_v41  ;;  %694 = vmatprep.mubr.bf16.mxu1 %v1497_v42 }
  0x71   :  { %575 = vmatmul.mubr.bf16.gmra.mxu0 %v1496_v43  ;;  %695 = vmatmul.mubr.bf16.gmra.mxu1 %v1499_v44 }
  0x72   :  { %582 = vmatprep.mubr.bf16.mxu0 %v1500_v45  ;;  %702 = vmatprep.mubr.bf16.mxu1 %v1503_v46 }
  0x79   :  { %583 = vmatmul.mubr.bf16.gmra.mxu0 %v1502_v47  ;;  %703 = vmatmul.mubr.bf16.gmra.mxu1 %v1505_v48 }
  0x7a   :  { %590 = vmatprep.mubr.bf16.mxu0 %v1506_v49  ;;  %710 = vmatprep.mubr.bf16.mxu1 %v1509_v50 }
  0x81   :  { %591 = vmatmul.mubr.bf16.gmra.mxu0 %v1508_v51  ;;  %711 = vmatmul.mubr.bf16.gmra.mxu1 %v1511_v52 }
  0x82   :  { %598 = vmatprep.mubr.bf16.mxu0 %v1512_v53  ;;  %718 = vmatprep.mubr.bf16.mxu1 %v1515_v54 }
  0x89   :  { %599 = vmatmul.mubr.bf16.gmra.mxu0 %v1514_v55  ;;  %719 = vmatmul.mubr.bf16.gmra.mxu1 %v1517_v56 }
  0x8a   :  { %606 = vmatprep.mubr.bf16.mxu0 %v1518_v57  ;;  %726 = vmatprep.mubr.bf16.mxu1 %v1521_v58 }
  0x91   :  { %607 = vmatmul.mubr.bf16.gmra.mxu0 %v1520_v59  ;;  %727 = vmatmul.mubr.bf16.gmra.mxu1 %v1523_v60 }
  0x92   :  { %614 = vmatprep.mubr.bf16.mxu0 %v1524_v61  ;;  %734 = vmatprep.mubr.bf16.mxu1 %v1527_v62 }
  0x99   :  { %615 = vmatmul.mubr.bf16.gmra.mxu0 %v1526_v63  ;;  %735 = vmatmul.mubr.bf16.gmra.mxu1 %v1529_v0 }
  0x9a   :  { %622 = vmatprep.mubr.bf16.mxu0 %v1530_v1  ;;  %742 = vmatprep.mubr.bf16.mxu1 %v1533_v2 }
  0xa1   :  { %623 = vmatmul.mubr.bf16.gmra.mxu0 %v1532_v4  ;;  %743 = vmatmul.mubr.bf16.gmra.mxu1 %v1535_v5 }
  0xa2   :  { %630 = vmatprep.mubr.bf16.mxu0 %v1536_v6  ;;  %750 = vmatprep.mubr.bf16.mxu1 %v1278_v7 }
  0xa9   :  { %631 = vmatmul.mubr.bf16.gmra.mxu0 %v1538_v8  ;;  %751 = vmatmul.mubr.bf16.gmra.mxu1 %v1277_v9 }
  0xaa   :  { %638 = vmatprep.mubr.bf16.mxu0 %v1541_v10 }
  0xb1   :  { %639 = vmatmul.mubr.bf16.gmra.mxu0 %v1543_v11 }
 0x101   :  { %v528_v13 = vpop.f32.mrf.mxu0  ;;  %v648_v14 = vpop.f32.mrf.mxu1 }
 0x102   :  { %v529_v15 = vadd.f32 %v1819_v12, %v528_v13  ;;  %v649_v16 = vadd.f32 %v1819_v12, %v648_v14 }
 0x103   :  { %v530_v17 = vpop.f32.mrf.mxu0  ;;  %v650_v18 = vpop.f32.mrf.mxu1 }
 0x104   :  { %vm758_vm0 = vcmp.ge.f32.partialorder %v529_v15, 0.0  ;;  %v815_v19 = vmul.f32 0.01, %v529_v15  ;;  %vm788_vm1 = vcmp.ge.f32.partialorder %v649_v16, 0.0  ;;  %v845_v20 = vmul.f32 0.01, %v649_v16 }
 0x105   :  { %v531_v21 = vpop.f32.mrf.mxu0  ;;  %v651_v22 = vpop.f32.mrf.mxu1 }
 0x106   :  { %v872_v23 = vsel %vm758_vm0, %v529_v15, %v815_v19  ;;  %v532_v24 = vadd.f32 %v1819_v12, %v531_v21  ;;  %v902_v25 = vsel %vm788_vm1, %v649_v16, %v845_v20  ;;  %v652_v26 = vadd.f32 %v1819_v12, %v651_v22 }
 0x107   :  { %v1352_v27 = vpack.c.bf16 %v872_v23, %v872_v23  ;;  %v533_v28 = vpop.f32.mrf.mxu0  ;;  %v1382_v29 = vpack.c.bf16 %v902_v25, %v902_v25  ;;  %v653_v30 = vpop.f32.mrf.mxu1 }
 0x108   :  { %vm759_vm3 = vcmp.ge.f32.partialorder %v532_v24, 0.0  ;;  %v816_v31 = vmul.f32 0.01, %v532_v24  ;;  %vm789_vm4 = vcmp.ge.f32.partialorder %v652_v26, 0.0  ;;  %v846_v32 = vmul.f32 0.01, %v652_v26 }
 0x109   :  { %1159 = vst.msk [vmem:[%s2109_s3] sm:$0xf] %vm1158_vm2, %v1352_v27  ;;  %1189 = vst.msk [vmem:[%s2109_s3 + $0x78] sm:$0xf] %vm1158_vm2, %v1382_v29  ;;  %v536_v33 = vpop.f32.mrf.mxu0  ;;  %v656_v34 = vpop.f32.mrf.mxu1 }
 0x10a   :  { %v873_v35 = vsel %vm759_vm3, %v532_v24, %v816_v31  ;;  %v537_v36 = vadd.f32 %v1819_v12, %v536_v33  ;;  %v903_v37 = vsel %vm789_vm4, %v652_v26, %v846_v32  ;;  %v657_v38 = vadd.f32 %v1819_v12, %v656_v34 }
 0x10b   :  { %v1353_v39 = vpack.c.bf16 %v873_v35, %v873_v35  ;;  %v538_v40 = vpop.f32.mrf.mxu0  ;;  %v1383_v41 = vpack.c.bf16 %v903_v37, %v903_v37  ;;  %v658_v42 = vpop.f32.mrf.mxu1 }
 0x10c   :  { %vm760_vm5 = vcmp.ge.f32.partialorder %v537_v36, 0.0  ;;  %v817_v43 = vmul.f32 0.01, %v537_v36  ;;  %vm790_vm6 = vcmp.ge.f32.partialorder %v657_v38, 0.0  ;;  %v847_v44 = vmul.f32 0.01, %v657_v38 }
 0x10d   :  { %1160 = vst.msk [vmem:[%s2109_s3 + $0x4] sm:$0xf] %vm1158_vm2, %v1353_v39  ;;  %1190 = vst.msk [vmem:[%s2109_s3 + $0x7c] sm:$0xf] %vm1158_vm2, %v1383_v41  ;;  %v539_v45 = vpop.f32.mrf.mxu0  ;;  %v659_v46 = vpop.f32.mrf.mxu1 }
 0x10e   :  { %v874_v47 = vsel %vm760_vm5, %v537_v36, %v817_v43  ;;  %v540_v48 = vadd.f32 %v1819_v12, %v539_v45  ;;  %v904_v49 = vsel %vm790_vm6, %v657_v38, %v847_v44  ;;  %v660_v50 = vadd.f32 %v1819_v12, %v659_v46 }
 0x10f   :  { %v1354_v51 = vpack.c.bf16 %v874_v47, %v874_v47  ;;  %v541_v52 = vpop.f32.mrf.mxu0  ;;  %v1384_v53 = vpack.c.bf16 %v904_v49, %v904_v49  ;;  %v661_v54 = vpop.f32.mrf.mxu1 }
 0x110   :  { %vm761_vm7 = vcmp.ge.f32.partialorder %v540_v48, 0.0  ;;  %v818_v55 = vmul.f32 0.01, %v540_v48  ;;  %vm791_vm8 = vcmp.ge.f32.partialorder %v660_v50, 0.0  ;;  %v848_v56 = vmul.f32 0.01, %v660_v50 }
 0x111   :  { %1161 = vst.msk [vmem:[%s2109_s3 + $0x8] sm:$0xf] %vm1158_vm2, %v1354_v51  ;;  %1191 = vst.msk [vmem:[%s2109_s3 + $0x80] sm:$0xf] %vm1158_vm2, %v1384_v53  ;;  %v544_v57 = vpop.f32.mrf.mxu0  ;;  %v664_v58 = vpop.f32.mrf.mxu1 }
 0x112   :  { %v875_v59 = vsel %vm761_vm7, %v540_v48, %v818_v55  ;;  %v545_v60 = vadd.f32 %v1819_v12, %v544_v57  ;;  %v905_v61 = vsel %vm791_vm8, %v660_v50, %v848_v56  ;;  %v665_v62 = vadd.f32 %v1819_v12, %v664_v58 }
 0x113   :  { %v1355_v63 = vpack.c.bf16 %v875_v59, %v875_v59  ;;  %v546_v0 = vpop.f32.mrf.mxu0  ;;  %v1385_v1 = vpack.c.bf16 %v905_v61, %v905_v61  ;;  %v666_v2 = vpop.f32.mrf.mxu1 }
 0x114   :  { %vm762_vm9 = vcmp.ge.f32.partialorder %v545_v60, 0.0  ;;  %v819_v3 = vmul.f32 0.01, %v545_v60  ;;  %vm792_vm10 = vcmp.ge.f32.partialorder %v665_v62, 0.0  ;;  %v849_v4 = vmul.f32 0.01, %v665_v62 }
 0x115   :  { %1162 = vst.msk [vmem:[%s2109_s3 + $0xc] sm:$0xf] %vm1158_vm2, %v1355_v63  ;;  %1192 = vst.msk [vmem:[%s2109_s3 + $0x84] sm:$0xf] %vm1158_vm2, %v1385_v1  ;;  %v547_v5 = vpop.f32.mrf.mxu0  ;;  %v667_v6 = vpop.f32.mrf.mxu1 }
 0x116   :  { %v876_v7 = vsel %vm762_vm9, %v545_v60, %v819_v3  ;;  %v548_v8 = vadd.f32 %v1819_v12, %v547_v5  ;;  %v906_v9 = vsel %vm792_vm10, %v665_v62, %v849_v4  ;;  %v668_v10 = vadd.f32 %v1819_v12, %v667_v6 }
 0x117   :  { %v1356_v11 = vpack.c.bf16 %v876_v7, %v876_v7  ;;  %v549_v13 = vpop.f32.mrf.mxu0  ;;  %v1386_v14 = vpack.c.bf16 %v906_v9, %v906_v9  ;;  %v669_v15 = vpop.f32.mrf.mxu1 }
 0x118   :  { %vm763_vm11 = vcmp.ge.f32.partialorder %v548_v8, 0.0  ;;  %v820_v16 = vmul.f32 0.01, %v548_v8  ;;  %vm793_vm12 = vcmp.ge.f32.partialorder %v668_v10, 0.0  ;;  %v850_v17 = vmul.f32 0.01, %v668_v10 }
 0x119   :  { %1163 = vst.msk [vmem:[%s2109_s3 + $0x10] sm:$0xf] %vm1158_vm2, %v1356_v11  ;;  %1193 = vst.msk [vmem:[%s2109_s3 + $0x88] sm:$0xf] %vm1158_vm2, %v1386_v14  ;;  %v552_v18 = vpop.f32.mrf.mxu0  ;;  %v672_v19 = vpop.f32.mrf.mxu1 }
 0x11a   :  { %v877_v20 = vsel %vm763_vm11, %v548_v8, %v820_v16  ;;  %v553_v21 = vadd.f32 %v1819_v12, %v552_v18  ;;  %v907_v22 = vsel %vm793_vm12, %v668_v10, %v850_v17  ;;  %v673_v23 = vadd.f32 %v1819_v12, %v672_v19 }
 0x11b   :  { %v1357_v24 = vpack.c.bf16 %v877_v20, %v877_v20  ;;  %v554_v25 = vpop.f32.mrf.mxu0  ;;  %v1387_v26 = vpack.c.bf16 %v907_v22, %v907_v22  ;;  %v674_v27 = vpop.f32.mrf.mxu1 }
 0x11c   :  { %vm764_vm13 = vcmp.ge.f32.partialorder %v553_v21, 0.0  ;;  %v821_v28 = vmul.f32 0.01, %v553_v21  ;;  %vm794_vm14 = vcmp.ge.f32.partialorder %v673_v23, 0.0  ;;  %v851_v29 = vmul.f32 0.01, %v673_v23 }
 0x11d   :  { %1164 = vst.msk [vmem:[%s2109_s3 + $0x14] sm:$0xf] %vm1158_vm2, %v1357_v24  ;;  %1194 = vst.msk [vmem:[%s2109_s3 + $0x8c] sm:$0xf] %vm1158_vm2, %v1387_v26  ;;  %v555_v30 = vpop.f32.mrf.mxu0  ;;  %v675_v31 = vpop.f32.mrf.mxu1 }
 0x11e   :  { %v878_v32 = vsel %vm764_vm13, %v553_v21, %v821_v28  ;;  %v556_v33 = vadd.f32 %v1819_v12, %v555_v30  ;;  %v908_v34 = vsel %vm794_vm14, %v673_v23, %v851_v29  ;;  %v676_v35 = vadd.f32 %v1819_v12, %v675_v31 }
 0x11f   :  { %v1358_v36 = vpack.c.bf16 %v878_v32, %v878_v32  ;;  %v557_v37 = vpop.f32.mrf.mxu0  ;;  %v1388_v38 = vpack.c.bf16 %v908_v34, %v908_v34  ;;  %v677_v39 = vpop.f32.mrf.mxu1 }
 0x120   :  { %vm765_vm15 = vcmp.ge.f32.partialorder %v556_v33, 0.0  ;;  %v822_v40 = vmul.f32 0.01, %v556_v33  ;;  %vm795_vm0 = vcmp.ge.f32.partialorder %v676_v35, 0.0  ;;  %v852_v41 = vmul.f32 0.01, %v676_v35 }
 0x121   :  { %1165 = vst.msk [vmem:[%s2109_s3 + $0x18] sm:$0xf] %vm1158_vm2, %v1358_v36  ;;  %1195 = vst.msk [vmem:[%s2109_s3 + $0x90] sm:$0xf] %vm1158_vm2, %v1388_v38  ;;  %v560_v42 = vpop.f32.mrf.mxu0  ;;  %v680_v43 = vpop.f32.mrf.mxu1 }
 0x122   :  { %v879_v44 = vsel %vm765_vm15, %v556_v33, %v822_v40  ;;  %v561_v45 = vadd.f32 %v1819_v12, %v560_v42  ;;  %v909_v46 = vsel %vm795_vm0, %v676_v35, %v852_v41  ;;  %v681_v47 = vadd.f32 %v1819_v12, %v680_v43 }
 0x123   :  { %v1359_v48 = vpack.c.bf16 %v879_v44, %v879_v44  ;;  %v562_v49 = vpop.f32.mrf.mxu0  ;;  %v1389_v50 = vpack.c.bf16 %v909_v46, %v909_v46  ;;  %v682_v51 = vpop.f32.mrf.mxu1 }
 0x124   :  { %vm766_vm1 = vcmp.ge.f32.partialorder %v561_v45, 0.0  ;;  %v823_v52 = vmul.f32 0.01, %v561_v45  ;;  %vm796_vm3 = vcmp.ge.f32.partialorder %v681_v47, 0.0  ;;  %v853_v53 = vmul.f32 0.01, %v681_v47 }
 0x125   :  { %1166 = vst.msk [vmem:[%s2109_s3 + $0x1c] sm:$0xf] %vm1158_vm2, %v1359_v48  ;;  %1196 = vst.msk [vmem:[%s2109_s3 + $0x94] sm:$0xf] %vm1158_vm2, %v1389_v50  ;;  %v563_v54 = vpop.f32.mrf.mxu0  ;;  %v683_v55 = vpop.f32.mrf.mxu1 }
 0x126   :  { %v880_v56 = vsel %vm766_vm1, %v561_v45, %v823_v52  ;;  %v564_v57 = vadd.f32 %v1819_v12, %v563_v54  ;;  %v910_v58 = vsel %vm796_vm3, %v681_v47, %v853_v53  ;;  %v684_v59 = vadd.f32 %v1819_v12, %v683_v55 }
 0x127   :  { %v1360_v60 = vpack.c.bf16 %v880_v56, %v880_v56  ;;  %v565_v61 = vpop.f32.mrf.mxu0  ;;  %v1390_v62 = vpack.c.bf16 %v910_v58, %v910_v58  ;;  %v685_v63 = vpop.f32.mrf.mxu1 }
 0x128   :  { %vm767_vm4 = vcmp.ge.f32.partialorder %v564_v57, 0.0  ;;  %v824_v0 = vmul.f32 0.01, %v564_v57  ;;  %vm797_vm5 = vcmp.ge.f32.partialorder %v684_v59, 0.0  ;;  %v854_v1 = vmul.f32 0.01, %v684_v59 }
 0x129   :  { %1167 = vst.msk [vmem:[%s2109_s3 + $0x20] sm:$0xf] %vm1158_vm2, %v1360_v60  ;;  %1197 = vst.msk [vmem:[%s2109_s3 + $0x98] sm:$0xf] %vm1158_vm2, %v1390_v62  ;;  %v568_v2 = vpop.f32.mrf.mxu0  ;;  %v688_v3 = vpop.f32.mrf.mxu1 }
 0x12a   :  { %v881_v4 = vsel %vm767_vm4, %v564_v57, %v824_v0  ;;  %v569_v5 = vadd.f32 %v1819_v12, %v568_v2  ;;  %v911_v6 = vsel %vm797_vm5, %v684_v59, %v854_v1  ;;  %v689_v7 = vadd.f32 %v1819_v12, %v688_v3 }
 0x12b   :  { %v1361_v8 = vpack.c.bf16 %v881_v4, %v881_v4  ;;  %v570_v9 = vpop.f32.mrf.mxu0  ;;  %v1391_v10 = vpack.c.bf16 %v911_v6, %v911_v6  ;;  %v690_v11 = vpop.f32.mrf.mxu1 }
 0x12c   :  { %vm768_vm6 = vcmp.ge.f32.partialorder %v569_v5, 0.0  ;;  %v825_v13 = vmul.f32 0.01, %v569_v5  ;;  %vm798_vm7 = vcmp.ge.f32.partialorder %v689_v7, 0.0  ;;  %v855_v14 = vmul.f32 0.01, %v689_v7 }
 0x12d   :  { %1168 = vst.msk [vmem:[%s2109_s3 + $0x24] sm:$0xf] %vm1158_vm2, %v1361_v8  ;;  %1198 = vst.msk [vmem:[%s2109_s3 + $0x9c] sm:$0xf] %vm1158_vm2, %v1391_v10  ;;  %v571_v15 = vpop.f32.mrf.mxu0  ;;  %v691_v16 = vpop.f32.mrf.mxu1 }
 0x12e   :  { %v882_v17 = vsel %vm768_vm6, %v569_v5, %v825_v13  ;;  %v572_v18 = vadd.f32 %v1819_v12, %v571_v15  ;;  %v912_v19 = vsel %vm798_vm7, %v689_v7, %v855_v14  ;;  %v692_v20 = vadd.f32 %v1819_v12, %v691_v16 }
 0x12f   :  { %v1362_v21 = vpack.c.bf16 %v882_v17, %v882_v17  ;;  %v573_v22 = vpop.f32.mrf.mxu0  ;;  %v1392_v23 = vpack.c.bf16 %v912_v19, %v912_v19  ;;  %v693_v24 = vpop.f32.mrf.mxu1 }
 0x130   :  { %vm769_vm8 = vcmp.ge.f32.partialorder %v572_v18, 0.0  ;;  %v826_v25 = vmul.f32 0.01, %v572_v18  ;;  %vm799_vm9 = vcmp.ge.f32.partialorder %v692_v20, 0.0  ;;  %v856_v26 = vmul.f32 0.01, %v692_v20 }
 0x131   :  { %1169 = vst.msk [vmem:[%s2109_s3 + $0x28] sm:$0xf] %vm1158_vm2, %v1362_v21  ;;  %1199 = vst.msk [vmem:[%s2109_s3 + $0xa0] sm:$0xf] %vm1158_vm2, %v1392_v23  ;;  %v576_v27 = vpop.f32.mrf.mxu0  ;;  %v696_v28 = vpop.f32.mrf.mxu1 }
 0x132   :  { %v883_v29 = vsel %vm769_vm8, %v572_v18, %v826_v25  ;;  %v577_v30 = vadd.f32 %v1819_v12, %v576_v27  ;;  %v913_v31 = vsel %vm799_vm9, %v692_v20, %v856_v26  ;;  %v697_v32 = vadd.f32 %v1819_v12, %v696_v28 }
 0x133   :  { %v1363_v33 = vpack.c.bf16 %v883_v29, %v883_v29  ;;  %v578_v34 = vpop.f32.mrf.mxu0  ;;  %v1393_v35 = vpack.c.bf16 %v913_v31, %v913_v31  ;;  %v698_v36 = vpop.f32.mrf.mxu1 }
 0x134   :  { %vm770_vm10 = vcmp.ge.f32.partialorder %v577_v30, 0.0  ;;  %v827_v37 = vmul.f32 0.01, %v577_v30  ;;  %vm800_vm11 = vcmp.ge.f32.partialorder %v697_v32, 0.0  ;;  %v857_v38 = vmul.f32 0.01, %v697_v32 }
 0x135   :  { %1170 = vst.msk [vmem:[%s2109_s3 + $0x2c] sm:$0xf] %vm1158_vm2, %v1363_v33  ;;  %1200 = vst.msk [vmem:[%s2109_s3 + $0xa4] sm:$0xf] %vm1158_vm2, %v1393_v35  ;;  %v579_v39 = vpop.f32.mrf.mxu0  ;;  %v699_v40 = vpop.f32.mrf.mxu1 }
 0x136   :  { %v884_v41 = vsel %vm770_vm10, %v577_v30, %v827_v37  ;;  %v580_v42 = vadd.f32 %v1819_v12, %v579_v39  ;;  %v914_v43 = vsel %vm800_vm11, %v697_v32, %v857_v38  ;;  %v700_v44 = vadd.f32 %v1819_v12, %v699_v40 }
 0x137   :  { %v1364_v45 = vpack.c.bf16 %v884_v41, %v884_v41  ;;  %v581_v46 = vpop.f32.mrf.mxu0  ;;  %v1394_v47 = vpack.c.bf16 %v914_v43, %v914_v43  ;;  %v701_v48 = vpop.f32.mrf.mxu1 }
 0x138   :  { %vm771_vm12 = vcmp.ge.f32.partialorder %v580_v42, 0.0  ;;  %v828_v49 = vmul.f32 0.01, %v580_v42  ;;  %vm801_vm13 = vcmp.ge.f32.partialorder %v700_v44, 0.0  ;;  %v858_v50 = vmul.f32 0.01, %v700_v44 }
 0x139   :  { %1171 = vst.msk [vmem:[%s2109_s3 + $0x30] sm:$0xf] %vm1158_vm2, %v1364_v45  ;;  %1201 = vst.msk [vmem:[%s2109_s3 + $0xa8] sm:$0xf] %vm1158_vm2, %v1394_v47  ;;  %v584_v51 = vpop.f32.mrf.mxu0  ;;  %v704_v52 = vpop.f32.mrf.mxu1 }
 0x13a   :  { %v885_v53 = vsel %vm771_vm12, %v580_v42, %v828_v49  ;;  %v585_v54 = vadd.f32 %v1819_v12, %v584_v51  ;;  %v915_v55 = vsel %vm801_vm13, %v700_v44, %v858_v50  ;;  %v705_v56 = vadd.f32 %v1819_v12, %v704_v52 }
 0x13b   :  { %v1365_v57 = vpack.c.bf16 %v885_v53, %v885_v53  ;;  %v586_v58 = vpop.f32.mrf.mxu0  ;;  %v1395_v59 = vpack.c.bf16 %v915_v55, %v915_v55  ;;  %v706_v60 = vpop.f32.mrf.mxu1 }
 0x13c   :  { %vm772_vm14 = vcmp.ge.f32.partialorder %v585_v54, 0.0  ;;  %v829_v61 = vmul.f32 0.01, %v585_v54  ;;  %vm802_vm15 = vcmp.ge.f32.partialorder %v705_v56, 0.0  ;;  %v859_v62 = vmul.f32 0.01, %v705_v56 }
 0x13d   :  { %1172 = vst.msk [vmem:[%s2109_s3 + $0x34] sm:$0xf] %vm1158_vm2, %v1365_v57  ;;  %1202 = vst.msk [vmem:[%s2109_s3 + $0xac] sm:$0xf] %vm1158_vm2, %v1395_v59  ;;  %v587_v63 = vpop.f32.mrf.mxu0  ;;  %v707_v0 = vpop.f32.mrf.mxu1 }
 0x13e   :  { %v886_v1 = vsel %vm772_vm14, %v585_v54, %v829_v61  ;;  %v588_v2 = vadd.f32 %v1819_v12, %v587_v63  ;;  %v916_v3 = vsel %vm802_vm15, %v705_v56, %v859_v62  ;;  %v708_v4 = vadd.f32 %v1819_v12, %v707_v0 }
 0x13f   :  { %v1366_v5 = vpack.c.bf16 %v886_v1, %v886_v1  ;;  %v589_v6 = vpop.f32.mrf.mxu0  ;;  %v1396_v7 = vpack.c.bf16 %v916_v3, %v916_v3  ;;  %v709_v8 = vpop.f32.mrf.mxu1 }
 0x140   :  { %vm773_vm0 = vcmp.ge.f32.partialorder %v588_v2, 0.0  ;;  %v830_v9 = vmul.f32 0.01, %v588_v2  ;;  %vm803_vm1 = vcmp.ge.f32.partialorder %v708_v4, 0.0  ;;  %v860_v10 = vmul.f32 0.01, %v708_v4 }
 0x141   :  { %1173 = vst.msk [vmem:[%s2109_s3 + $0x38] sm:$0xf] %vm1158_vm2, %v1366_v5  ;;  %1203 = vst.msk [vmem:[%s2109_s3 + $0xb0] sm:$0xf] %vm1158_vm2, %v1396_v7  ;;  %v592_v11 = vpop.f32.mrf.mxu0  ;;  %v712_v13 = vpop.f32.mrf.mxu1 }
 0x142   :  { %v887_v14 = vsel %vm773_vm0, %v588_v2, %v830_v9  ;;  %v593_v15 = vadd.f32 %v1819_v12, %v592_v11  ;;  %v917_v16 = vsel %vm803_vm1, %v708_v4, %v860_v10  ;;  %v713_v17 = vadd.f32 %v1819_v12, %v712_v13 }
 0x143   :  { %v1367_v18 = vpack.c.bf16 %v887_v14, %v887_v14  ;;  %v594_v19 = vpop.f32.mrf.mxu0  ;;  %v1397_v20 = vpack.c.bf16 %v917_v16, %v917_v16  ;;  %v714_v21 = vpop.f32.mrf.mxu1 }
 0x144   :  { %vm774_vm3 = vcmp.ge.f32.partialorder %v593_v15, 0.0  ;;  %v831_v22 = vmul.f32 0.01, %v593_v15  ;;  %vm804_vm4 = vcmp.ge.f32.partialorder %v713_v17, 0.0  ;;  %v861_v23 = vmul.f32 0.01, %v713_v17 }
 0x145   :  { %1174 = vst.msk [vmem:[%s2109_s3 + $0x3c] sm:$0xf] %vm1158_vm2, %v1367_v18  ;;  %1204 = vst.msk [vmem:[%s2109_s3 + $0xb4] sm:$0xf] %vm1158_vm2, %v1397_v20  ;;  %v595_v24 = vpop.f32.mrf.mxu0  ;;  %v715_v25 = vpop.f32.mrf.mxu1 }
 0x146   :  { %v888_v26 = vsel %vm774_vm3, %v593_v15, %v831_v22  ;;  %v596_v27 = vadd.f32 %v1819_v12, %v595_v24  ;;  %v918_v28 = vsel %vm804_vm4, %v713_v17, %v861_v23  ;;  %v716_v29 = vadd.f32 %v1819_v12, %v715_v25 }
 0x147   :  { %v1368_v30 = vpack.c.bf16 %v888_v26, %v888_v26  ;;  %v597_v31 = vpop.f32.mrf.mxu0  ;;  %v1398_v32 = vpack.c.bf16 %v918_v28, %v918_v28  ;;  %v717_v33 = vpop.f32.mrf.mxu1 }
 0x148   :  { %vm775_vm5 = vcmp.ge.f32.partialorder %v596_v27, 0.0  ;;  %v832_v34 = vmul.f32 0.01, %v596_v27  ;;  %vm805_vm6 = vcmp.ge.f32.partialorder %v716_v29, 0.0  ;;  %v862_v35 = vmul.f32 0.01, %v716_v29 }
 0x149   :  { %1175 = vst.msk [vmem:[%s2109_s3 + $0x40] sm:$0xf] %vm1158_vm2, %v1368_v30  ;;  %1205 = vst.msk [vmem:[%s2109_s3 + $0xb8] sm:$0xf] %vm1158_vm2, %v1398_v32  ;;  %v600_v36 = vpop.f32.mrf.mxu0  ;;  %v720_v37 = vpop.f32.mrf.mxu1 }
 0x14a   :  { %v889_v38 = vsel %vm775_vm5, %v596_v27, %v832_v34  ;;  %v601_v39 = vadd.f32 %v1819_v12, %v600_v36  ;;  %v919_v40 = vsel %vm805_vm6, %v716_v29, %v862_v35  ;;  %v721_v41 = vadd.f32 %v1819_v12, %v720_v37 }
 0x14b   :  { %v1369_v42 = vpack.c.bf16 %v889_v38, %v889_v38  ;;  %v602_v43 = vpop.f32.mrf.mxu0  ;;  %v1399_v44 = vpack.c.bf16 %v919_v40, %v919_v40  ;;  %v722_v45 = vpop.f32.mrf.mxu1 }
 0x14c   :  { %vm776_vm7 = vcmp.ge.f32.partialorder %v601_v39, 0.0  ;;  %v833_v46 = vmul.f32 0.01, %v601_v39  ;;  %vm806_vm8 = vcmp.ge.f32.partialorder %v721_v41, 0.0  ;;  %v863_v47 = vmul.f32 0.01, %v721_v41 }
 0x14d   :  { %1176 = vst.msk [vmem:[%s2109_s3 + $0x44] sm:$0xf] %vm1158_vm2, %v1369_v42  ;;  %1206 = vst.msk [vmem:[%s2109_s3 + $0xbc] sm:$0xf] %vm1158_vm2, %v1399_v44  ;;  %v603_v48 = vpop.f32.mrf.mxu0  ;;  %v723_v49 = vpop.f32.mrf.mxu1 }
 0x14e   :  { %v890_v50 = vsel %vm776_vm7, %v601_v39, %v833_v46  ;;  %v604_v51 = vadd.f32 %v1819_v12, %v603_v48  ;;  %v920_v52 = vsel %vm806_vm8, %v721_v41, %v863_v47  ;;  %v724_v53 = vadd.f32 %v1819_v12, %v723_v49 }
 0x14f   :  { %v1370_v54 = vpack.c.bf16 %v890_v50, %v890_v50  ;;  %v605_v55 = vpop.f32.mrf.mxu0  ;;  %v1400_v56 = vpack.c.bf16 %v920_v52, %v920_v52  ;;  %v725_v57 = vpop.f32.mrf.mxu1 }
 0x150   :  { %vm777_vm9 = vcmp.ge.f32.partialorder %v604_v51, 0.0  ;;  %v834_v58 = vmul.f32 0.01, %v604_v51  ;;  %vm807_vm10 = vcmp.ge.f32.partialorder %v724_v53, 0.0  ;;  %v864_v59 = vmul.f32 0.01, %v724_v53 }
 0x151   :  { %1177 = vst.msk [vmem:[%s2109_s3 + $0x48] sm:$0xf] %vm1158_vm2, %v1370_v54  ;;  %1207 = vst.msk [vmem:[%s2109_s3 + $0xc0] sm:$0xf] %vm1158_vm2, %v1400_v56  ;;  %v608_v60 = vpop.f32.mrf.mxu0  ;;  %v728_v61 = vpop.f32.mrf.mxu1 }
 0x152   :  { %v891_v62 = vsel %vm777_vm9, %v604_v51, %v834_v58  ;;  %v609_v63 = vadd.f32 %v1819_v12, %v608_v60  ;;  %v921_v0 = vsel %vm807_vm10, %v724_v53, %v864_v59  ;;  %v729_v1 = vadd.f32 %v1819_v12, %v728_v61 }
 0x153   :  { %v1371_v2 = vpack.c.bf16 %v891_v62, %v891_v62  ;;  %v610_v3 = vpop.f32.mrf.mxu0  ;;  %v1401_v4 = vpack.c.bf16 %v921_v0, %v921_v0  ;;  %v730_v5 = vpop.f32.mrf.mxu1 }
 0x154   :  { %vm778_vm11 = vcmp.ge.f32.partialorder %v609_v63, 0.0  ;;  %v835_v6 = vmul.f32 0.01, %v609_v63  ;;  %vm808_vm12 = vcmp.ge.f32.partialorder %v729_v1, 0.0  ;;  %v865_v7 = vmul.f32 0.01, %v729_v1 }
 0x155   :  { %1178 = vst.msk [vmem:[%s2109_s3 + $0x4c] sm:$0xf] %vm1158_vm2, %v1371_v2  ;;  %1208 = vst.msk [vmem:[%s2109_s3 + $0xc4] sm:$0xf] %vm1158_vm2, %v1401_v4  ;;  %v611_v8 = vpop.f32.mrf.mxu0  ;;  %v731_v9 = vpop.f32.mrf.mxu1 }
 0x156   :  { %v892_v10 = vsel %vm778_vm11, %v609_v63, %v835_v6  ;;  %v612_v11 = vadd.f32 %v1819_v12, %v611_v8  ;;  %v922_v13 = vsel %vm808_vm12, %v729_v1, %v865_v7  ;;  %v732_v14 = vadd.f32 %v1819_v12, %v731_v9 }
 0x157   :  { %v1372_v15 = vpack.c.bf16 %v892_v10, %v892_v10  ;;  %v613_v16 = vpop.f32.mrf.mxu0  ;;  %v1402_v17 = vpack.c.bf16 %v922_v13, %v922_v13  ;;  %v733_v18 = vpop.f32.mrf.mxu1 }
 0x158   :  { %vm779_vm13 = vcmp.ge.f32.partialorder %v612_v11, 0.0  ;;  %v836_v19 = vmul.f32 0.01, %v612_v11  ;;  %vm809_vm14 = vcmp.ge.f32.partialorder %v732_v14, 0.0  ;;  %v866_v20 = vmul.f32 0.01, %v732_v14 }
 0x159   :  { %1179 = vst.msk [vmem:[%s2109_s3 + $0x50] sm:$0xf] %vm1158_vm2, %v1372_v15  ;;  %1209 = vst.msk [vmem:[%s2109_s3 + $0xc8] sm:$0xf] %vm1158_vm2, %v1402_v17  ;;  %v616_v21 = vpop.f32.mrf.mxu0  ;;  %v736_v22 = vpop.f32.mrf.mxu1 }
 0x15a   :  { %v893_v23 = vsel %vm779_vm13, %v612_v11, %v836_v19  ;;  %v617_v24 = vadd.f32 %v1819_v12, %v616_v21  ;;  %v923_v25 = vsel %vm809_vm14, %v732_v14, %v866_v20  ;;  %v737_v26 = vadd.f32 %v1819_v12, %v736_v22 }
 0x15b   :  { %v1373_v27 = vpack.c.bf16 %v893_v23, %v893_v23  ;;  %v618_v28 = vpop.f32.mrf.mxu0  ;;  %v1403_v29 = vpack.c.bf16 %v923_v25, %v923_v25  ;;  %v738_v30 = vpop.f32.mrf.mxu1 }
 0x15c   :  { %vm780_vm15 = vcmp.ge.f32.partialorder %v617_v24, 0.0  ;;  %v837_v31 = vmul.f32 0.01, %v617_v24  ;;  %vm810_vm0 = vcmp.ge.f32.partialorder %v737_v26, 0.0  ;;  %v867_v32 = vmul.f32 0.01, %v737_v26 }
 0x15d   :  { %1180 = vst.msk [vmem:[%s2109_s3 + $0x54] sm:$0xf] %vm1158_vm2, %v1373_v27  ;;  %1210 = vst.msk [vmem:[%s2109_s3 + $0xcc] sm:$0xf] %vm1158_vm2, %v1403_v29  ;;  %v619_v33 = vpop.f32.mrf.mxu0  ;;  %v739_v34 = vpop.f32.mrf.mxu1 }
 0x15e   :  { %v894_v35 = vsel %vm780_vm15, %v617_v24, %v837_v31  ;;  %v620_v36 = vadd.f32 %v1819_v12, %v619_v33  ;;  %v924_v37 = vsel %vm810_vm0, %v737_v26, %v867_v32  ;;  %v740_v38 = vadd.f32 %v1819_v12, %v739_v34 }
 0x15f   :  { %v1374_v39 = vpack.c.bf16 %v894_v35, %v894_v35  ;;  %v621_v40 = vpop.f32.mrf.mxu0  ;;  %v1404_v41 = vpack.c.bf16 %v924_v37, %v924_v37  ;;  %v741_v42 = vpop.f32.mrf.mxu1 }
 0x160   :  { %vm781_vm1 = vcmp.ge.f32.partialorder %v620_v36, 0.0  ;;  %v838_v43 = vmul.f32 0.01, %v620_v36  ;;  %vm811_vm3 = vcmp.ge.f32.partialorder %v740_v38, 0.0  ;;  %v868_v44 = vmul.f32 0.01, %v740_v38 }
 0x161   :  { %1181 = vst.msk [vmem:[%s2109_s3 + $0x58] sm:$0xf] %vm1158_vm2, %v1374_v39  ;;  %1211 = vst.msk [vmem:[%s2109_s3 + $0xd0] sm:$0xf] %vm1158_vm2, %v1404_v41  ;;  %v624_v45 = vpop.f32.mrf.mxu0  ;;  %v744_v46 = vpop.f32.mrf.mxu1 }
 0x162   :  { %v895_v47 = vsel %vm781_vm1, %v620_v36, %v838_v43  ;;  %v625_v48 = vadd.f32 %v1819_v12, %v624_v45  ;;  %v925_v49 = vsel %vm811_vm3, %v740_v38, %v868_v44  ;;  %v745_v50 = vadd.f32 %v1819_v12, %v744_v46 }
 0x163   :  { %v1375_v51 = vpack.c.bf16 %v895_v47, %v895_v47  ;;  %v626_v52 = vpop.f32.mrf.mxu0  ;;  %v1405_v53 = vpack.c.bf16 %v925_v49, %v925_v49  ;;  %v746_v54 = vpop.f32.mrf.mxu1 }
 0x164   :  { %vm782_vm4 = vcmp.ge.f32.partialorder %v625_v48, 0.0  ;;  %v839_v55 = vmul.f32 0.01, %v625_v48  ;;  %vm812_vm5 = vcmp.ge.f32.partialorder %v745_v50, 0.0  ;;  %v869_v56 = vmul.f32 0.01, %v745_v50 }
 0x165   :  { %1182 = vst.msk [vmem:[%s2109_s3 + $0x5c] sm:$0xf] %vm1158_vm2, %v1375_v51  ;;  %1212 = vst.msk [vmem:[%s2109_s3 + $0xd4] sm:$0xf] %vm1158_vm2, %v1405_v53  ;;  %v627_v57 = vpop.f32.mrf.mxu0  ;;  %v747_v58 = vpop.f32.mrf.mxu1 }
 0x166   :  { %v896_v59 = vsel %vm782_vm4, %v625_v48, %v839_v55  ;;  %v628_v60 = vadd.f32 %v1819_v12, %v627_v57  ;;  %v926_v61 = vsel %vm812_vm5, %v745_v50, %v869_v56  ;;  %v748_v62 = vadd.f32 %v1819_v12, %v747_v58 }
 0x167   :  { %v1376_v63 = vpack.c.bf16 %v896_v59, %v896_v59  ;;  %v629_v0 = vpop.f32.mrf.mxu0  ;;  %v1406_v1 = vpack.c.bf16 %v926_v61, %v926_v61  ;;  %v749_v2 = vpop.f32.mrf.mxu1 }
 0x168   :  { %vm783_vm6 = vcmp.ge.f32.partialorder %v628_v60, 0.0  ;;  %v840_v3 = vmul.f32 0.01, %v628_v60  ;;  %vm813_vm7 = vcmp.ge.f32.partialorder %v748_v62, 0.0  ;;  %v870_v4 = vmul.f32 0.01, %v748_v62 }
 0x169   :  { %1183 = vst.msk [vmem:[%s2109_s3 + $0x60] sm:$0xf] %vm1158_vm2, %v1376_v63  ;;  %1213 = vst.msk [vmem:[%s2109_s3 + $0xd8] sm:$0xf] %vm1158_vm2, %v1406_v1  ;;  %v632_v5 = vpop.f32.mrf.mxu0  ;;  %v752_v6 = vpop.f32.mrf.mxu1 }
 0x16a   :  { %v897_v7 = vsel %vm783_vm6, %v628_v60, %v840_v3  ;;  %v633_v8 = vadd.f32 %v1819_v12, %v632_v5  ;;  %v927_v9 = vsel %vm813_vm7, %v748_v62, %v870_v4  ;;  %v753_v10 = vadd.f32 %v1819_v12, %v752_v6 }
 0x16b   :  { %v1377_v11 = vpack.c.bf16 %v897_v7, %v897_v7  ;;  %v634_v13 = vpop.f32.mrf.mxu0  ;;  %v1407_v14 = vpack.c.bf16 %v927_v9, %v927_v9  ;;  %v754_v15 = vpop.f32.mrf.mxu1 }
 0x16c   :  { %vm784_vm8 = vcmp.ge.f32.partialorder %v633_v8, 0.0  ;;  %v841_v16 = vmul.f32 0.01, %v633_v8  ;;  %vm814_vm9 = vcmp.ge.f32.partialorder %v753_v10, 0.0  ;;  %v871_v17 = vmul.f32 0.01, %v753_v10 }
 0x16d   :  { %1184 = vst.msk [vmem:[%s2109_s3 + $0x64] sm:$0xf] %vm1158_vm2, %v1377_v11  ;;  %1214 = vst.msk [vmem:[%s2109_s3 + $0xdc] sm:$0xf] %vm1158_vm2, %v1407_v14  ;;  %v635_v18 = vpop.f32.mrf.mxu0  ;;  %v755_v19 = vpop.f32.mrf.mxu1 }
 0x16e   :  { %v898_v20 = vsel %vm784_vm8, %v633_v8, %v841_v16  ;;  %v636_v21 = vadd.f32 %v1819_v12, %v635_v18  ;;  %v928_v22 = vsel %vm814_vm9, %v753_v10, %v871_v17 }
 0x16f   :  { %v1378_v23 = vpack.c.bf16 %v898_v20, %v898_v20  ;;  %v637_v24 = vpop.f32.mrf.mxu0  ;;  %v1408_v25 = vpack.c.bf16 %v928_v22, %v928_v22  ;;  %v756_v26 = vpop.f32.mrf.mxu1 }
 0x170   :  { %vm785_vm10 = vcmp.ge.f32.partialorder %v636_v21, 0.0  ;;  %v842_v27 = vmul.f32 0.01, %v636_v21 }
 0x171   :  { %1185 = vst.msk [vmem:[%s2109_s3 + $0x68] sm:$0xf] %vm1158_vm2, %v1378_v23  ;;  %1215 = vst.msk [vmem:[%s2109_s3 + $0xe0] sm:$0xf] %vm1158_vm2, %v1408_v25  ;;  %v640_v28 = vpop.f32.mrf.mxu0 }
 0x172   :  { %v899_v29 = vsel %vm785_vm10, %v636_v21, %v842_v27  ;;  %v641_v30 = vadd.f32 %v1819_v12, %v640_v28 }
 0x173   :  { %v1379_v31 = vpack.c.bf16 %v899_v29, %v899_v29  ;;  %v642_v32 = vpop.f32.mrf.mxu0 }
 0x174   :  { %vm786_vm11 = vcmp.ge.f32.partialorder %v641_v30, 0.0  ;;  %v843_v33 = vmul.f32 0.01, %v641_v30 }
 0x175   :  { %1186 = vst.msk [vmem:[%s2109_s3 + $0x6c] sm:$0xf] %vm1158_vm2, %v1379_v31  ;;  %v643_v34 = vpop.f32.mrf.mxu0 }
 0x176   :  { %v900_v35 = vsel %vm786_vm11, %v641_v30, %v843_v33  ;;  %v644_v36 = vadd.f32 %v1819_v12, %v643_v34 }
 0x177   :  { %v1380_v37 = vpack.c.bf16 %v900_v35, %v900_v35  ;;  %v645_v38 = vpop.f32.mrf.mxu0 }
 0x178   :  { %vm787_vm12 = vcmp.ge.f32.partialorder %v644_v36, 0.0  ;;  %v844_v39 = vmul.f32 0.01, %v644_v36 }
 0x179   :  { %1187 = vst.msk [vmem:[%s2109_s3 + $0x70] sm:$0xf] %vm1158_vm2, %v1380_v37 }
 0x17a   :  { %v901_v40 = vsel %vm787_vm12, %v644_v36, %v844_v39 }
 0x17b   :  { %v1381_v41 = vpack.c.bf16 %v901_v40, %v901_v40 }
 0x17d   :  { %1188 = vst.msk [vmem:[%s2109_s3 + $0x74] sm:$0xf] %vm1158_vm2, %v1381_v41 }

// kernel: qnetwork_forward.5
= control target key start
LH: loop header
LB: loop body
LE: loop exit
PB: predicated region body
PF: predicated region fallthrough
CT: control target
= control target key end

     0   :  { %vm598_vm1 = vcmask 519168   ;;  %s1055_s1 = inlined_call_operand.vmem [shape: bf16[512,64], index: 1, kind: input, shape index: {}]   ;;  %s1056_s0 = inlined_call_operand.vmem [shape: bf16[72,512], index: 0, kind: input, shape index: {}]   ;;  %s1057_s2 = inlined_call_operand.vmem [shape: f32[1,64], index: 2, kind: input, shape index: {}]   ;;  %s1058_s3 = inlined_call_operand.vmem [shape: bf16[72,64], index: 3, kind: output, shape index: {}]  }
   0x1   :  { %v775_v0 = vld [vmem:[%s1055_s1 + $0x78] sm:$0xff]   ;;  %v779_v4 = vld [vmem:[%s1055_s1 + $0x70] sm:$0xff]   ;;  %v783_v8 = vld [vmem:[%s1055_s1 + $0x68] sm:$0xff]  }
   0x2   :  { %v776_v1 = vld [vmem:[%s1055_s1 + $0xf8] sm:$0xff]   ;;  %683 = vmatprep.subr.bf16.mxu0 %v775_v0  ;;  %v780_v5 = vld [vmem:[%s1055_s1 + $0xf0] sm:$0xff]   ;;  %v784_v9 = vld [vmem:[%s1055_s1 + $0xe8] sm:$0xff]  }
   0x3   :  { %v777_v2 = vld [vmem:[%s1055_s1 + $0x38] sm:$0xff]   ;;  %729 = vmatprep.subr.bf16.mxu1 %v776_v1  ;;  %v781_v6 = vld [vmem:[%s1055_s1 + $0x30] sm:$0xff]   ;;  %v785_v10 = vld [vmem:[%s1055_s1 + $0x28] sm:$0xff]  }
   0x4   :  { %v778_v3 = vld [vmem:[%s1055_s1 + $0xb8] sm:$0xff]   ;;  %684 = vmatpush3.bf16.msra.mxu0 %v777_v2  ;;  %v782_v7 = vld [vmem:[%s1055_s1 + $0xb0] sm:$0xff]   ;;  %v786_v11 = vld [vmem:[%s1055_s1 + $0xa8] sm:$0xff]  }
   0x5   :  { %730 = vmatpush3.bf16.msra.mxu1 %v778_v3  ;;  %685 = vmatprep.subr.bf16.mxu0 %v779_v4  ;;  %v787_v12 = vld [vmem:[%s1055_s1 + $0x60] sm:$0xff]   ;;  %v791_v16 = vld [vmem:[%s1055_s1 + $0x58] sm:$0xff]   ;;  %v795_v20 = vld [vmem:[%s1055_s1 + $0x50] sm:$0xff]  }
   0x6   :  { %731 = vmatprep.subr.bf16.mxu1 %v780_v5  ;;  %v788_v13 = vld [vmem:[%s1055_s1 + $0xe0] sm:$0xff]   ;;  %v792_v17 = vld [vmem:[%s1055_s1 + $0xd8] sm:$0xff]   ;;  %v796_v21 = vld [vmem:[%s1055_s1 + $0xd0] sm:$0xff]  }
   0x7   :  { %v789_v14 = vld [vmem:[%s1055_s1 + $0x20] sm:$0xff]   ;;  %v793_v18 = vld [vmem:[%s1055_s1 + $0x18] sm:$0xff]   ;;  %v797_v22 = vld [vmem:[%s1055_s1 + $0x10] sm:$0xff]  }
   0x8   :  { %686 = vmatpush3.bf16.msra.mxu0 %v781_v6  ;;  %v790_v15 = vld [vmem:[%s1055_s1 + $0xa0] sm:$0xff]   ;;  %v794_v19 = vld [vmem:[%s1055_s1 + $0x98] sm:$0xff]   ;;  %v798_v23 = vld [vmem:[%s1055_s1 + $0x90] sm:$0xff]  }
   0x9   :  { %732 = vmatpush3.bf16.msra.mxu1 %v782_v7  ;;  %687 = vmatprep.subr.bf16.mxu0 %v783_v8  ;;  %v799_v24 = vld [vmem:[%s1055_s1 + $0x48] sm:$0xff]   ;;  %v803_v28 = vld [vmem:[%s1055_s1 + $0x40] sm:$0xff]  }
   0xa   :  { %733 = vmatprep.subr.bf16.mxu1 %v784_v9  ;;  %v800_v25 = vld [vmem:[%s1055_s1 + $0xc8] sm:$0xff]   ;;  %v804_v29 = vld [vmem:[%s1055_s1 + $0xc0] sm:$0xff]  }
   0xb   :  { %v801_v26 = vld [vmem:[%s1055_s1 + $0x8] sm:$0xff]   ;;  %v805_v30 = vld [vmem:[%s1055_s1] sm:$0xff]  }
   0xc   :  { %688 = vmatpush3.bf16.msra.mxu0 %v785_v10  ;;  %v802_v27 = vld [vmem:[%s1055_s1 + $0x88] sm:$0xff]   ;;  %v806_v31 = vld [vmem:[%s1055_s1 + $0x80] sm:$0xff]  }
   0xd   :  { %734 = vmatpush3.bf16.msra.mxu1 %v786_v11  ;;  %689 = vmatprep.subr.bf16.mxu0 %v787_v12  ;;  %v807_v32 = vld [vmem:[%s1056_s0] ss:$16 sps:$4 sm:$0xff]   ;;  %v809_v33 = vld [vmem:[%s1056_s0 + $0x4] ss:$16 sps:$4 sm:$0xff]   ;;  %v810_v34 = vld [vmem:[%s1056_s0 + $0x8] ss:$16 sps:$4 sm:$0xff]  }
   0xe   :  { %735 = vmatprep.subr.bf16.mxu1 %v788_v13  ;;  %v812_v35 = vld [vmem:[%s1056_s0 + $0xc] ss:$16 sps:$4 sm:$0xff]   ;;  %422 = vmatprep.mubr.bf16.mxu0 %v809_v33  ;;  %v813_v36 = vld [vmem:[%s1056_s0 + $0x24] ss:$16 sps:$4 sm:$0xff]   ;;  %v817_v38 = vld [vmem:[%s1056_s0 + $0x20] ss:$16 sps:$4 sm:$0xff]  }
   0xf   :  { %494 = vmatprep.mubr.bf16.mxu1 %v812_v35  ;;  %v815_v37 = vld [vmem:[%s1056_s0 + $0x2c] ss:$16 sps:$4 sm:$0xff]   ;;  %v818_v39 = vld [vmem:[%s1056_s0 + $0x28] ss:$16 sps:$4 sm:$0xff]   ;;  %v819_v40 = vld [vmem:[%s1056_s0 + $0x44] ss:$16 sps:$4 sm:$0xff]  }
  0x10   :  { %690 = vmatpush3.bf16.msra.mxu0 %v789_v14  ;;  %v821_v41 = vld [vmem:[%s1056_s0 + $0x4c] ss:$16 sps:$4 sm:$0xff]   ;;  %v823_v42 = vld [vmem:[%s1056_s0 + $0x40] ss:$16 sps:$4 sm:$0xff]   ;;  %v824_v43 = vld [vmem:[%s1056_s0 + $0x48] ss:$16 sps:$4 sm:$0xff]  }
  0x11   :  { %736 = vmatpush3.bf16.msra.mxu1 %v790_v15  ;;  %691 = vmatprep.subr.bf16.mxu0 %v791_v16  ;;  %v825_v44 = vld [vmem:[%s1056_s0 + $0x64] ss:$16 sps:$4 sm:$0xff]   ;;  %v827_v45 = vld [vmem:[%s1056_s0 + $0x6c] ss:$16 sps:$4 sm:$0xff]   ;;  %v829_v48 = vld [vmem:[%s1056_s0 + $0x60] ss:$16 sps:$4 sm:$0xff]  }
  0x12   :  { %737 = vmatprep.subr.bf16.mxu1 %v792_v17  ;;  %v31_v46 = vld [vmem:[%s1056_s0 + $0x80] sm:$0xff]  ;;  %v32_v47 = vld [vmem:[%s1056_s0 + $0x88] sm:$0xff] }
  0x13   :  { %v830_v49 = vld [vmem:[%s1056_s0 + $0x68] ss:$16 sps:$4 sm:$0xff]   ;;  %v630_v50 = vcombine.high %v31_v46, %v31_v46  ;;  %v632_v51 = vcombine.high %v32_v47, %v32_v47  ;;  %v629_v52 = vcombine.low %v31_v46, %v31_v46  ;;  %v631_v53 = vcombine.low %v32_v47, %v32_v47  ;;  %v1008_v56 = vld [vmem:[%s1057_s2] ss:$0 sm:$0xff] }
  0x14   :  { %692 = vmatpush3.bf16.msra.mxu0 %v793_v18 }
  0x15   :  { %738 = vmatpush3.bf16.msra.mxu1 %v794_v19  ;;  %693 = vmatprep.subr.bf16.mxu0 %v795_v20 }
  0x16   :  { %739 = vmatprep.subr.bf16.mxu1 %v796_v21 }
  0x18   :  { %694 = vmatpush3.bf16.msra.mxu0 %v797_v22 }
  0x19   :  { %740 = vmatpush3.bf16.msra.mxu1 %v798_v23  ;;  %695 = vmatprep.subr.bf16.mxu0 %v799_v24 }
  0x1a   :  { %741 = vmatprep.subr.bf16.mxu1 %v800_v25 }
  0x1c   :  { %696 = vmatpush3.bf16.msra.mxu0 %v801_v26 }
  0x1d   :  { %742 = vmatpush3.bf16.msra.mxu1 %v802_v27  ;;  %697 = vmatprep.subr.bf16.mxu0 %v803_v28 }
  0x1e   :  { %743 = vmatprep.subr.bf16.mxu1 %v804_v29 }
  0x20   :  { %698 = vmatpush3.bf16.msra.mxu0 %v805_v30 }
  0x21   :  { %744 = vmatpush3.bf16.msra.mxu1 %v806_v31 }
  0x23   :  { %423 = vmatmul.mubr.bf16.vlgmr.msra.gmra.mxu0 %v807_v32 }
  0x24   :  { %495 = vmatmul.mubr.bf16.vlgmr.msra.gmra.mxu1 %v810_v34  ;;  %430 = vmatprep.mubr.bf16.mxu0 %v813_v36 }
  0x25   :  { %502 = vmatprep.mubr.bf16.mxu1 %v815_v37 }
  0x2b   :  { %431 = vmatmul.mubr.bf16.gmra.mxu0 %v817_v38 }
  0x2c   :  { %503 = vmatmul.mubr.bf16.gmra.mxu1 %v818_v39  ;;  %438 = vmatprep.mubr.bf16.mxu0 %v819_v40 }
  0x2d   :  { %510 = vmatprep.mubr.bf16.mxu1 %v821_v41 }
  0x33   :  { %439 = vmatmul.mubr.bf16.gmra.mxu0 %v823_v42 }
  0x34   :  { %511 = vmatmul.mubr.bf16.gmra.mxu1 %v824_v43  ;;  %446 = vmatprep.mubr.bf16.mxu0 %v825_v44 }
  0x35   :  { %518 = vmatprep.mubr.bf16.mxu1 %v827_v45 }
  0x3b   :  { %447 = vmatmul.mubr.bf16.gmra.mxu0 %v829_v48 }
  0x3c   :  { %519 = vmatmul.mubr.bf16.gmra.mxu1 %v830_v49  ;;  %454 = vmatprep.mubr.bf16.mxu0 %v630_v50 }
  0x3d   :  { %526 = vmatprep.mubr.bf16.mxu1 %v632_v51 }
  0x43   :  { %455 = vmatmul.mubr.bf16.gmra.mxu0 %v629_v52 }
  0x44   :  { %527 = vmatmul.mubr.bf16.gmra.mxu1 %v631_v53 }
  0xe3   :  { %v699_v54 = vpop.f32.mrf.mxu0 }
  0xe4   :  { %v745_v55 = vpop.f32.mrf.mxu1 }
  0xe5   :  { %v700_v57 = vpop.f32.mrf.mxu0 }
  0xe6   :  { %v701_v58 = vadd.f32 %v700_v57, %v699_v54  ;;  %v746_v59 = vpop.f32.mrf.mxu1 }
  0xe7   :  { %v702_v60 = vpop.f32.mrf.mxu0  ;;  %v747_v62 = vadd.f32 %v746_v59, %v745_v55 }
  0xe8   :  { %v425_v61 = vadd.f32 %v701_v58, %v1008_v56  ;;  %v748_v63 = vpop.f32.mrf.mxu1 }
  0xe9   :  { %v703_v0 = vpop.f32.mrf.mxu0 }
  0xea   :  { %v497_v1 = vadd.f32 %v747_v62, %v425_v61  ;;  %v704_v2 = vadd.f32 %v703_v0, %v702_v60  ;;  %v749_v3 = vpop.f32.mrf.mxu1 }
  0xeb   :  { %v705_v4 = vpop.f32.mrf.mxu0  ;;  %v750_v7 = vadd.f32 %v749_v3, %v748_v63 }
  0xec   :  { %vm534_vm0 = vcmp.ge.f32.partialorder %v497_v1, 0.0  ;;  %v543_v5 = vmul.f32 0.01, %v497_v1  ;;  %v428_v6 = vadd.f32 %v704_v2, %v1008_v56  ;;  %v751_v8 = vpop.f32.mrf.mxu1 }
  0xed   :  { %v706_v9 = vpop.f32.mrf.mxu0 }
  0xee   :  { %v552_v10 = vsel %vm534_vm0, %v497_v1, %v543_v5  ;;  %v500_v11 = vadd.f32 %v750_v7, %v428_v6  ;;  %v707_v12 = vadd.f32 %v706_v9, %v705_v4  ;;  %v752_v13 = vpop.f32.mrf.mxu1 }
  0xef   :  { %v674_v14 = vpack.c.bf16 %v552_v10, %v552_v10  ;;  %v708_v15 = vpop.f32.mrf.mxu0  ;;  %v753_v18 = vadd.f32 %v752_v13, %v751_v8 }
  0xf0   :  { %vm535_vm2 = vcmp.ge.f32.partialorder %v500_v11, 0.0  ;;  %v544_v16 = vmul.f32 0.01, %v500_v11  ;;  %v433_v17 = vadd.f32 %v707_v12, %v1008_v56  ;;  %v754_v19 = vpop.f32.mrf.mxu1 }
  0xf1   :  { %599 = vst.msk [vmem:[%s1058_s3] sm:$0xf] %vm598_vm1, %v674_v14  ;;  %v709_v20 = vpop.f32.mrf.mxu0 }
  0xf2   :  { %v553_v21 = vsel %vm535_vm2, %v500_v11, %v544_v16  ;;  %v505_v22 = vadd.f32 %v753_v18, %v433_v17  ;;  %v710_v23 = vadd.f32 %v709_v20, %v708_v15  ;;  %v755_v24 = vpop.f32.mrf.mxu1 }
  0xf3   :  { %v675_v25 = vpack.c.bf16 %v553_v21, %v553_v21  ;;  %v711_v26 = vpop.f32.mrf.mxu0  ;;  %v756_v29 = vadd.f32 %v755_v24, %v754_v19 }
  0xf4   :  { %vm536_vm3 = vcmp.ge.f32.partialorder %v505_v22, 0.0  ;;  %v545_v27 = vmul.f32 0.01, %v505_v22  ;;  %v436_v28 = vadd.f32 %v710_v23, %v1008_v56  ;;  %v757_v30 = vpop.f32.mrf.mxu1 }
  0xf5   :  { %600 = vst.msk [vmem:[%s1058_s3 + $0x4] sm:$0xf] %vm598_vm1, %v675_v25  ;;  %v712_v31 = vpop.f32.mrf.mxu0 }
  0xf6   :  { %v554_v32 = vsel %vm536_vm3, %v505_v22, %v545_v27  ;;  %v508_v33 = vadd.f32 %v756_v29, %v436_v28  ;;  %v713_v34 = vadd.f32 %v712_v31, %v711_v26  ;;  %v758_v35 = vpop.f32.mrf.mxu1 }
  0xf7   :  { %v676_v36 = vpack.c.bf16 %v554_v32, %v554_v32  ;;  %v714_v37 = vpop.f32.mrf.mxu0  ;;  %v759_v40 = vadd.f32 %v758_v35, %v757_v30 }
  0xf8   :  { %vm537_vm4 = vcmp.ge.f32.partialorder %v508_v33, 0.0  ;;  %v546_v38 = vmul.f32 0.01, %v508_v33  ;;  %v441_v39 = vadd.f32 %v713_v34, %v1008_v56  ;;  %v760_v41 = vpop.f32.mrf.mxu1 }
  0xf9   :  { %601 = vst.msk [vmem:[%s1058_s3 + $0x8] sm:$0xf] %vm598_vm1, %v676_v36  ;;  %v715_v42 = vpop.f32.mrf.mxu0 }
  0xfa   :  { %v555_v43 = vsel %vm537_vm4, %v508_v33, %v546_v38  ;;  %v513_v44 = vadd.f32 %v759_v40, %v441_v39  ;;  %v716_v45 = vadd.f32 %v715_v42, %v714_v37  ;;  %v761_v46 = vpop.f32.mrf.mxu1 }
  0xfb   :  { %v677_v47 = vpack.c.bf16 %v555_v43, %v555_v43  ;;  %v717_v48 = vpop.f32.mrf.mxu0  ;;  %v762_v51 = vadd.f32 %v761_v46, %v760_v41 }
  0xfc   :  { %vm538_vm5 = vcmp.ge.f32.partialorder %v513_v44, 0.0  ;;  %v547_v49 = vmul.f32 0.01, %v513_v44  ;;  %v444_v50 = vadd.f32 %v716_v45, %v1008_v56  ;;  %v763_v52 = vpop.f32.mrf.mxu1 }
  0xfd   :  { %602 = vst.msk [vmem:[%s1058_s3 + $0xc] sm:$0xf] %vm598_vm1, %v677_v47  ;;  %v718_v53 = vpop.f32.mrf.mxu0 }
  0xfe   :  { %v556_v54 = vsel %vm538_vm5, %v513_v44, %v547_v49  ;;  %v516_v55 = vadd.f32 %v762_v51, %v444_v50  ;;  %v719_v57 = vadd.f32 %v718_v53, %v717_v48  ;;  %v764_v58 = vpop.f32.mrf.mxu1 }
  0xff   :  { %v678_v59 = vpack.c.bf16 %v556_v54, %v556_v54  ;;  %v720_v60 = vpop.f32.mrf.mxu0  ;;  %v765_v63 = vadd.f32 %v764_v58, %v763_v52 }
 0x100   :  { %vm539_vm6 = vcmp.ge.f32.partialorder %v516_v55, 0.0  ;;  %v548_v61 = vmul.f32 0.01, %v516_v55  ;;  %v449_v62 = vadd.f32 %v719_v57, %v1008_v56  ;;  %v766_v0 = vpop.f32.mrf.mxu1 }
 0x101   :  { %603 = vst.msk [vmem:[%s1058_s3 + $0x10] sm:$0xf] %vm598_vm1, %v678_v59  ;;  %v721_v1 = vpop.f32.mrf.mxu0 }
 0x102   :  { %v557_v2 = vsel %vm539_vm6, %v516_v55, %v548_v61  ;;  %v521_v3 = vadd.f32 %v765_v63, %v449_v62  ;;  %v722_v4 = vadd.f32 %v721_v1, %v720_v60  ;;  %v767_v5 = vpop.f32.mrf.mxu1 }
 0x103   :  { %v679_v6 = vpack.c.bf16 %v557_v2, %v557_v2  ;;  %v723_v7 = vpop.f32.mrf.mxu0  ;;  %v768_v10 = vadd.f32 %v767_v5, %v766_v0 }
 0x104   :  { %vm540_vm7 = vcmp.ge.f32.partialorder %v521_v3, 0.0  ;;  %v549_v8 = vmul.f32 0.01, %v521_v3  ;;  %v452_v9 = vadd.f32 %v722_v4, %v1008_v56  ;;  %v769_v11 = vpop.f32.mrf.mxu1 }
 0x105   :  { %604 = vst.msk [vmem:[%s1058_s3 + $0x14] sm:$0xf] %vm598_vm1, %v679_v6  ;;  %v724_v12 = vpop.f32.mrf.mxu0 }
 0x106   :  { %v558_v13 = vsel %vm540_vm7, %v521_v3, %v549_v8  ;;  %v524_v14 = vadd.f32 %v768_v10, %v452_v9  ;;  %v725_v15 = vadd.f32 %v724_v12, %v723_v7  ;;  %v770_v16 = vpop.f32.mrf.mxu1 }
 0x107   :  { %v680_v17 = vpack.c.bf16 %v558_v13, %v558_v13  ;;  %v726_v18 = vpop.f32.mrf.mxu0  ;;  %v771_v21 = vadd.f32 %v770_v16, %v769_v11 }
 0x108   :  { %vm541_vm8 = vcmp.ge.f32.partialorder %v524_v14, 0.0  ;;  %v550_v19 = vmul.f32 0.01, %v524_v14  ;;  %v457_v20 = vadd.f32 %v725_v15, %v1008_v56  ;;  %v772_v22 = vpop.f32.mrf.mxu1 }
 0x109   :  { %605 = vst.msk [vmem:[%s1058_s3 + $0x18] sm:$0xf] %vm598_vm1, %v680_v17  ;;  %v727_v23 = vpop.f32.mrf.mxu0 }
 0x10a   :  { %v559_v24 = vsel %vm541_vm8, %v524_v14, %v550_v19  ;;  %v529_v25 = vadd.f32 %v771_v21, %v457_v20  ;;  %v773_v26 = vpop.f32.mrf.mxu1 }
 0x10b   :  { %v681_v27 = vpack.c.bf16 %v559_v24, %v559_v24 }
 0x10c   :  { %vm542_vm9 = vcmp.ge.f32.partialorder %v529_v25, 0.0  ;;  %v551_v28 = vmul.f32 0.01, %v529_v25 }
 0x10d   :  { %606 = vst.msk [vmem:[%s1058_s3 + $0x1c] sm:$0xf] %vm598_vm1, %v681_v27 }
 0x10e   :  { %v560_v56 = vsel %vm542_vm9, %v529_v25, %v551_v28 }
 0x10f   :  { %v682_v29 = vpack.c.bf16 %v560_v56, %v560_v56 }
 0x111   :  { %607 = vst.msk [vmem:[%s1058_s3 + $0x20] sm:$0xf] %vm598_vm1, %v682_v29 }

// kernel: qnetwork_forward.6
= control target key start
LH: loop header
LB: loop body
LE: loop exit
PB: predicated region body
PF: predicated region fallthrough
CT: control target
= control target key end

     0   :  { %vm372_vm0 = vcmask 523264   ;;  %vm554_vm2 = vcmask 519168   ;;  %s921_s1 = inlined_call_operand.vmem [shape: bf16[576,64], index: 1, kind: input, shape index: {}]   ;;  %s922_s0 = inlined_call_operand.vmem [shape: bf16[32,576], index: 0, kind: input, shape index: {}]   ;;  %s923_s2 = inlined_call_operand.vmem [shape: f32[1,64], index: 2, kind: input, shape index: {}]   ;;  %s924_s3 = inlined_call_operand.vmem [shape: bf16[32,64], index: 3, kind: output, shape index: {}]  }
   0x1   :  { %v694_v0 = vld [vmem:[%s921_s1 + $0x78] sm:$0xff]   ;;  %v698_v4 = vld [vmem:[%s921_s1 + $0x70] sm:$0xff]   ;;  %v702_v8 = vld [vmem:[%s921_s1 + $0x68] sm:$0xff]  }
   0x2   :  { %v695_v1 = vld [vmem:[%s921_s1 + $0xf8] sm:$0xff]   ;;  %620 = vmatprep.subr.bf16.mxu0 %v694_v0  ;;  %v699_v5 = vld [vmem:[%s921_s1 + $0xf0] sm:$0xff]   ;;  %v703_v9 = vld [vmem:[%s921_s1 + $0xe8] sm:$0xff]  }
   0x3   :  { %v696_v2 = vld [vmem:[%s921_s1 + $0x38] sm:$0xff]   ;;  %648 = vmatprep.subr.bf16.mxu1 %v695_v1  ;;  %v700_v6 = vld [vmem:[%s921_s1 + $0x30] sm:$0xff]   ;;  %v704_v10 = vld [vmem:[%s921_s1 + $0x28] sm:$0xff]  }
   0x4   :  { %v697_v3 = vld [vmem:[%s921_s1 + $0xb8] sm:$0xff]   ;;  %621 = vmatpush3.bf16.msra.mxu0 %v696_v2  ;;  %v701_v7 = vld [vmem:[%s921_s1 + $0xb0] sm:$0xff]   ;;  %v705_v11 = vld [vmem:[%s921_s1 + $0xa8] sm:$0xff]  }
   0x5   :  { %649 = vmatpush3.bf16.msra.mxu1 %v697_v3  ;;  %622 = vmatprep.subr.bf16.mxu0 %v698_v4  ;;  %v706_v12 = vld [vmem:[%s921_s1 + $0x60] sm:$0xff]   ;;  %v710_v16 = vld [vmem:[%s921_s1 + $0x58] sm:$0xff]   ;;  %v714_v20 = vld [vmem:[%s921_s1 + $0x50] sm:$0xff]  }
   0x6   :  { %650 = vmatprep.subr.bf16.mxu1 %v699_v5  ;;  %v707_v13 = vld [vmem:[%s921_s1 + $0xe0] sm:$0xff]   ;;  %v711_v17 = vld [vmem:[%s921_s1 + $0xd8] sm:$0xff]   ;;  %v715_v21 = vld [vmem:[%s921_s1 + $0xd0] sm:$0xff]  }
   0x7   :  { %v708_v14 = vld [vmem:[%s921_s1 + $0x20] sm:$0xff]   ;;  %v712_v18 = vld [vmem:[%s921_s1 + $0x18] sm:$0xff]   ;;  %v716_v22 = vld [vmem:[%s921_s1 + $0x10] sm:$0xff]  }
   0x8   :  { %623 = vmatpush3.bf16.msra.mxu0 %v700_v6  ;;  %v709_v15 = vld [vmem:[%s921_s1 + $0xa0] sm:$0xff]   ;;  %v713_v19 = vld [vmem:[%s921_s1 + $0x98] sm:$0xff]   ;;  %v717_v23 = vld [vmem:[%s921_s1 + $0x90] sm:$0xff]  }
   0x9   :  { %651 = vmatpush3.bf16.msra.mxu1 %v701_v7  ;;  %624 = vmatprep.subr.bf16.mxu0 %v702_v8  ;;  %v718_v24 = vld [vmem:[%s921_s1 + $0x48] sm:$0xff]   ;;  %v722_v28 = vld [vmem:[%s921_s1 + $0x40] sm:$0xff]   ;;  %v732_v36 = vld [vmem:[%s921_s1 + $0x118] sm:$0xff]  }
   0xa   :  { %652 = vmatprep.subr.bf16.mxu1 %v703_v9  ;;  %v719_v25 = vld [vmem:[%s921_s1 + $0xc8] sm:$0xff]   ;;  %v723_v29 = vld [vmem:[%s921_s1 + $0xc0] sm:$0xff]   ;;  %v733_v37 = vld [vmem:[%s921_s1 + $0x110] sm:$0xff]  }
   0xb   :  { %v720_v26 = vld [vmem:[%s921_s1 + $0x8] sm:$0xff]   ;;  %v724_v30 = vld [vmem:[%s921_s1] sm:$0xff]  }
   0xc   :  { %625 = vmatpush3.bf16.msra.mxu0 %v704_v10  ;;  %v721_v27 = vld [vmem:[%s921_s1 + $0x88] sm:$0xff]   ;;  %v725_v31 = vld [vmem:[%s921_s1 + $0x80] sm:$0xff]  }
   0xd   :  { %653 = vmatpush3.bf16.msra.mxu1 %v705_v11  ;;  %626 = vmatprep.subr.bf16.mxu0 %v706_v12  ;;  %v726_v32 = vld [vmem:[%s922_s0] ss:$20 sps:$4 sm:$0xff]   ;;  %v728_v33 = vld [vmem:[%s922_s0 + $0x4] ss:$20 sps:$4 sm:$0xff]   ;;  %v729_v34 = vld [vmem:[%s922_s0 + $0x8] ss:$20 sps:$4 sm:$0xff]  }
   0xe   :  { %654 = vmatprep.subr.bf16.mxu1 %v707_v13  ;;  %v731_v35 = vld [vmem:[%s922_s0 + $0xc] ss:$20 sps:$4 sm:$0xff]   ;;  %411 = vmatprep.mubr.bf16.mxu0 %v728_v33  ;;  %v736_v39 = vld [vmem:[%s922_s0 + $0x34] ss:$20 sps:$4 sm:$0xff]   ;;  %v739_v42 = vld [vmem:[%s922_s0 + $0x30] ss:$20 sps:$4 sm:$0xff]  }
   0xf   :  { %460 = vmatprep.mubr.bf16.mxu1 %v731_v35  ;;  %v734_v38 = vld [vmem:[%s922_s0 + $0x2c] ss:$20 sps:$4 sm:$0xff]   ;;  %v738_v40 = vld [vmem:[%s922_s0 + $0x28] ss:$20 sps:$4 sm:$0xff]   ;;  %v742_v43 = vld [vmem:[%s922_s0 + $0x10] ss:$20 sps:$4 sm:$0xff]  }
  0x10   :  { %627 = vmatpush3.bf16.msra.mxu0 %v708_v14  ;;  %v740_v41 = vld [vmem:[%s921_s1 + $0x108] sm:$0xff]   ;;  %v741_v44 = vld [vmem:[%s921_s1 + $0x100] sm:$0xff]  }
  0x11   :  { %655 = vmatpush3.bf16.msra.mxu1 %v709_v15  ;;  %628 = vmatprep.subr.bf16.mxu0 %v710_v16  ;;  %v743_v45 = vld [vmem:[%s922_s0 + $0x38] ss:$20 sps:$4 sm:$0xff]   ;;  %v563_v58 = vld [vmem:[%s923_s2] ss:$0 sm:$0xff] }
  0x12   :  { %656 = vmatprep.subr.bf16.mxu1 %v711_v17 }
  0x14   :  { %629 = vmatpush3.bf16.msra.mxu0 %v712_v18 }
  0x15   :  { %657 = vmatpush3.bf16.msra.mxu1 %v713_v19  ;;  %630 = vmatprep.subr.bf16.mxu0 %v714_v20 }
  0x16   :  { %658 = vmatprep.subr.bf16.mxu1 %v715_v21 }
  0x18   :  { %631 = vmatpush3.bf16.msra.mxu0 %v716_v22 }
  0x19   :  { %659 = vmatpush3.bf16.msra.mxu1 %v717_v23  ;;  %632 = vmatprep.subr.bf16.mxu0 %v718_v24 }
  0x1a   :  { %660 = vmatprep.subr.bf16.mxu1 %v719_v25 }
  0x1c   :  { %633 = vmatpush3.bf16.msra.mxu0 %v720_v26 }
  0x1d   :  { %661 = vmatpush3.bf16.msra.mxu1 %v721_v27  ;;  %634 = vmatprep.subr.bf16.mxu0 %v722_v28 }
  0x1e   :  { %662 = vmatprep.subr.bf16.mxu1 %v723_v29 }
  0x20   :  { %635 = vmatpush3.bf16.msra.mxu0 %v724_v30 }
  0x21   :  { %663 = vmatpush3.bf16.msra.mxu1 %v725_v31  ;;  %682 = vmatprep.subr.bf16.mxu0 %v732_v36 }
  0x23   :  { %412 = vmatmul.mubr.bf16.vlgmr.msra.gmra.mxu0 %v726_v32 }
  0x24   :  { %461 = vmatmul.mubr.bf16.vlgmr.msra.gmra.mxu1 %v729_v34  ;;  %683 = vmatpush3.bf16.msra.mxu0 %v732_v36 }
  0x25   :  { %684 = vmatprep.subr.bf16.mxu0 %v733_v37  ;;  %419 = vmatprep.mubr.bf16.mxu0 %v734_v38 }
  0x26   :  { %468 = vmatprep.mubr.bf16.mxu1 %v736_v39 }
  0x28   :  { %685 = vmatpush3.bf16.msra.mxu0 %v733_v37 }
  0x29   :  { %686 = vmatprep.subr.bf16.mxu0 %v740_v41 }
  0x2b   :  { %420 = vmatmul.mubr.bf16.gmra.mxu0 %v738_v40 }
  0x2c   :  { %469 = vmatmul.mubr.bf16.gmra.mxu1 %v739_v42  ;;  %690 = vmatprep.mubr.msk.bf16.mxu0 %vm372_vm0, %v742_v43 }
  0x2d   :  { %687 = vmatpush3.bf16.msra.mxu0 %v740_v41 }
  0x2e   :  { %688 = vmatprep.subr.bf16.mxu0 %v741_v44 }
  0x31   :  { %689 = vmatpush3.bf16.msra.mxu0 %v741_v44 }
  0x34   :  { %691 = vmatmul.mubr.msk.bf16.vlgmr.msra.gmra.mxu0 %vm372_vm0, %v743_v45 }
  0xe3   :  { %v636_v46 = vpop.f32.mrf.mxu0 }
  0xe4   :  { %v664_v47 = vpop.f32.mrf.mxu1 }
  0xe5   :  { %v637_v48 = vpop.f32.mrf.mxu0 }
  0xe6   :  { %v665_v49 = vpop.f32.mrf.mxu1  ;;  %v638_v56 = vadd.f32 %v637_v48, %v636_v46 }
  0xe7   :  { %v639_v50 = vpop.f32.mrf.mxu0  ;;  %v666_v3 = vadd.f32 %v665_v49, %v664_v47 }
  0xe8   :  { %v667_v51 = vpop.f32.mrf.mxu1  ;;  %v414_v2 = vadd.f32 %v638_v56, %v563_v58 }
  0xe9   :  { %v640_v52 = vpop.f32.mrf.mxu0 }
  0xea   :  { %v668_v53 = vpop.f32.mrf.mxu1  ;;  %v641_v63 = vadd.f32 %v640_v52, %v639_v50  ;;  %v463_v13 = vadd.f32 %v666_v3, %v414_v2 }
  0xeb   :  { %v642_v54 = vpop.f32.mrf.mxu0  ;;  %v669_v14 = vadd.f32 %v668_v53, %v667_v51 }
  0xec   :  { %v670_v55 = vpop.f32.mrf.mxu1  ;;  %v417_v8 = vadd.f32 %v641_v63, %v563_v58 }
  0xed   :  { %v643_v57 = vpop.f32.mrf.mxu0 }
  0xee   :  { %v644_v59 = vadd.f32 %v643_v57, %v642_v54  ;;  %v671_v60 = vpop.f32.mrf.mxu1  ;;  %v466_v20 = vadd.f32 %v669_v14, %v417_v8 }
  0xef   :  { %v672_v61 = vadd.f32 %v671_v60, %v670_v55  ;;  %v645_v62 = vpop.f32.mrf.mxu0 }
  0xf0   :  { %v422_v0 = vadd.f32 %v644_v59, %v563_v58  ;;  %v673_v1 = vpop.f32.mrf.mxu1 }
  0xf1   :  { %v646_v4 = vpop.f32.mrf.mxu0 }
  0xf2   :  { %v647_v5 = vadd.f32 %v646_v4, %v645_v62  ;;  %v674_v6 = vpop.f32.mrf.mxu1  ;;  %v471_v7 = vadd.f32 %v672_v61, %v422_v0 }
  0xf3   :  { %v675_v10 = vadd.f32 %v674_v6, %v673_v1 }
  0xf4   :  { %v425_v9 = vadd.f32 %v647_v5, %v563_v58  ;;  %v692_v11 = vpop.f32.mrf.mxu0 }
  0xf5   :  { %v520_v12 = vadd.f32 %v692_v11, %v471_v7 }
  0xf6   :  { %v511_v15 = vpop.f32.mrf.mxu0  ;;  %v474_v16 = vadd.f32 %v675_v10, %v425_v9 }
  0xf7   :  { %vm528_vm1 = vcmp.ge.f32.partialorder %v520_v12, 0.0  ;;  %v532_v17 = vmul.f32 0.01, %v520_v12  ;;  %v512_v18 = vadd.f32 %v511_v15, %v463_v13 }
  0xf8   :  { %v693_v19 = vpop.f32.mrf.mxu0 }
  0xf9   :  { %v536_v21 = vsel %vm528_vm1, %v520_v12, %v532_v17  ;;  %vm526_vm3 = vcmp.ge.f32.partialorder %v512_v18, 0.0  ;;  %v530_v22 = vmul.f32 0.01, %v512_v18  ;;  %v523_v23 = vadd.f32 %v693_v19, %v474_v16 }
  0xfa   :  { %v618_v24 = vpack.c.bf16 %v536_v21, %v536_v21  ;;  %v514_v25 = vpop.f32.mrf.mxu0 }
  0xfb   :  { %v534_v26 = vsel %vm526_vm3, %v512_v18, %v530_v22  ;;  %vm529_vm4 = vcmp.ge.f32.partialorder %v523_v23, 0.0  ;;  %v533_v27 = vmul.f32 0.01, %v523_v23  ;;  %v515_v28 = vadd.f32 %v514_v25, %v466_v20 }
  0xfc   :  { %557 = vst.msk [vmem:[%s924_s3 + $0x8] sm:$0xf] %vm554_vm2, %v618_v24  ;;  %v616_v29 = vpack.c.bf16 %v534_v26, %v534_v26 }
  0xfd   :  { %v537_v30 = vsel %vm529_vm4, %v523_v23, %v533_v27  ;;  %vm527_vm5 = vcmp.ge.f32.partialorder %v515_v28, 0.0  ;;  %v531_v31 = vmul.f32 0.01, %v515_v28 }
  0xfe   :  { %555 = vst.msk [vmem:[%s924_s3] sm:$0xf] %vm554_vm2, %v616_v29  ;;  %v619_v32 = vpack.c.bf16 %v537_v30, %v537_v30 }
  0xff   :  { %v535_v33 = vsel %vm527_vm5, %v515_v28, %v531_v31 }
 0x100   :  { %558 = vst.msk [vmem:[%s924_s3 + $0xc] sm:$0xf] %vm554_vm2, %v619_v32  ;;  %v617_v34 = vpack.c.bf16 %v535_v33, %v535_v33 }
 0x102   :  { %556 = vst.msk [vmem:[%s924_s3 + $0x4] sm:$0xf] %vm554_vm2, %v617_v34 }

// kernel: qnetwork_forward.7
= control target key start
LH: loop header
LB: loop body
LE: loop exit
PB: predicated region body
PF: predicated region fallthrough
CT: control target
= control target key end

     0   :  { %vm3912_vm0 = vcmask 1041408   ;;  %vm5948_vm2 = vmmov 0   ;;  %vm3908_vm3 = vcmask 31744   ;;  %vm3960_vm8 = vcmask 519168   ;;  %s8145_s2 = inlined_call_operand.vmem [shape: bf16[1024,1024], index: 2, kind: input, shape index: {}]   ;;  %s8146_s0 = inlined_call_operand.vmem [shape: bf16[8,1024], index: 0, kind: input, shape index: {}]   ;;  %s8147_s3 = inlined_call_operand.vmem [shape: f32[1,1024], index: 3, kind: input, shape index: {}]   ;;  %s8148_s6 = inlined_call_operand.vmem [shape: bf16[1024,256], index: 6, kind: input, shape index: {}]   ;;  %s8149_s4 = inlined_call_operand.vmem [shape: bf16[4,64], index: 4, kind: input, shape index: {}]   ;;  %s8150_s1 = inlined_call_operand.vmem [shape: bf16[8,4], index: 1, kind: input, shape index: {}]   ;;  %s8151_s7 = inlined_call_operand.vmem [shape: bf16[64,256], index: 7, kind: input, shape index: {}]   ;;  %s8152_s5 = inlined_call_operand.vmem [shape: f32[1,64], index: 5, kind: input, shape index: {}]   ;;  %s8153_s8 = inlined_call_operand.vmem [shape: f32[1,256], index: 8, kind: input, shape index: {}]   ;;  %s8154_s9 = inlined_call_operand.vmem [shape: f32[8,256], index: 9, kind: output, shape index: {}]  }
   0x1   :  { %v97_v0 = vld [vmem:[%s8145_s2 + $0x1c0] sm:$0xff]  ;;  %v6102_v58 = vld [vmem:[%s8146_s0 + $0x8] sm:$0xff]  ;;  %vm4143_vm10 = vcmask 523264  }
   0x2   :  { %v101_v1 = vld [vmem:[%s8145_s2 + $0x1e0] sm:$0xff]  ;;  %v6112_v61 = vcombine.high %v6102_v58, %v6102_v58 }
   0x3   :  { %v225_v2 = vld [vmem:[%s8145_s2 + $0x5c0] sm:$0xff]  ;;  %v5105_v3 = vcombine.high %v97_v0, %v101_v1  ;;  %v5104_v4 = vcombine.low %v97_v0, %v101_v1 }
   0x4   :  { %v229_v5 = vld [vmem:[%s8145_s2 + $0x5e0] sm:$0xff]  ;;  %3256 = vmatprep.mubr.bf16.mxu1 %v6112_v61 }
   0x5   :  { %v89_v6 = vld [vmem:[%s8145_s2 + $0x180] sm:$0xff]  ;;  %v5233_v8 = vcombine.high %v225_v2, %v229_v5  ;;  %v5232_v9 = vcombine.low %v225_v2, %v229_v5  ;;  %3183 = vmatprep.subr.bf16.mxu0 %v5105_v3 }
   0x6   :  { %v93_v7 = vld [vmem:[%s8145_s2 + $0x1a0] sm:$0xff]  ;;  %3184 = vmatpush1.bf16.msra.mxu0 %v5104_v4 }
   0x7   :  { %v5097_v10 = vcombine.high %v89_v6, %v93_v7  ;;  %v217_v11 = vld [vmem:[%s8145_s2 + $0x580] sm:$0xff]  ;;  %3224 = vmatprep.subr.bf16.mxu1 %v5233_v8  ;;  %v5096_v18 = vcombine.low %v89_v6, %v93_v7 }
   0x8   :  { %v221_v12 = vld [vmem:[%s8145_s2 + $0x5a0] sm:$0xff]  ;;  %3225 = vmatpush1.bf16.msra.mxu1 %v5232_v9 }
   0x9   :  { %v81_v13 = vld [vmem:[%s8145_s2 + $0x140] sm:$0xff]  ;;  %v5225_v14 = vcombine.high %v217_v11, %v221_v12  ;;  %3185 = vmatprep.subr.bf16.mxu0 %v5097_v10  ;;  %v5224_v19 = vcombine.low %v217_v11, %v221_v12 }
   0xa   :  { %v85_v15 = vld [vmem:[%s8145_s2 + $0x160] sm:$0xff]  ;;  %3186 = vmatpush1.bf16.msra.mxu0 %v5096_v18 }
   0xb   :  { %v209_v16 = vld [vmem:[%s8145_s2 + $0x540] sm:$0xff]  ;;  %v5089_v20 = vcombine.high %v81_v13, %v85_v15  ;;  %3226 = vmatprep.subr.bf16.mxu1 %v5225_v14  ;;  %v5088_v26 = vcombine.low %v81_v13, %v85_v15 }
   0xc   :  { %v213_v17 = vld [vmem:[%s8145_s2 + $0x560] sm:$0xff]  ;;  %3227 = vmatpush1.bf16.msra.mxu1 %v5224_v19 }
   0xd   :  { %v5217_v21 = vcombine.high %v209_v16, %v213_v17  ;;  %v73_v22 = vld [vmem:[%s8145_s2 + $0x100] sm:$0xff]  ;;  %3187 = vmatprep.subr.bf16.mxu0 %v5089_v20  ;;  %v5216_v27 = vcombine.low %v209_v16, %v213_v17 }
   0xe   :  { %v77_v23 = vld [vmem:[%s8145_s2 + $0x120] sm:$0xff]  ;;  %3188 = vmatpush1.bf16.msra.mxu0 %v5088_v26 }
   0xf   :  { %v201_v24 = vld [vmem:[%s8145_s2 + $0x500] sm:$0xff]  ;;  %v5081_v28 = vcombine.high %v73_v22, %v77_v23  ;;  %3228 = vmatprep.subr.bf16.mxu1 %v5217_v21  ;;  %v5080_v34 = vcombine.low %v73_v22, %v77_v23 }
  0x10   :  { %v205_v25 = vld [vmem:[%s8145_s2 + $0x520] sm:$0xff]  ;;  %3229 = vmatpush1.bf16.msra.mxu1 %v5216_v27 }
  0x11   :  { %v5209_v29 = vcombine.high %v201_v24, %v205_v25  ;;  %v65_v30 = vld [vmem:[%s8145_s2 + $0xc0] sm:$0xff]  ;;  %3189 = vmatprep.subr.bf16.mxu0 %v5081_v28  ;;  %v5208_v35 = vcombine.low %v201_v24, %v205_v25 }
  0x12   :  { %v69_v31 = vld [vmem:[%s8145_s2 + $0xe0] sm:$0xff]  ;;  %3190 = vmatpush1.bf16.msra.mxu0 %v5080_v34 }
  0x13   :  { %v193_v32 = vld [vmem:[%s8145_s2 + $0x4c0] sm:$0xff]  ;;  %v5073_v36 = vcombine.high %v65_v30, %v69_v31  ;;  %3230 = vmatprep.subr.bf16.mxu1 %v5209_v29  ;;  %v5072_v42 = vcombine.low %v65_v30, %v69_v31 }
  0x14   :  { %v197_v33 = vld [vmem:[%s8145_s2 + $0x4e0] sm:$0xff]  ;;  %3231 = vmatpush1.bf16.msra.mxu1 %v5208_v35 }
  0x15   :  { %v5201_v37 = vcombine.high %v193_v32, %v197_v33  ;;  %v57_v38 = vld [vmem:[%s8145_s2 + $0x80] sm:$0xff]  ;;  %3191 = vmatprep.subr.bf16.mxu0 %v5073_v36  ;;  %v5200_v43 = vcombine.low %v193_v32, %v197_v33 }
  0x16   :  { %v61_v39 = vld [vmem:[%s8145_s2 + $0xa0] sm:$0xff]  ;;  %3192 = vmatpush1.bf16.msra.mxu0 %v5072_v42 }
  0x17   :  { %v185_v40 = vld [vmem:[%s8145_s2 + $0x480] sm:$0xff]  ;;  %v5065_v44 = vcombine.high %v57_v38, %v61_v39  ;;  %3232 = vmatprep.subr.bf16.mxu1 %v5201_v37  ;;  %v5064_v50 = vcombine.low %v57_v38, %v61_v39 }
  0x18   :  { %v189_v41 = vld [vmem:[%s8145_s2 + $0x4a0] sm:$0xff]  ;;  %3233 = vmatpush1.bf16.msra.mxu1 %v5200_v43 }
  0x19   :  { %v5193_v45 = vcombine.high %v185_v40, %v189_v41  ;;  %v49_v46 = vld [vmem:[%s8145_s2 + $0x40] sm:$0xff]  ;;  %3193 = vmatprep.subr.bf16.mxu0 %v5065_v44  ;;  %v5192_v51 = vcombine.low %v185_v40, %v189_v41 }
  0x1a   :  { %v53_v47 = vld [vmem:[%s8145_s2 + $0x60] sm:$0xff]  ;;  %3194 = vmatpush1.bf16.msra.mxu0 %v5064_v50 }
  0x1b   :  { %v177_v48 = vld [vmem:[%s8145_s2 + $0x440] sm:$0xff]  ;;  %v5057_v52 = vcombine.high %v49_v46, %v53_v47  ;;  %3234 = vmatprep.subr.bf16.mxu1 %v5193_v45  ;;  %v5056_v62 = vcombine.low %v49_v46, %v53_v47 }
  0x1c   :  { %v181_v49 = vld [vmem:[%s8145_s2 + $0x460] sm:$0xff]  ;;  %3235 = vmatpush1.bf16.msra.mxu1 %v5192_v51 }
  0x1d   :  { %v6087_v53 = vld [vmem:[%s8146_s0] sm:$0xff]  ;;  %v5185_v54 = vcombine.high %v177_v48, %v181_v49  ;;  %3195 = vmatprep.subr.bf16.mxu0 %v5057_v52  ;;  %v5184_v63 = vcombine.low %v177_v48, %v181_v49 }
  0x1e   :  { %v41_v55 = vld [vmem:[%s8145_s2] sm:$0xff]  ;;  %v6097_v57 = vcombine.high %v6087_v53, %v6087_v53  ;;  %3196 = vmatpush1.bf16.msra.mxu0 %v5056_v62 }
  0x1f   :  { %v45_v56 = vld [vmem:[%s8145_s2 + $0x20] sm:$0xff]  ;;  %3236 = vmatprep.subr.bf16.mxu1 %v5185_v54 }
  0x20   :  { %v169_v59 = vld [vmem:[%s8145_s2 + $0x400] sm:$0xff]  ;;  %3215 = vmatprep.mubr.bf16.mxu0 %v6097_v57  ;;  %v5049_v0 = vcombine.high %v41_v55, %v45_v56  ;;  %v5048_v6 = vcombine.low %v41_v55, %v45_v56  ;;  %3237 = vmatpush1.bf16.msra.mxu1 %v5184_v63 }
  0x21   :  { %v173_v60 = vld [vmem:[%s8145_s2 + $0x420] sm:$0xff] }
  0x22   :  { %v5177_v1 = vcombine.high %v169_v59, %v173_v60  ;;  %v161_v2 = vld [vmem:[%s8145_s2 + $0x3c0] sm:$0xff]  ;;  %3197 = vmatprep.subr.bf16.mxu0 %v5049_v0  ;;  %v5176_v7 = vcombine.low %v169_v59, %v173_v60 }
  0x23   :  { %v165_v3 = vld [vmem:[%s8145_s2 + $0x3e0] sm:$0xff]  ;;  %3198 = vmatpush1.bf16.msra.mxu0 %v5048_v6 }
  0x24   :  { %v289_v4 = vld [vmem:[%s8145_s2 + $0x7c0] sm:$0xff]  ;;  %v5169_v8 = vcombine.high %v161_v2, %v165_v3  ;;  %3238 = vmatprep.subr.bf16.mxu1 %v5177_v1  ;;  %v5168_v14 = vcombine.low %v161_v2, %v165_v3 }
  0x25   :  { %v293_v5 = vld [vmem:[%s8145_s2 + $0x7e0] sm:$0xff]  ;;  %3239 = vmatpush1.bf16.msra.mxu1 %v5176_v7 }
  0x26   :  { %v5297_v9 = vcombine.high %v289_v4, %v293_v5  ;;  %v153_v10 = vld [vmem:[%s8145_s2 + $0x380] sm:$0xff]  ;;  %3199 = vmatprep.subr.bf16.mxu0 %v5169_v8  ;;  %v5296_v15 = vcombine.low %v289_v4, %v293_v5 }
  0x27   :  { %v157_v11 = vld [vmem:[%s8145_s2 + $0x3a0] sm:$0xff]  ;;  %3200 = vmatpush2.bf16.msra.mxu0 %v5168_v14 }
  0x28   :  { %v281_v12 = vld [vmem:[%s8145_s2 + $0x780] sm:$0xff]  ;;  %v5161_v16 = vcombine.high %v153_v10, %v157_v11  ;;  %3240 = vmatprep.subr.bf16.mxu1 %v5297_v9  ;;  %v5160_v22 = vcombine.low %v153_v10, %v157_v11 }
  0x29   :  { %v285_v13 = vld [vmem:[%s8145_s2 + $0x7a0] sm:$0xff]  ;;  %3241 = vmatpush2.bf16.msra.mxu1 %v5296_v15 }
  0x2a   :  { %v5289_v17 = vcombine.high %v281_v12, %v285_v13  ;;  %v145_v18 = vld [vmem:[%s8145_s2 + $0x340] sm:$0xff]  ;;  %3201 = vmatprep.subr.bf16.mxu0 %v5161_v16  ;;  %v5288_v23 = vcombine.low %v281_v12, %v285_v13  ;;  %v6232_v16 = vcombine.low %v6087_v53, %v6087_v53  ;;  %v6252_v53 = vld [vmem:[%s8146_s0 + $0x18] sm:$0xff] }
  0x2b   :  { %v149_v19 = vld [vmem:[%s8145_s2 + $0x360] sm:$0xff]  ;;  %3202 = vmatpush2.bf16.msra.mxu0 %v5160_v22 }
  0x2c   :  { %v273_v20 = vld [vmem:[%s8145_s2 + $0x740] sm:$0xff]  ;;  %v5153_v24 = vcombine.high %v145_v18, %v149_v19  ;;  %3242 = vmatprep.subr.bf16.mxu1 %v5289_v17  ;;  %v5152_v30 = vcombine.low %v145_v18, %v149_v19  ;;  %v6243_v19 = vld [vmem:[%s8146_s0 + $0x10] sm:$0xff] }
  0x2d   :  { %v277_v21 = vld [vmem:[%s8145_s2 + $0x760] sm:$0xff]  ;;  %3243 = vmatpush2.bf16.msra.mxu1 %v5288_v23 }
  0x2e   :  { %v5281_v25 = vcombine.high %v273_v20, %v277_v21  ;;  %v137_v26 = vld [vmem:[%s8145_s2 + $0x300] sm:$0xff]  ;;  %3203 = vmatprep.subr.bf16.mxu0 %v5153_v24  ;;  %v5280_v31 = vcombine.low %v273_v20, %v277_v21  ;;  %v6247_v21 = vcombine.low %v6102_v58, %v6102_v58 }
  0x2f   :  { %v141_v27 = vld [vmem:[%s8145_s2 + $0x320] sm:$0xff]  ;;  %3204 = vmatpush2.bf16.msra.mxu0 %v5152_v30 }
  0x30   :  { %v265_v28 = vld [vmem:[%s8145_s2 + $0x700] sm:$0xff]  ;;  %v5145_v32 = vcombine.high %v137_v26, %v141_v27  ;;  %3244 = vmatprep.subr.bf16.mxu1 %v5281_v25  ;;  %v5144_v38 = vcombine.low %v137_v26, %v141_v27  ;;  %v6262_v26 = vcombine.high %v6243_v19, %v6243_v19 }
  0x31   :  { %v269_v29 = vld [vmem:[%s8145_s2 + $0x720] sm:$0xff]  ;;  %3245 = vmatpush2.bf16.msra.mxu1 %v5280_v31 }
  0x32   :  { %v5273_v33 = vcombine.high %v265_v28, %v269_v29  ;;  %v129_v34 = vld [vmem:[%s8145_s2 + $0x2c0] sm:$0xff]  ;;  %3205 = vmatprep.subr.bf16.mxu0 %v5145_v32  ;;  %v5272_v39 = vcombine.low %v265_v28, %v269_v29  ;;  %v6273_v29 = vcombine.high %v6252_v53, %v6252_v53 }
  0x33   :  { %v133_v35 = vld [vmem:[%s8145_s2 + $0x2e0] sm:$0xff]  ;;  %3206 = vmatpush2.bf16.msra.mxu0 %v5144_v38 }
  0x34   :  { %v257_v36 = vld [vmem:[%s8145_s2 + $0x6c0] sm:$0xff]  ;;  %v5137_v40 = vcombine.high %v129_v34, %v133_v35  ;;  %3246 = vmatprep.subr.bf16.mxu1 %v5273_v33  ;;  %v5136_v46 = vcombine.low %v129_v34, %v133_v35 }
  0x35   :  { %v261_v37 = vld [vmem:[%s8145_s2 + $0x6e0] sm:$0xff]  ;;  %3247 = vmatpush2.bf16.msra.mxu1 %v5272_v39 }
  0x36   :  { %v5265_v41 = vcombine.high %v257_v36, %v261_v37  ;;  %v121_v42 = vld [vmem:[%s8145_s2 + $0x280] sm:$0xff]  ;;  %3207 = vmatprep.subr.bf16.mxu0 %v5137_v40  ;;  %v5264_v47 = vcombine.low %v257_v36, %v261_v37 }
  0x37   :  { %v125_v43 = vld [vmem:[%s8145_s2 + $0x2a0] sm:$0xff]  ;;  %3208 = vmatpush2.bf16.msra.mxu0 %v5136_v46 }
  0x38   :  { %v249_v44 = vld [vmem:[%s8145_s2 + $0x680] sm:$0xff]  ;;  %v5129_v48 = vcombine.high %v121_v42, %v125_v43  ;;  %3248 = vmatprep.subr.bf16.mxu1 %v5265_v41  ;;  %v5128_v55 = vcombine.low %v121_v42, %v125_v43 }
  0x39   :  { %v253_v45 = vld [vmem:[%s8145_s2 + $0x6a0] sm:$0xff]  ;;  %3249 = vmatpush2.bf16.msra.mxu1 %v5264_v47 }
  0x3a   :  { %v5257_v49 = vcombine.high %v249_v44, %v253_v45  ;;  %v113_v50 = vld [vmem:[%s8145_s2 + $0x240] sm:$0xff]  ;;  %3209 = vmatprep.subr.bf16.mxu0 %v5129_v48  ;;  %v5256_v56 = vcombine.low %v249_v44, %v253_v45 }
  0x3b   :  { %v117_v51 = vld [vmem:[%s8145_s2 + $0x260] sm:$0xff]  ;;  %3210 = vmatpush2.bf16.msra.mxu0 %v5128_v55 }
  0x3c   :  { %v241_v52 = vld [vmem:[%s8145_s2 + $0x640] sm:$0xff]  ;;  %v5121_v59 = vcombine.high %v113_v50, %v117_v51  ;;  %3250 = vmatprep.subr.bf16.mxu1 %v5257_v49  ;;  %v5120_v2 = vcombine.low %v113_v50, %v117_v51 }
  0x3d   :  { %v245_v54 = vld [vmem:[%s8145_s2 + $0x660] sm:$0xff]  ;;  %3251 = vmatpush2.bf16.msra.mxu1 %v5256_v56 }
  0x3e   :  { %v5249_v60 = vcombine.high %v241_v52, %v245_v54  ;;  %v105_v62 = vld [vmem:[%s8145_s2 + $0x200] sm:$0xff]  ;;  %3211 = vmatprep.subr.bf16.mxu0 %v5121_v59  ;;  %v5248_v3 = vcombine.low %v241_v52, %v245_v54 }
  0x3f   :  { %v109_v63 = vld [vmem:[%s8145_s2 + $0x220] sm:$0xff]  ;;  %3212 = vmatpush2.bf16.msra.mxu0 %v5120_v2 }
  0x40   :  { %v233_v0 = vld [vmem:[%s8145_s2 + $0x600] sm:$0xff]  ;;  %v5113_v4 = vcombine.high %v105_v62, %v109_v63  ;;  %3252 = vmatprep.subr.bf16.mxu1 %v5249_v60  ;;  %v5112_v10 = vcombine.low %v105_v62, %v109_v63 }
  0x41   :  { %v237_v1 = vld [vmem:[%s8145_s2 + $0x620] sm:$0xff]  ;;  %3253 = vmatpush2.bf16.msra.mxu1 %v5248_v3 }
  0x42   :  { %v5241_v5 = vcombine.high %v233_v0, %v237_v1  ;;  %v353_v6 = vld [vmem:[%s8145_s2 + $0x9c0] sm:$0xff]  ;;  %3213 = vmatprep.subr.bf16.mxu0 %v5113_v4  ;;  %v5240_v11 = vcombine.low %v233_v0, %v237_v1 }
  0x43   :  { %v357_v7 = vld [vmem:[%s8145_s2 + $0x9e0] sm:$0xff]  ;;  %3214 = vmatpush2.bf16.msra.mxu0 %v5112_v10 }
  0x44   :  { %v481_v8 = vld [vmem:[%s8145_s2 + $0xdc0] sm:$0xff]  ;;  %v5361_v12 = vcombine.high %v353_v6, %v357_v7  ;;  %3254 = vmatprep.subr.bf16.mxu1 %v5241_v5  ;;  %v5360_v20 = vcombine.low %v353_v6, %v357_v7 }
  0x45   :  { %v485_v9 = vld [vmem:[%s8145_s2 + $0xde0] sm:$0xff]  ;;  %3255 = vmatpush2.bf16.msra.mxu1 %v5240_v11 }
  0x46   :  { %v5489_v13 = vcombine.high %v481_v8, %v485_v9  ;;  %v345_v14 = vld [vmem:[%s8145_s2 + $0x980] sm:$0xff]  ;;  %3265 = vmatprep.subr.bf16.mxu0 %v5361_v12  ;;  %v5488_v22 = vcombine.low %v481_v8, %v485_v9  ;;  %3216 = vmatmul.mubr.bf16.vlgmr.msra.gmra.mxu0 %v6232_v16 }
  0x47   :  { %v349_v15 = vld [vmem:[%s8145_s2 + $0x9a0] sm:$0xff]  ;;  %3266 = vmatpush1.bf16.msra.mxu0 %v5360_v20  ;;  %3297 = vmatprep.mubr.bf16.mxu0 %v6262_v26 }
  0x48   :  { %v473_v17 = vld [vmem:[%s8145_s2 + $0xd80] sm:$0xff]  ;;  %v5353_v23 = vcombine.high %v345_v14, %v349_v15  ;;  %3306 = vmatprep.subr.bf16.mxu1 %v5489_v13  ;;  %3257 = vmatmul.mubr.bf16.vlgmr.msra.gmra.mxu1 %v6247_v21  ;;  %v5352_v30 = vcombine.low %v345_v14, %v349_v15 }
  0x49   :  { %v477_v18 = vld [vmem:[%s8145_s2 + $0xda0] sm:$0xff]  ;;  %3307 = vmatpush1.bf16.msra.mxu1 %v5488_v22  ;;  %3338 = vmatprep.mubr.bf16.mxu1 %v6273_v29 }
  0x4a   :  { %v5481_v24 = vcombine.high %v473_v17, %v477_v18  ;;  %v337_v25 = vld [vmem:[%s8145_s2 + $0x940] sm:$0xff]  ;;  %3267 = vmatprep.subr.bf16.mxu0 %v5353_v23  ;;  %v5480_v31 = vcombine.low %v473_v17, %v477_v18 }
  0x4b   :  { %v341_v58 = vld [vmem:[%s8145_s2 + $0x960] sm:$0xff]  ;;  %3268 = vmatpush1.bf16.msra.mxu0 %v5352_v30 }
  0x4c   :  { %v465_v27 = vld [vmem:[%s8145_s2 + $0xd40] sm:$0xff]  ;;  %v5345_v32 = vcombine.high %v337_v25, %v341_v58  ;;  %3308 = vmatprep.subr.bf16.mxu1 %v5481_v24  ;;  %v5344_v38 = vcombine.low %v337_v25, %v341_v58 }
  0x4d   :  { %v469_v28 = vld [vmem:[%s8145_s2 + $0xd60] sm:$0xff]  ;;  %3309 = vmatpush1.bf16.msra.mxu1 %v5480_v31 }
  0x4e   :  { %v5473_v33 = vcombine.high %v465_v27, %v469_v28  ;;  %v329_v34 = vld [vmem:[%s8145_s2 + $0x900] sm:$0xff]  ;;  %3269 = vmatprep.subr.bf16.mxu0 %v5345_v32  ;;  %v5472_v39 = vcombine.low %v465_v27, %v469_v28 }
  0x4f   :  { %v333_v35 = vld [vmem:[%s8145_s2 + $0x920] sm:$0xff]  ;;  %3270 = vmatpush1.bf16.msra.mxu0 %v5344_v38 }
  0x50   :  { %v457_v36 = vld [vmem:[%s8145_s2 + $0xd00] sm:$0xff]  ;;  %v5337_v40 = vcombine.high %v329_v34, %v333_v35  ;;  %3310 = vmatprep.subr.bf16.mxu1 %v5473_v33  ;;  %v5336_v46 = vcombine.low %v329_v34, %v333_v35 }
  0x51   :  { %v461_v37 = vld [vmem:[%s8145_s2 + $0xd20] sm:$0xff]  ;;  %3311 = vmatpush1.bf16.msra.mxu1 %v5472_v39 }
  0x52   :  { %v5465_v41 = vcombine.high %v457_v36, %v461_v37  ;;  %v321_v42 = vld [vmem:[%s8145_s2 + $0x8c0] sm:$0xff]  ;;  %3271 = vmatprep.subr.bf16.mxu0 %v5337_v40  ;;  %v5464_v47 = vcombine.low %v457_v36, %v461_v37 }
  0x53   :  { %v325_v43 = vld [vmem:[%s8145_s2 + $0x8e0] sm:$0xff]  ;;  %3272 = vmatpush1.bf16.msra.mxu0 %v5336_v46 }
  0x54   :  { %v449_v44 = vld [vmem:[%s8145_s2 + $0xcc0] sm:$0xff]  ;;  %v5329_v48 = vcombine.high %v321_v42, %v325_v43  ;;  %3312 = vmatprep.subr.bf16.mxu1 %v5465_v41  ;;  %v5328_v55 = vcombine.low %v321_v42, %v325_v43 }
  0x55   :  { %v453_v45 = vld [vmem:[%s8145_s2 + $0xce0] sm:$0xff]  ;;  %3313 = vmatpush1.bf16.msra.mxu1 %v5464_v47 }
  0x56   :  { %v5457_v49 = vcombine.high %v449_v44, %v453_v45  ;;  %v313_v50 = vld [vmem:[%s8145_s2 + $0x880] sm:$0xff]  ;;  %3273 = vmatprep.subr.bf16.mxu0 %v5329_v48  ;;  %v5456_v56 = vcombine.low %v449_v44, %v453_v45 }
  0x57   :  { %v317_v51 = vld [vmem:[%s8145_s2 + $0x8a0] sm:$0xff]  ;;  %3274 = vmatpush1.bf16.msra.mxu0 %v5328_v55 }
  0x58   :  { %v441_v52 = vld [vmem:[%s8145_s2 + $0xc80] sm:$0xff]  ;;  %v5321_v59 = vcombine.high %v313_v50, %v317_v51  ;;  %3314 = vmatprep.subr.bf16.mxu1 %v5457_v49  ;;  %v5320_v2 = vcombine.low %v313_v50, %v317_v51 }
  0x59   :  { %v445_v54 = vld [vmem:[%s8145_s2 + $0xca0] sm:$0xff]  ;;  %3315 = vmatpush1.bf16.msra.mxu1 %v5456_v56 }
  0x5a   :  { %v5449_v60 = vcombine.high %v441_v52, %v445_v54  ;;  %v305_v62 = vld [vmem:[%s8145_s2 + $0x840] sm:$0xff]  ;;  %3275 = vmatprep.subr.bf16.mxu0 %v5321_v59  ;;  %v5448_v3 = vcombine.low %v441_v52, %v445_v54 }
  0x5b   :  { %v309_v63 = vld [vmem:[%s8145_s2 + $0x860] sm:$0xff]  ;;  %3276 = vmatpush1.bf16.msra.mxu0 %v5320_v2 }
  0x5c   :  { %v433_v0 = vld [vmem:[%s8145_s2 + $0xc40] sm:$0xff]  ;;  %v5313_v4 = vcombine.high %v305_v62, %v309_v63  ;;  %3316 = vmatprep.subr.bf16.mxu1 %v5449_v60  ;;  %v5312_v10 = vcombine.low %v305_v62, %v309_v63 }
  0x5d   :  { %v437_v1 = vld [vmem:[%s8145_s2 + $0xc60] sm:$0xff]  ;;  %3317 = vmatpush1.bf16.msra.mxu1 %v5448_v3 }
  0x5e   :  { %v5441_v5 = vcombine.high %v433_v0, %v437_v1  ;;  %v297_v6 = vld [vmem:[%s8145_s2 + $0x800] sm:$0xff]  ;;  %3277 = vmatprep.subr.bf16.mxu0 %v5313_v4  ;;  %v5440_v11 = vcombine.low %v433_v0, %v437_v1 }
  0x5f   :  { %v301_v7 = vld [vmem:[%s8145_s2 + $0x820] sm:$0xff]  ;;  %3278 = vmatpush1.bf16.msra.mxu0 %v5312_v10 }
  0x60   :  { %v425_v8 = vld [vmem:[%s8145_s2 + $0xc00] sm:$0xff]  ;;  %v5305_v12 = vcombine.high %v297_v6, %v301_v7  ;;  %3318 = vmatprep.subr.bf16.mxu1 %v5441_v5  ;;  %v5304_v20 = vcombine.low %v297_v6, %v301_v7 }
  0x61   :  { %v429_v9 = vld [vmem:[%s8145_s2 + $0xc20] sm:$0xff]  ;;  %3319 = vmatpush1.bf16.msra.mxu1 %v5440_v11 }
  0x62   :  { %v5433_v13 = vcombine.high %v425_v8, %v429_v9  ;;  %v417_v14 = vld [vmem:[%s8145_s2 + $0xbc0] sm:$0xff]  ;;  %3279 = vmatprep.subr.bf16.mxu0 %v5305_v12  ;;  %v5432_v22 = vcombine.low %v425_v8, %v429_v9 }
  0x63   :  { %v421_v15 = vld [vmem:[%s8145_s2 + $0xbe0] sm:$0xff]  ;;  %3280 = vmatpush1.bf16.msra.mxu0 %v5304_v20 }
  0x64   :  { %v545_v17 = vld [vmem:[%s8145_s2 + $0xfc0] sm:$0xff]  ;;  %v5425_v23 = vcombine.high %v417_v14, %v421_v15  ;;  %3320 = vmatprep.subr.bf16.mxu1 %v5433_v13  ;;  %v5424_v30 = vcombine.low %v417_v14, %v421_v15 }
  0x65   :  { %v549_v18 = vld [vmem:[%s8145_s2 + $0xfe0] sm:$0xff]  ;;  %3321 = vmatpush1.bf16.msra.mxu1 %v5432_v22 }
  0x66   :  { %v5553_v24 = vcombine.high %v545_v17, %v549_v18  ;;  %v409_v25 = vld [vmem:[%s8145_s2 + $0xb80] sm:$0xff]  ;;  %3281 = vmatprep.subr.bf16.mxu0 %v5425_v23  ;;  %v5552_v31 = vcombine.low %v545_v17, %v549_v18 }
  0x67   :  { %v413_v58 = vld [vmem:[%s8145_s2 + $0xba0] sm:$0xff]  ;;  %3282 = vmatpush2.bf16.msra.mxu0 %v5424_v30 }
  0x68   :  { %v537_v27 = vld [vmem:[%s8145_s2 + $0xf80] sm:$0xff]  ;;  %v5417_v32 = vcombine.high %v409_v25, %v413_v58  ;;  %3322 = vmatprep.subr.bf16.mxu1 %v5553_v24  ;;  %v5416_v38 = vcombine.low %v409_v25, %v413_v58  ;;  %v98_v25 = vld [vmem:[%s8145_s2 + $0x1c8] sm:$0xff] }
  0x69   :  { %v541_v28 = vld [vmem:[%s8145_s2 + $0xfa0] sm:$0xff]  ;;  %3323 = vmatpush2.bf16.msra.mxu1 %v5552_v31  ;;  %v102_v58 = vld [vmem:[%s8145_s2 + $0x1e8] sm:$0xff] }
  0x6a   :  { %v5545_v33 = vcombine.high %v537_v27, %v541_v28  ;;  %v401_v34 = vld [vmem:[%s8145_s2 + $0xb40] sm:$0xff]  ;;  %3283 = vmatprep.subr.bf16.mxu0 %v5417_v32  ;;  %v5544_v39 = vcombine.low %v537_v27, %v541_v28  ;;  %v226_v27 = vld [vmem:[%s8145_s2 + $0x5c8] sm:$0xff]  ;;  %v5107_v32 = vcombine.high %v98_v25, %v102_v58 }
  0x6b   :  { %v405_v35 = vld [vmem:[%s8145_s2 + $0xb60] sm:$0xff]  ;;  %3284 = vmatpush2.bf16.msra.mxu0 %v5416_v38  ;;  %v230_v28 = vld [vmem:[%s8145_s2 + $0x5e8] sm:$0xff] }
  0x6c   :  { %v529_v36 = vld [vmem:[%s8145_s2 + $0xf40] sm:$0xff]  ;;  %v5409_v40 = vcombine.high %v401_v34, %v405_v35  ;;  %3324 = vmatprep.subr.bf16.mxu1 %v5545_v33  ;;  %v5408_v46 = vcombine.low %v401_v34, %v405_v35  ;;  %v5235_v33 = vcombine.high %v226_v27, %v230_v28  ;;  %v90_v34 = vld [vmem:[%s8145_s2 + $0x188] sm:$0xff] }
  0x6d   :  { %v533_v37 = vld [vmem:[%s8145_s2 + $0xf60] sm:$0xff]  ;;  %3325 = vmatpush2.bf16.msra.mxu1 %v5544_v39  ;;  %v94_v35 = vld [vmem:[%s8145_s2 + $0x1a8] sm:$0xff]  ;;  %v5106_v39 = vcombine.low %v98_v25, %v102_v58 }
  0x6e   :  { %v5537_v41 = vcombine.high %v529_v36, %v533_v37  ;;  %v393_v42 = vld [vmem:[%s8145_s2 + $0xb00] sm:$0xff]  ;;  %3285 = vmatprep.subr.bf16.mxu0 %v5409_v40  ;;  %v5536_v47 = vcombine.low %v529_v36, %v533_v37  ;;  %v6454_v36 = vcombine.low %v6243_v19, %v6243_v19  ;;  %v218_v37 = vld [vmem:[%s8145_s2 + $0x588] sm:$0xff]  ;;  %v6464_v40 = vcombine.low %v6252_v53, %v6252_v53 }
  0x6f   :  { %v397_v43 = vld [vmem:[%s8145_s2 + $0xb20] sm:$0xff]  ;;  %3286 = vmatpush2.bf16.msra.mxu0 %v5408_v46  ;;  %v222_v38 = vld [vmem:[%s8145_s2 + $0x5a8] sm:$0xff]  ;;  %v5098_v46 = vcombine.low %v90_v34, %v94_v35 }
  0x70   :  { %v521_v44 = vld [vmem:[%s8145_s2 + $0xf00] sm:$0xff]  ;;  %v5401_v48 = vcombine.high %v393_v42, %v397_v43  ;;  %3326 = vmatprep.subr.bf16.mxu1 %v5537_v41  ;;  %v5400_v55 = vcombine.low %v393_v42, %v397_v43  ;;  %v5234_v41 = vcombine.low %v226_v27, %v230_v28  ;;  %v5099_v42 = vcombine.high %v90_v34, %v94_v35  ;;  %v82_v43 = vld [vmem:[%s8145_s2 + $0x148] sm:$0xff] }
  0x71   :  { %v525_v45 = vld [vmem:[%s8145_s2 + $0xf20] sm:$0xff]  ;;  %3327 = vmatpush2.bf16.msra.mxu1 %v5536_v47  ;;  %v5227_v19 = vcombine.high %v218_v37, %v222_v38  ;;  %v210_v53 = vld [vmem:[%s8145_s2 + $0x548] sm:$0xff]  ;;  %v5226_v47 = vcombine.low %v218_v37, %v222_v38 }
  0x72   :  { %v5529_v49 = vcombine.high %v521_v44, %v525_v45  ;;  %v385_v50 = vld [vmem:[%s8145_s2 + $0xac0] sm:$0xff]  ;;  %3287 = vmatprep.subr.bf16.mxu0 %v5401_v48  ;;  %v5528_v56 = vcombine.low %v521_v44, %v525_v45  ;;  %v86_v44 = vld [vmem:[%s8145_s2 + $0x168] sm:$0xff] }
  0x73   :  { %v389_v51 = vld [vmem:[%s8145_s2 + $0xae0] sm:$0xff]  ;;  %3288 = vmatpush2.bf16.msra.mxu0 %v5400_v55  ;;  %v214_v45 = vld [vmem:[%s8145_s2 + $0x568] sm:$0xff]  ;;  %v5091_v48 = vcombine.high %v82_v43, %v86_v44  ;;  %v5090_v55 = vcombine.low %v82_v43, %v86_v44 }
  0x74   :  { %v513_v52 = vld [vmem:[%s8145_s2 + $0xec0] sm:$0xff]  ;;  %v5393_v59 = vcombine.high %v385_v50, %v389_v51  ;;  %3328 = vmatprep.subr.bf16.mxu1 %v5529_v49  ;;  %v5392_v2 = vcombine.low %v385_v50, %v389_v51  ;;  %v5219_v49 = vcombine.high %v210_v53, %v214_v45  ;;  %v74_v50 = vld [vmem:[%s8145_s2 + $0x108] sm:$0xff] }
  0x75   :  { %v517_v54 = vld [vmem:[%s8145_s2 + $0xee0] sm:$0xff]  ;;  %3329 = vmatpush2.bf16.msra.mxu1 %v5528_v56  ;;  %v78_v51 = vld [vmem:[%s8145_s2 + $0x128] sm:$0xff]  ;;  %v5218_v56 = vcombine.low %v210_v53, %v214_v45 }
  0x76   :  { %v5521_v60 = vcombine.high %v513_v52, %v517_v54  ;;  %v377_v62 = vld [vmem:[%s8145_s2 + $0xa80] sm:$0xff]  ;;  %3289 = vmatprep.subr.bf16.mxu0 %v5393_v59  ;;  %v5520_v3 = vcombine.low %v513_v52, %v517_v54  ;;  %v202_v52 = vld [vmem:[%s8145_s2 + $0x508] sm:$0xff]  ;;  %v5083_v59 = vcombine.high %v74_v50, %v78_v51 }
  0x77   :  { %v381_v63 = vld [vmem:[%s8145_s2 + $0xaa0] sm:$0xff]  ;;  %3290 = vmatpush2.bf16.msra.mxu0 %v5392_v2  ;;  %v206_v54 = vld [vmem:[%s8145_s2 + $0x528] sm:$0xff]  ;;  %v5082_v2 = vcombine.low %v74_v50, %v78_v51 }
  0x78   :  { %v505_v0 = vld [vmem:[%s8145_s2 + $0xe80] sm:$0xff]  ;;  %v5385_v4 = vcombine.high %v377_v62, %v381_v63  ;;  %3330 = vmatprep.subr.bf16.mxu1 %v5521_v60  ;;  %v5384_v10 = vcombine.low %v377_v62, %v381_v63  ;;  %v5211_v60 = vcombine.high %v202_v52, %v206_v54  ;;  %v66_v62 = vld [vmem:[%s8145_s2 + $0xc8] sm:$0xff] }
  0x79   :  { %v509_v1 = vld [vmem:[%s8145_s2 + $0xea0] sm:$0xff]  ;;  %3331 = vmatpush2.bf16.msra.mxu1 %v5520_v3  ;;  %v70_v63 = vld [vmem:[%s8145_s2 + $0xe8] sm:$0xff]  ;;  %v5210_v3 = vcombine.low %v202_v52, %v206_v54 }
  0x7a   :  { %v5513_v5 = vcombine.high %v505_v0, %v509_v1  ;;  %v369_v6 = vld [vmem:[%s8145_s2 + $0xa40] sm:$0xff]  ;;  %3291 = vmatprep.subr.bf16.mxu0 %v5385_v4  ;;  %v5512_v11 = vcombine.low %v505_v0, %v509_v1  ;;  %v194_v0 = vld [vmem:[%s8145_s2 + $0x4c8] sm:$0xff]  ;;  %v5075_v4 = vcombine.high %v66_v62, %v70_v63 }
  0x7b   :  { %v373_v7 = vld [vmem:[%s8145_s2 + $0xa60] sm:$0xff]  ;;  %3292 = vmatpush2.bf16.msra.mxu0 %v5384_v10  ;;  %v198_v1 = vld [vmem:[%s8145_s2 + $0x4e8] sm:$0xff]  ;;  %v5074_v10 = vcombine.low %v66_v62, %v70_v63 }
  0x7c   :  { %v497_v8 = vld [vmem:[%s8145_s2 + $0xe40] sm:$0xff]  ;;  %v5377_v12 = vcombine.high %v369_v6, %v373_v7  ;;  %3332 = vmatprep.subr.bf16.mxu1 %v5513_v5  ;;  %v5376_v20 = vcombine.low %v369_v6, %v373_v7  ;;  %v5203_v5 = vcombine.high %v194_v0, %v198_v1  ;;  %v58_v6 = vld [vmem:[%s8145_s2 + $0x88] sm:$0xff] }
  0x7d   :  { %v501_v9 = vld [vmem:[%s8145_s2 + $0xe60] sm:$0xff]  ;;  %3333 = vmatpush2.bf16.msra.mxu1 %v5512_v11  ;;  %v62_v7 = vld [vmem:[%s8145_s2 + $0xa8] sm:$0xff]  ;;  %v5202_v11 = vcombine.low %v194_v0, %v198_v1 }
  0x7e   :  { %v5505_v13 = vcombine.high %v497_v8, %v501_v9  ;;  %v361_v14 = vld [vmem:[%s8145_s2 + $0xa00] sm:$0xff]  ;;  %3293 = vmatprep.subr.bf16.mxu0 %v5377_v12  ;;  %v5504_v22 = vcombine.low %v497_v8, %v501_v9  ;;  %v186_v8 = vld [vmem:[%s8145_s2 + $0x488] sm:$0xff]  ;;  %v5067_v12 = vcombine.high %v58_v6, %v62_v7 }
  0x7f   :  { %v365_v15 = vld [vmem:[%s8145_s2 + $0xa20] sm:$0xff]  ;;  %3294 = vmatpush2.bf16.msra.mxu0 %v5376_v20  ;;  %v190_v9 = vld [vmem:[%s8145_s2 + $0x4a8] sm:$0xff]  ;;  %v5066_v20 = vcombine.low %v58_v6, %v62_v7 }
  0x80   :  { %v489_v17 = vld [vmem:[%s8145_s2 + $0xe00] sm:$0xff]  ;;  %v5369_v23 = vcombine.high %v361_v14, %v365_v15  ;;  %3334 = vmatprep.subr.bf16.mxu1 %v5505_v13  ;;  %v5368_v30 = vcombine.low %v361_v14, %v365_v15  ;;  %v5195_v13 = vcombine.high %v186_v8, %v190_v9  ;;  %v50_v14 = vld [vmem:[%s8145_s2 + $0x48] sm:$0xff] }
  0x81   :  { %v493_v18 = vld [vmem:[%s8145_s2 + $0xe20] sm:$0xff]  ;;  %3335 = vmatpush2.bf16.msra.mxu1 %v5504_v22  ;;  %v54_v15 = vld [vmem:[%s8145_s2 + $0x68] sm:$0xff]  ;;  %v5194_v22 = vcombine.low %v186_v8, %v190_v9 }
  0x82   :  { %v5497_v24 = vcombine.high %v489_v17, %v493_v18  ;;  %3295 = vmatprep.subr.bf16.mxu0 %v5369_v23  ;;  %v5496_v31 = vcombine.low %v489_v17, %v493_v18  ;;  %v178_v17 = vld [vmem:[%s8145_s2 + $0x448] sm:$0xff]  ;;  %v5059_v23 = vcombine.high %v50_v14, %v54_v15 }
  0x83   :  { %3296 = vmatpush2.bf16.msra.mxu0 %v5368_v30  ;;  %v182_v18 = vld [vmem:[%s8145_s2 + $0x468] sm:$0xff]  ;;  %v5058_v30 = vcombine.low %v50_v14, %v54_v15 }
  0x84   :  { %3336 = vmatprep.subr.bf16.mxu1 %v5497_v24  ;;  %3347 = vmatprep.subr.bf16.mxu0 %v5107_v32  ;;  %v5187_v24 = vcombine.high %v178_v17, %v182_v18  ;;  %v42_v25 = vld [vmem:[%s8145_s2 + $0x8] sm:$0xff] }
  0x85   :  { %3337 = vmatpush2.bf16.msra.mxu1 %v5496_v31  ;;  %v46_v58 = vld [vmem:[%s8145_s2 + $0x28] sm:$0xff]  ;;  %v5186_v31 = vcombine.low %v178_v17, %v182_v18 }
  0x86   :  { %3388 = vmatprep.subr.bf16.mxu1 %v5235_v33  ;;  %3298 = vmatmul.mubr.bf16.vlgmr.msra.gmra.mxu0 %v6454_v36  ;;  %v170_v27 = vld [vmem:[%s8145_s2 + $0x408] sm:$0xff]  ;;  %v5051_v32 = vcombine.high %v42_v25, %v46_v58 }
  0x87   :  { %3348 = vmatpush1.bf16.msra.mxu0 %v5106_v39  ;;  %3379 = vmatprep.mubr.bf16.mxu0 %v6097_v57  ;;  %v174_v28 = vld [vmem:[%s8145_s2 + $0x428] sm:$0xff]  ;;  %v5050_v39 = vcombine.low %v42_v25, %v46_v58 }
  0x88   :  { %3339 = vmatmul.mubr.bf16.vlgmr.msra.gmra.mxu1 %v6464_v40  ;;  %3349 = vmatprep.subr.bf16.mxu0 %v5099_v42  ;;  %v5179_v33 = vcombine.high %v170_v27, %v174_v28  ;;  %v162_v34 = vld [vmem:[%s8145_s2 + $0x3c8] sm:$0xff] }
  0x89   :  { %3389 = vmatpush1.bf16.msra.mxu1 %v5234_v41  ;;  %3420 = vmatprep.mubr.bf16.mxu1 %v6112_v61  ;;  %v166_v35 = vld [vmem:[%s8145_s2 + $0x3e8] sm:$0xff]  ;;  %v5178_v41 = vcombine.low %v170_v27, %v174_v28 }
  0x8a   :  { %3390 = vmatprep.subr.bf16.mxu1 %v5227_v19  ;;  %v290_v37 = vld [vmem:[%s8145_s2 + $0x7c8] sm:$0xff]  ;;  %v5171_v42 = vcombine.high %v162_v34, %v166_v35 }
  0x8b   :  { %3350 = vmatpush1.bf16.msra.mxu0 %v5098_v46  ;;  %v294_v38 = vld [vmem:[%s8145_s2 + $0x7e8] sm:$0xff]  ;;  %v5170_v46 = vcombine.low %v162_v34, %v166_v35 }
  0x8c   :  { %3351 = vmatprep.subr.bf16.mxu0 %v5091_v48  ;;  %v5299_v19 = vcombine.high %v290_v37, %v294_v38  ;;  %v154_v43 = vld [vmem:[%s8145_s2 + $0x388] sm:$0xff] }
  0x8d   :  { %3391 = vmatpush1.bf16.msra.mxu1 %v5226_v47  ;;  %v158_v44 = vld [vmem:[%s8145_s2 + $0x3a8] sm:$0xff]  ;;  %v5298_v47 = vcombine.low %v290_v37, %v294_v38 }
  0x8e   :  { %3392 = vmatprep.subr.bf16.mxu1 %v5219_v49  ;;  %v282_v53 = vld [vmem:[%s8145_s2 + $0x788] sm:$0xff]  ;;  %v5163_v48 = vcombine.high %v154_v43, %v158_v44 }
  0x8f   :  { %3352 = vmatpush1.bf16.msra.mxu0 %v5090_v55  ;;  %v286_v45 = vld [vmem:[%s8145_s2 + $0x7a8] sm:$0xff]  ;;  %v5162_v55 = vcombine.low %v154_v43, %v158_v44 }
  0x90   :  { %3353 = vmatprep.subr.bf16.mxu0 %v5083_v59  ;;  %v5291_v49 = vcombine.high %v282_v53, %v286_v45  ;;  %v146_v50 = vld [vmem:[%s8145_s2 + $0x348] sm:$0xff] }
  0x91   :  { %3393 = vmatpush1.bf16.msra.mxu1 %v5218_v56  ;;  %v150_v51 = vld [vmem:[%s8145_s2 + $0x368] sm:$0xff]  ;;  %v5290_v56 = vcombine.low %v282_v53, %v286_v45 }
  0x92   :  { %3394 = vmatprep.subr.bf16.mxu1 %v5211_v60  ;;  %v274_v52 = vld [vmem:[%s8145_s2 + $0x748] sm:$0xff]  ;;  %v5155_v59 = vcombine.high %v146_v50, %v150_v51 }
  0x93   :  { %3354 = vmatpush1.bf16.msra.mxu0 %v5082_v2  ;;  %v278_v54 = vld [vmem:[%s8145_s2 + $0x768] sm:$0xff]  ;;  %v5154_v2 = vcombine.low %v146_v50, %v150_v51 }
  0x94   :  { %3355 = vmatprep.subr.bf16.mxu0 %v5075_v4  ;;  %v5283_v60 = vcombine.high %v274_v52, %v278_v54  ;;  %v138_v62 = vld [vmem:[%s8145_s2 + $0x308] sm:$0xff] }
  0x95   :  { %3395 = vmatpush1.bf16.msra.mxu1 %v5210_v3  ;;  %v142_v63 = vld [vmem:[%s8145_s2 + $0x328] sm:$0xff]  ;;  %v5282_v3 = vcombine.low %v274_v52, %v278_v54 }
  0x96   :  { %3396 = vmatprep.subr.bf16.mxu1 %v5203_v5  ;;  %v266_v0 = vld [vmem:[%s8145_s2 + $0x708] sm:$0xff]  ;;  %v5147_v4 = vcombine.high %v138_v62, %v142_v63 }
  0x97   :  { %3356 = vmatpush1.bf16.msra.mxu0 %v5074_v10  ;;  %v270_v1 = vld [vmem:[%s8145_s2 + $0x728] sm:$0xff]  ;;  %v5146_v10 = vcombine.low %v138_v62, %v142_v63 }
  0x98   :  { %3357 = vmatprep.subr.bf16.mxu0 %v5067_v12  ;;  %v5275_v5 = vcombine.high %v266_v0, %v270_v1  ;;  %v130_v6 = vld [vmem:[%s8145_s2 + $0x2c8] sm:$0xff] }
  0x99   :  { %3397 = vmatpush1.bf16.msra.mxu1 %v5202_v11  ;;  %v134_v7 = vld [vmem:[%s8145_s2 + $0x2e8] sm:$0xff]  ;;  %v5274_v11 = vcombine.low %v266_v0, %v270_v1 }
  0x9a   :  { %3398 = vmatprep.subr.bf16.mxu1 %v5195_v13  ;;  %v258_v8 = vld [vmem:[%s8145_s2 + $0x6c8] sm:$0xff]  ;;  %v5139_v12 = vcombine.high %v130_v6, %v134_v7 }
  0x9b   :  { %3358 = vmatpush1.bf16.msra.mxu0 %v5066_v20  ;;  %v262_v9 = vld [vmem:[%s8145_s2 + $0x6e8] sm:$0xff]  ;;  %v5138_v20 = vcombine.low %v130_v6, %v134_v7 }
  0x9c   :  { %3359 = vmatprep.subr.bf16.mxu0 %v5059_v23  ;;  %v5267_v13 = vcombine.high %v258_v8, %v262_v9  ;;  %v122_v14 = vld [vmem:[%s8145_s2 + $0x288] sm:$0xff] }
  0x9d   :  { %3399 = vmatpush1.bf16.msra.mxu1 %v5194_v22  ;;  %v126_v15 = vld [vmem:[%s8145_s2 + $0x2a8] sm:$0xff]  ;;  %v5266_v22 = vcombine.low %v258_v8, %v262_v9 }
  0x9e   :  { %3400 = vmatprep.subr.bf16.mxu1 %v5187_v24  ;;  %v250_v17 = vld [vmem:[%s8145_s2 + $0x688] sm:$0xff]  ;;  %v5131_v23 = vcombine.high %v122_v14, %v126_v15 }
  0x9f   :  { %3360 = vmatpush1.bf16.msra.mxu0 %v5058_v30  ;;  %v254_v18 = vld [vmem:[%s8145_s2 + $0x6a8] sm:$0xff]  ;;  %v5130_v30 = vcombine.low %v122_v14, %v126_v15 }
  0xa0   :  { %3361 = vmatprep.subr.bf16.mxu0 %v5051_v32  ;;  %v5259_v24 = vcombine.high %v250_v17, %v254_v18  ;;  %v114_v25 = vld [vmem:[%s8145_s2 + $0x248] sm:$0xff] }
  0xa1   :  { %3401 = vmatpush1.bf16.msra.mxu1 %v5186_v31  ;;  %v118_v58 = vld [vmem:[%s8145_s2 + $0x268] sm:$0xff]  ;;  %v5258_v31 = vcombine.low %v250_v17, %v254_v18 }
  0xa2   :  { %3402 = vmatprep.subr.bf16.mxu1 %v5179_v33  ;;  %v242_v27 = vld [vmem:[%s8145_s2 + $0x648] sm:$0xff]  ;;  %v5123_v32 = vcombine.high %v114_v25, %v118_v58 }
  0xa3   :  { %3362 = vmatpush1.bf16.msra.mxu0 %v5050_v39  ;;  %v246_v28 = vld [vmem:[%s8145_s2 + $0x668] sm:$0xff]  ;;  %v5122_v39 = vcombine.low %v114_v25, %v118_v58 }
  0xa4   :  { %3363 = vmatprep.subr.bf16.mxu0 %v5171_v42  ;;  %v5251_v33 = vcombine.high %v242_v27, %v246_v28  ;;  %v106_v34 = vld [vmem:[%s8145_s2 + $0x208] sm:$0xff] }
  0xa5   :  { %3403 = vmatpush1.bf16.msra.mxu1 %v5178_v41  ;;  %v110_v35 = vld [vmem:[%s8145_s2 + $0x228] sm:$0xff]  ;;  %v5250_v41 = vcombine.low %v242_v27, %v246_v28 }
  0xa6   :  { %3404 = vmatprep.subr.bf16.mxu1 %v5299_v19  ;;  %v234_v37 = vld [vmem:[%s8145_s2 + $0x608] sm:$0xff]  ;;  %v5115_v42 = vcombine.high %v106_v34, %v110_v35 }
  0xa7   :  { %3364 = vmatpush2.bf16.msra.mxu0 %v5170_v46  ;;  %v238_v38 = vld [vmem:[%s8145_s2 + $0x628] sm:$0xff]  ;;  %v5114_v46 = vcombine.low %v106_v34, %v110_v35 }
  0xa8   :  { %3365 = vmatprep.subr.bf16.mxu0 %v5163_v48  ;;  %v5243_v19 = vcombine.high %v234_v37, %v238_v38  ;;  %v354_v43 = vld [vmem:[%s8145_s2 + $0x9c8] sm:$0xff] }
  0xa9   :  { %3405 = vmatpush2.bf16.msra.mxu1 %v5298_v47  ;;  %v358_v44 = vld [vmem:[%s8145_s2 + $0x9e8] sm:$0xff]  ;;  %v5242_v47 = vcombine.low %v234_v37, %v238_v38 }
  0xaa   :  { %3406 = vmatprep.subr.bf16.mxu1 %v5291_v49  ;;  %v482_v53 = vld [vmem:[%s8145_s2 + $0xdc8] sm:$0xff]  ;;  %v5363_v48 = vcombine.high %v354_v43, %v358_v44 }
  0xab   :  { %3366 = vmatpush2.bf16.msra.mxu0 %v5162_v55  ;;  %v486_v45 = vld [vmem:[%s8145_s2 + $0xde8] sm:$0xff]  ;;  %v5362_v55 = vcombine.low %v354_v43, %v358_v44 }
  0xac   :  { %3367 = vmatprep.subr.bf16.mxu0 %v5155_v59  ;;  %v5491_v49 = vcombine.high %v482_v53, %v486_v45  ;;  %v346_v50 = vld [vmem:[%s8145_s2 + $0x988] sm:$0xff] }
  0xad   :  { %3407 = vmatpush2.bf16.msra.mxu1 %v5290_v56  ;;  %v350_v51 = vld [vmem:[%s8145_s2 + $0x9a8] sm:$0xff]  ;;  %v5490_v56 = vcombine.low %v482_v53, %v486_v45 }
  0xae   :  { %3408 = vmatprep.subr.bf16.mxu1 %v5283_v60  ;;  %v474_v52 = vld [vmem:[%s8145_s2 + $0xd88] sm:$0xff]  ;;  %v5355_v59 = vcombine.high %v346_v50, %v350_v51 }
  0xaf   :  { %3368 = vmatpush2.bf16.msra.mxu0 %v5154_v2  ;;  %v478_v54 = vld [vmem:[%s8145_s2 + $0xda8] sm:$0xff]  ;;  %v5354_v2 = vcombine.low %v346_v50, %v350_v51 }
  0xb0   :  { %3369 = vmatprep.subr.bf16.mxu0 %v5147_v4  ;;  %v5483_v60 = vcombine.high %v474_v52, %v478_v54  ;;  %v338_v62 = vld [vmem:[%s8145_s2 + $0x948] sm:$0xff] }
  0xb1   :  { %3409 = vmatpush2.bf16.msra.mxu1 %v5282_v3  ;;  %v342_v63 = vld [vmem:[%s8145_s2 + $0x968] sm:$0xff]  ;;  %v5482_v3 = vcombine.low %v474_v52, %v478_v54 }
  0xb2   :  { %3410 = vmatprep.subr.bf16.mxu1 %v5275_v5  ;;  %v466_v0 = vld [vmem:[%s8145_s2 + $0xd48] sm:$0xff]  ;;  %v5347_v4 = vcombine.high %v338_v62, %v342_v63 }
  0xb3   :  { %3370 = vmatpush2.bf16.msra.mxu0 %v5146_v10  ;;  %v470_v1 = vld [vmem:[%s8145_s2 + $0xd68] sm:$0xff]  ;;  %v5346_v10 = vcombine.low %v338_v62, %v342_v63 }
  0xb4   :  { %3371 = vmatprep.subr.bf16.mxu0 %v5139_v12  ;;  %v5475_v5 = vcombine.high %v466_v0, %v470_v1  ;;  %v330_v6 = vld [vmem:[%s8145_s2 + $0x908] sm:$0xff] }
  0xb5   :  { %3411 = vmatpush2.bf16.msra.mxu1 %v5274_v11  ;;  %v334_v7 = vld [vmem:[%s8145_s2 + $0x928] sm:$0xff]  ;;  %v5474_v11 = vcombine.low %v466_v0, %v470_v1 }
  0xb6   :  { %3412 = vmatprep.subr.bf16.mxu1 %v5267_v13  ;;  %v458_v8 = vld [vmem:[%s8145_s2 + $0xd08] sm:$0xff]  ;;  %v5339_v12 = vcombine.high %v330_v6, %v334_v7 }
  0xb7   :  { %3372 = vmatpush2.bf16.msra.mxu0 %v5138_v20  ;;  %v462_v9 = vld [vmem:[%s8145_s2 + $0xd28] sm:$0xff]  ;;  %v5338_v20 = vcombine.low %v330_v6, %v334_v7 }
  0xb8   :  { %3373 = vmatprep.subr.bf16.mxu0 %v5131_v23  ;;  %v5467_v13 = vcombine.high %v458_v8, %v462_v9  ;;  %v322_v14 = vld [vmem:[%s8145_s2 + $0x8c8] sm:$0xff] }
  0xb9   :  { %3413 = vmatpush2.bf16.msra.mxu1 %v5266_v22  ;;  %v326_v15 = vld [vmem:[%s8145_s2 + $0x8e8] sm:$0xff]  ;;  %v5466_v22 = vcombine.low %v458_v8, %v462_v9 }
  0xba   :  { %3414 = vmatprep.subr.bf16.mxu1 %v5259_v24  ;;  %v450_v17 = vld [vmem:[%s8145_s2 + $0xcc8] sm:$0xff]  ;;  %v5331_v23 = vcombine.high %v322_v14, %v326_v15 }
  0xbb   :  { %3374 = vmatpush2.bf16.msra.mxu0 %v5130_v30  ;;  %v454_v18 = vld [vmem:[%s8145_s2 + $0xce8] sm:$0xff]  ;;  %v5330_v30 = vcombine.low %v322_v14, %v326_v15 }
  0xbc   :  { %3375 = vmatprep.subr.bf16.mxu0 %v5123_v32  ;;  %v5459_v24 = vcombine.high %v450_v17, %v454_v18  ;;  %v314_v25 = vld [vmem:[%s8145_s2 + $0x888] sm:$0xff] }
  0xbd   :  { %3415 = vmatpush2.bf16.msra.mxu1 %v5258_v31  ;;  %v318_v58 = vld [vmem:[%s8145_s2 + $0x8a8] sm:$0xff]  ;;  %v5458_v31 = vcombine.low %v450_v17, %v454_v18 }
  0xbe   :  { %3416 = vmatprep.subr.bf16.mxu1 %v5251_v33  ;;  %v442_v27 = vld [vmem:[%s8145_s2 + $0xc88] sm:$0xff]  ;;  %v5323_v32 = vcombine.high %v314_v25, %v318_v58 }
  0xbf   :  { %3376 = vmatpush2.bf16.msra.mxu0 %v5122_v39  ;;  %v446_v28 = vld [vmem:[%s8145_s2 + $0xca8] sm:$0xff]  ;;  %v5322_v39 = vcombine.low %v314_v25, %v318_v58 }
  0xc0   :  { %3377 = vmatprep.subr.bf16.mxu0 %v5115_v42  ;;  %v5451_v33 = vcombine.high %v442_v27, %v446_v28  ;;  %v306_v34 = vld [vmem:[%s8145_s2 + $0x848] sm:$0xff] }
  0xc1   :  { %3417 = vmatpush2.bf16.msra.mxu1 %v5250_v41  ;;  %v310_v35 = vld [vmem:[%s8145_s2 + $0x868] sm:$0xff]  ;;  %v5450_v41 = vcombine.low %v442_v27, %v446_v28 }
  0xc2   :  { %3418 = vmatprep.subr.bf16.mxu1 %v5243_v19  ;;  %v434_v37 = vld [vmem:[%s8145_s2 + $0xc48] sm:$0xff]  ;;  %v5315_v42 = vcombine.high %v306_v34, %v310_v35 }
  0xc3   :  { %3378 = vmatpush2.bf16.msra.mxu0 %v5114_v46  ;;  %v438_v38 = vld [vmem:[%s8145_s2 + $0xc68] sm:$0xff]  ;;  %v5314_v46 = vcombine.low %v306_v34, %v310_v35 }
  0xc4   :  { %3429 = vmatprep.subr.bf16.mxu0 %v5363_v48  ;;  %v5443_v19 = vcombine.high %v434_v37, %v438_v38  ;;  %v298_v43 = vld [vmem:[%s8145_s2 + $0x808] sm:$0xff] }
  0xc5   :  { %3419 = vmatpush2.bf16.msra.mxu1 %v5242_v47  ;;  %v302_v44 = vld [vmem:[%s8145_s2 + $0x828] sm:$0xff]  ;;  %v5442_v47 = vcombine.low %v434_v37, %v438_v38 }
  0xc6   :  { %3470 = vmatprep.subr.bf16.mxu1 %v5491_v49  ;;  %3380 = vmatmul.mubr.bf16.vlgmr.msra.gmra.mxu0 %v6232_v16  ;;  %v426_v53 = vld [vmem:[%s8145_s2 + $0xc08] sm:$0xff]  ;;  %v5307_v48 = vcombine.high %v298_v43, %v302_v44 }
  0xc7   :  { %3430 = vmatpush1.bf16.msra.mxu0 %v5362_v55  ;;  %3461 = vmatprep.mubr.bf16.mxu0 %v6262_v26  ;;  %v430_v45 = vld [vmem:[%s8145_s2 + $0xc28] sm:$0xff]  ;;  %v5306_v55 = vcombine.low %v298_v43, %v302_v44 }
  0xc8   :  { %3421 = vmatmul.mubr.bf16.vlgmr.msra.gmra.mxu1 %v6247_v21  ;;  %3431 = vmatprep.subr.bf16.mxu0 %v5355_v59  ;;  %v5435_v49 = vcombine.high %v426_v53, %v430_v45  ;;  %v418_v50 = vld [vmem:[%s8145_s2 + $0xbc8] sm:$0xff] }
  0xc9   :  { %3471 = vmatpush1.bf16.msra.mxu1 %v5490_v56  ;;  %3502 = vmatprep.mubr.bf16.mxu1 %v6273_v29  ;;  %v422_v51 = vld [vmem:[%s8145_s2 + $0xbe8] sm:$0xff]  ;;  %v5434_v56 = vcombine.low %v426_v53, %v430_v45 }
  0xca   :  { %3472 = vmatprep.subr.bf16.mxu1 %v5483_v60  ;;  %v546_v52 = vld [vmem:[%s8145_s2 + $0xfc8] sm:$0xff]  ;;  %v5427_v59 = vcombine.high %v418_v50, %v422_v51 }
  0xcb   :  { %3432 = vmatpush1.bf16.msra.mxu0 %v5354_v2  ;;  %v550_v54 = vld [vmem:[%s8145_s2 + $0xfe8] sm:$0xff]  ;;  %v5426_v2 = vcombine.low %v418_v50, %v422_v51 }
  0xcc   :  { %3433 = vmatprep.subr.bf16.mxu0 %v5347_v4  ;;  %v5555_v60 = vcombine.high %v546_v52, %v550_v54  ;;  %v410_v62 = vld [vmem:[%s8145_s2 + $0xb88] sm:$0xff] }
  0xcd   :  { %3473 = vmatpush1.bf16.msra.mxu1 %v5482_v3  ;;  %v414_v63 = vld [vmem:[%s8145_s2 + $0xba8] sm:$0xff]  ;;  %v5554_v3 = vcombine.low %v546_v52, %v550_v54 }
  0xce   :  { %3474 = vmatprep.subr.bf16.mxu1 %v5475_v5  ;;  %v538_v0 = vld [vmem:[%s8145_s2 + $0xf88] sm:$0xff]  ;;  %v5419_v4 = vcombine.high %v410_v62, %v414_v63 }
  0xcf   :  { %3434 = vmatpush1.bf16.msra.mxu0 %v5346_v10  ;;  %v542_v1 = vld [vmem:[%s8145_s2 + $0xfa8] sm:$0xff]  ;;  %v5418_v10 = vcombine.low %v410_v62, %v414_v63 }
  0xd0   :  { %3435 = vmatprep.subr.bf16.mxu0 %v5339_v12  ;;  %v5547_v5 = vcombine.high %v538_v0, %v542_v1  ;;  %v402_v6 = vld [vmem:[%s8145_s2 + $0xb48] sm:$0xff] }
  0xd1   :  { %3475 = vmatpush1.bf16.msra.mxu1 %v5474_v11  ;;  %v406_v7 = vld [vmem:[%s8145_s2 + $0xb68] sm:$0xff]  ;;  %v5546_v11 = vcombine.low %v538_v0, %v542_v1  ;;  %v99_v0 = vld [vmem:[%s8145_s2 + $0x1d0] sm:$0xff] }
  0xd2   :  { %3476 = vmatprep.subr.bf16.mxu1 %v5467_v13  ;;  %v530_v8 = vld [vmem:[%s8145_s2 + $0xf48] sm:$0xff]  ;;  %v5411_v12 = vcombine.high %v402_v6, %v406_v7  ;;  %v103_v1 = vld [vmem:[%s8145_s2 + $0x1f0] sm:$0xff] }
  0xd3   :  { %3436 = vmatpush1.bf16.msra.mxu0 %v5338_v20  ;;  %v534_v9 = vld [vmem:[%s8145_s2 + $0xf68] sm:$0xff]  ;;  %v5410_v20 = vcombine.low %v402_v6, %v406_v7  ;;  %v6852_v7 = vld [vmem:[%s8147_s3] sm:$0xff] }
  0xd4   :  { %3437 = vmatprep.subr.bf16.mxu0 %v5331_v23  ;;  %v5539_v13 = vcombine.high %v530_v8, %v534_v9  ;;  %v394_v14 = vld [vmem:[%s8145_s2 + $0xb08] sm:$0xff] }
  0xd5   :  { %3477 = vmatpush1.bf16.msra.mxu1 %v5466_v22  ;;  %v398_v15 = vld [vmem:[%s8145_s2 + $0xb28] sm:$0xff]  ;;  %v5538_v22 = vcombine.low %v530_v8, %v534_v9  ;;  %v5109_v8 = vcombine.high %v99_v0, %v103_v1 }
  0xd6   :  { %3478 = vmatprep.subr.bf16.mxu1 %v5459_v24  ;;  %v522_v17 = vld [vmem:[%s8145_s2 + $0xf08] sm:$0xff]  ;;  %v5403_v23 = vcombine.high %v394_v14, %v398_v15 }
  0xd7   :  { %3438 = vmatpush1.bf16.msra.mxu0 %v5330_v30  ;;  %v526_v18 = vld [vmem:[%s8145_s2 + $0xf28] sm:$0xff]  ;;  %v5402_v30 = vcombine.low %v394_v14, %v398_v15  ;;  %v223_v14 = vld [vmem:[%s8145_s2 + $0x5b0] sm:$0xff] }
  0xd8   :  { %3439 = vmatprep.subr.bf16.mxu0 %v5323_v32  ;;  %v5531_v24 = vcombine.high %v522_v17, %v526_v18  ;;  %v386_v25 = vld [vmem:[%s8145_s2 + $0xac8] sm:$0xff] }
  0xd9   :  { %3479 = vmatpush1.bf16.msra.mxu1 %v5458_v31  ;;  %v390_v58 = vld [vmem:[%s8145_s2 + $0xae8] sm:$0xff]  ;;  %v5530_v31 = vcombine.low %v522_v17, %v526_v18  ;;  %v5108_v17 = vcombine.low %v99_v0, %v103_v1 }
  0xda   :  { %3480 = vmatprep.subr.bf16.mxu1 %v5451_v33  ;;  %v514_v27 = vld [vmem:[%s8145_s2 + $0xec8] sm:$0xff]  ;;  %v5395_v32 = vcombine.high %v386_v25, %v390_v58 }
  0xdb   :  { %3440 = vmatpush1.bf16.msra.mxu0 %v5322_v39  ;;  %v518_v28 = vld [vmem:[%s8145_s2 + $0xee8] sm:$0xff]  ;;  %v5394_v39 = vcombine.low %v386_v25, %v390_v58  ;;  %v87_v25 = vld [vmem:[%s8145_s2 + $0x170] sm:$0xff] }
  0xdc   :  { %3441 = vmatprep.subr.bf16.mxu0 %v5315_v42  ;;  %v5523_v33 = vcombine.high %v514_v27, %v518_v28  ;;  %v378_v34 = vld [vmem:[%s8145_s2 + $0xa88] sm:$0xff] }
  0xdd   :  { %3481 = vmatpush1.bf16.msra.mxu1 %v5450_v41  ;;  %v382_v35 = vld [vmem:[%s8145_s2 + $0xaa8] sm:$0xff]  ;;  %v5522_v41 = vcombine.low %v514_v27, %v518_v28  ;;  %v211_v27 = vld [vmem:[%s8145_s2 + $0x550] sm:$0xff] }
  0xde   :  { %3482 = vmatprep.subr.bf16.mxu1 %v5443_v19  ;;  %v506_v37 = vld [vmem:[%s8145_s2 + $0xe88] sm:$0xff]  ;;  %v5387_v42 = vcombine.high %v378_v34, %v382_v35  ;;  %v215_v28 = vld [vmem:[%s8145_s2 + $0x570] sm:$0xff] }
  0xdf   :  { %3442 = vmatpush1.bf16.msra.mxu0 %v5314_v46  ;;  %v510_v38 = vld [vmem:[%s8145_s2 + $0xea8] sm:$0xff]  ;;  %v5386_v46 = vcombine.low %v378_v34, %v382_v35 }
  0xe0   :  { %3443 = vmatprep.subr.bf16.mxu0 %v5307_v48  ;;  %v5515_v19 = vcombine.high %v506_v37, %v510_v38  ;;  %v370_v43 = vld [vmem:[%s8145_s2 + $0xa48] sm:$0xff]  ;;  %v5514_v48 = vcombine.low %v506_v37, %v510_v38 }
  0xe1   :  { %3483 = vmatpush1.bf16.msra.mxu1 %v5442_v47  ;;  %v374_v44 = vld [vmem:[%s8145_s2 + $0xa68] sm:$0xff]  ;;  %v555_v47 = vlaneseq }
  0xe2   :  { %3484 = vmatprep.subr.bf16.mxu1 %v5435_v49  ;;  %v498_v53 = vld [vmem:[%s8145_s2 + $0xe48] sm:$0xff]  ;;  %v5379_v49 = vcombine.high %v370_v43, %v374_v44 }
  0xe3   :  { %3444 = vmatpush1.bf16.msra.mxu0 %v5306_v55  ;;  %v502_v45 = vld [vmem:[%s8145_s2 + $0xe68] sm:$0xff] }
  0xe4   :  { %3445 = vmatprep.subr.bf16.mxu0 %v5427_v59  ;;  %v5507_v50 = vcombine.high %v498_v53, %v502_v45  ;;  %v362_v51 = vld [vmem:[%s8145_s2 + $0xa08] sm:$0xff]  ;;  %v6834_v59 = vshrl.u32 %v555_v47, 7 }
  0xe5   :  { %3485 = vmatpush1.bf16.msra.mxu1 %v5434_v56  ;;  %v366_v52 = vld [vmem:[%s8145_s2 + $0xa28] sm:$0xff]  ;;  %v5378_v56 = vcombine.low %v370_v43, %v374_v44  ;;  %v203_v44 = vld [vmem:[%s8145_s2 + $0x510] sm:$0xff] }
  0xe6   :  { %3486 = vmatprep.subr.bf16.mxu1 %v5555_v60  ;;  %v490_v54 = vld [vmem:[%s8145_s2 + $0xe08] sm:$0xff]  ;;  %v5506_v60 = vcombine.low %v498_v53, %v502_v45  ;;  %v5371_v62 = vcombine.high %v362_v51, %v366_v52  ;;  %v561_v9 = vsub.s32 1, %v6834_v59  ;;  %v207_v53 = vld [vmem:[%s8145_s2 + $0x530] sm:$0xff] }
  0xe7   :  { %3446 = vmatpush2.bf16.msra.mxu0 %v5426_v2  ;;  %v494_v55 = vld [vmem:[%s8145_s2 + $0xe28] sm:$0xff]  ;;  %v227_v2 = vld [vmem:[%s8145_s2 + $0x5d0] sm:$0xff] }
  0xe8   :  { %3447 = vmatprep.subr.bf16.mxu0 %v5419_v4  ;;  %v5499_v63 = vcombine.high %v490_v54, %v494_v55  ;;  %v5370_v4 = vcombine.low %v362_v51, %v366_v52  ;;  %v5498_v6 = vcombine.low %v490_v54, %v494_v55  ;;  %v5213_v51 = vcombine.high %v203_v44, %v207_v53  ;;  %v67_v52 = vld [vmem:[%s8145_s2 + $0xd0] sm:$0xff] }
  0xe9   :  { %3487 = vmatpush2.bf16.msra.mxu1 %v5554_v3  ;;  %v231_v3 = vld [vmem:[%s8145_s2 + $0x5f0] sm:$0xff] }
  0xea   :  { %3488 = vmatprep.subr.bf16.mxu1 %v5547_v5  ;;  %v557_v5 = vsub.s32 0, %v6834_v59  ;;  %v5236_v18 = vcombine.low %v227_v2, %v231_v3  ;;  %v71_v54 = vld [vmem:[%s8145_s2 + $0xf0] sm:$0xff] }
  0xeb   :  { %3448 = vmatpush2.bf16.msra.mxu0 %v5418_v10  ;;  %v5237_v10 = vcombine.high %v227_v2, %v231_v3  ;;  %v5077_v0 = vcombine.high %v67_v52, %v71_v54  ;;  %v59_v2 = vld [vmem:[%s8145_s2 + $0x90] sm:$0xff] }
  0xec   :  { %3449 = vmatprep.subr.bf16.mxu0 %v5411_v12  ;;  %v95_v12 = vld [vmem:[%s8145_s2 + $0x1b0] sm:$0xff]  ;;  %v558_v15 = vrot.slane %v6852_v7, %v557_v5 }
  0xed   :  { %3489 = vmatpush2.bf16.msra.mxu1 %v5546_v11  ;;  %v91_v11 = vld [vmem:[%s8145_s2 + $0x190] sm:$0xff] }
  0xee   :  { %3490 = vmatprep.subr.bf16.mxu1 %v5539_v13  ;;  %v219_v13 = vld [vmem:[%s8145_s2 + $0x590] sm:$0xff] }
  0xef   :  { %3450 = vmatpush2.bf16.msra.mxu0 %v5410_v20  ;;  %v5101_v20 = vcombine.high %v91_v11, %v95_v12  ;;  %v5228_v34 = vcombine.low %v219_v13, %v223_v14  ;;  %v63_v3 = vld [vmem:[%s8145_s2 + $0xb0] sm:$0xff] }
  0xf0   :  { %3451 = vmatprep.subr.bf16.mxu0 %v5403_v23  ;;  %v5229_v23 = vcombine.high %v219_v13, %v223_v14  ;;  %v51_v13 = vld [vmem:[%s8145_s2 + $0x50] sm:$0xff] }
  0xf1   :  { %3491 = vmatpush2.bf16.msra.mxu1 %v5538_v22  ;;  %v562_v22 = vrot.slane %v6852_v7, %v561_v9  ;;  %v55_v14 = vld [vmem:[%s8145_s2 + $0x70] sm:$0xff] }
  0xf2   :  { %3492 = vmatprep.subr.bf16.mxu1 %v5531_v24  ;;  %v83_v24 = vld [vmem:[%s8145_s2 + $0x150] sm:$0xff] }
  0xf3   :  { %3452 = vmatpush2.bf16.msra.mxu0 %v5402_v30  ;;  %v5093_v35 = vcombine.high %v83_v24, %v87_v25 }
  0xf4   :  { %3453 = vmatprep.subr.bf16.mxu0 %v5395_v32  ;;  %v5100_v32 = vcombine.low %v91_v11, %v95_v12  ;;  %v5069_v11 = vcombine.high %v59_v2, %v63_v3 }
  0xf5   :  { %3493 = vmatpush2.bf16.msra.mxu1 %v5530_v31 }
  0xf6   :  { %3494 = vmatprep.subr.bf16.mxu1 %v5523_v33 }
  0xf7   :  { %3454 = vmatpush2.bf16.msra.mxu0 %v5394_v39 }
  0xf8   :  { %3455 = vmatprep.subr.bf16.mxu0 %v5387_v42  ;;  %v75_v42 = vld [vmem:[%s8145_s2 + $0x110] sm:$0xff] }
  0xf9   :  { %3495 = vmatpush2.bf16.msra.mxu1 %v5522_v41  ;;  %v5221_v41 = vcombine.high %v211_v27, %v215_v28 }
  0xfa   :  { %3496 = vmatprep.subr.bf16.mxu1 %v5515_v19  ;;  %v79_v19 = vld [vmem:[%s8145_s2 + $0x130] sm:$0xff] }
  0xfb   :  { %3456 = vmatpush2.bf16.msra.mxu0 %v5386_v46  ;;  %v5092_v46 = vcombine.low %v83_v24, %v87_v25  ;;  %v43_v24 = vld [vmem:[%s8145_s2 + $0x10] sm:$0xff] }
  0xfc   :  { %3457 = vmatprep.subr.bf16.mxu0 %v5379_v49  ;;  %v5220_v49 = vcombine.low %v211_v27, %v215_v28  ;;  %v47_v25 = vld [vmem:[%s8145_s2 + $0x30] sm:$0xff]  ;;  %v5060_v28 = vcombine.low %v51_v13, %v55_v14 }
  0xfd   :  { %3497 = vmatpush2.bf16.msra.mxu1 %v5514_v48  ;;  %v175_v27 = vld [vmem:[%s8145_s2 + $0x430] sm:$0xff] }
  0xfe   :  { %3498 = vmatprep.subr.bf16.mxu1 %v5507_v50  ;;  %v5085_v50 = vcombine.high %v75_v42, %v79_v19 }
  0xff   :  { %3458 = vmatpush2.bf16.msra.mxu0 %v5378_v56  ;;  %v195_v56 = vld [vmem:[%s8145_s2 + $0x4d0] sm:$0xff] }
 0x100   :  { %3459 = vmatprep.subr.bf16.mxu0 %v5371_v62  ;;  %v5084_v62 = vcombine.low %v75_v42, %v79_v19 }
 0x101   :  { %3499 = vmatpush2.bf16.msra.mxu1 %v5506_v60  ;;  %v199_v60 = vld [vmem:[%s8145_s2 + $0x4f0] sm:$0xff] }
 0x102   :  { %3500 = vmatprep.subr.bf16.mxu1 %v5499_v63  ;;  %v5212_v63 = vcombine.low %v203_v44, %v207_v53  ;;  %v5205_v1 = vcombine.high %v195_v56, %v199_v60  ;;  %v159_v44 = vld [vmem:[%s8145_s2 + $0x3b0] sm:$0xff] }
 0x103   :  { %3460 = vmatpush2.bf16.msra.mxu0 %v5370_v4  ;;  %v187_v4 = vld [vmem:[%s8145_s2 + $0x490] sm:$0xff] }
 0x104   :  { %3511 = vmatprep.subr.bf16.mxu0 %v5109_v8  ;;  %v5076_v8 = vcombine.low %v67_v52, %v71_v54  ;;  %v283_v53 = vld [vmem:[%s8145_s2 + $0x790] sm:$0xff] }
 0x105   :  { %3501 = vmatpush2.bf16.msra.mxu1 %v5498_v6  ;;  %v191_v6 = vld [vmem:[%s8145_s2 + $0x4b0] sm:$0xff] }
 0x106   :  { %3552 = vmatprep.subr.bf16.mxu1 %v5237_v10  ;;  %v3217_v58 = vpop.f32.mrf.mxu0  ;;  %3462 = vmatmul.mubr.bf16.vlgmr.msra.gmra.mxu0 %v6454_v36  ;;  %v5204_v10 = vcombine.low %v195_v56, %v199_v60  ;;  %v5197_v12 = vcombine.high %v187_v4, %v191_v6  ;;  %v151_v52 = vld [vmem:[%s8145_s2 + $0x370] sm:$0xff] }
 0x107   :  { %v3218_v30 = vadd.f32 %v3217_v58, %v558_v15  ;;  %3512 = vmatpush1.bf16.msra.mxu0 %v5108_v17  ;;  %3543 = vmatprep.mubr.bf16.mxu0 %v6097_v57  ;;  %v179_v15 = vld [vmem:[%s8145_s2 + $0x450] sm:$0xff] }
 0x108   :  { %v3258_v31 = vpop.f32.mrf.mxu1  ;;  %3503 = vmatmul.mubr.bf16.vlgmr.msra.gmra.mxu1 %v6464_v40  ;;  %v3219_v33 = vpop.f32.mrf.mxu0  ;;  %3513 = vmatprep.subr.bf16.mxu0 %v5101_v20  ;;  %v183_v17 = vld [vmem:[%s8145_s2 + $0x470] sm:$0xff]  ;;  %v5196_v20 = vcombine.low %v187_v4, %v191_v6 }
 0x109   :  { %3553 = vmatpush1.bf16.msra.mxu1 %v5236_v18  ;;  %v3220_v37 = vadd.f32 %v3219_v33, %v562_v22  ;;  %v6887_v38 = vadd.f32 %v3258_v31, %v3218_v30  ;;  %3584 = vmatprep.mubr.bf16.mxu1 %v6112_v61  ;;  %v5068_v18 = vcombine.low %v59_v2, %v63_v3  ;;  %v171_v58 = vld [vmem:[%s8145_s2 + $0x410] sm:$0xff] }
 0x10a   :  { %v3260_v39 = vpop.f32.mrf.mxu1  ;;  %3554 = vmatprep.subr.bf16.mxu1 %v5229_v23  ;;  %v3221_v43 = vpop.f32.mrf.mxu0  ;;  %v5061_v22 = vcombine.high %v51_v13, %v55_v14  ;;  %v5189_v23 = vcombine.high %v179_v15, %v183_v17  ;;  %v5188_v30 = vcombine.low %v179_v15, %v183_v17  ;;  %v5053_v31 = vcombine.high %v43_v24, %v47_v25  ;;  %v163_v33 = vld [vmem:[%s8145_s2 + $0x3d0] sm:$0xff] }
 0x10b   :  { %v6903_v45 = vadd.f32 %v3260_v39, %v3220_v37  ;;  %3514 = vmatpush1.bf16.msra.mxu0 %v5100_v32  ;;  %v5181_v32 = vcombine.high %v171_v58, %v175_v27  ;;  %v295_v37 = vld [vmem:[%s8145_s2 + $0x7f0] sm:$0xff]  ;;  %v5052_v39 = vcombine.low %v43_v24, %v47_v25 }
 0x10c   :  { %v3262_v47 = vpop.f32.mrf.mxu1  ;;  %v3222_v48 = vpop.f32.mrf.mxu0  ;;  %3515 = vmatprep.subr.bf16.mxu0 %v5093_v35  ;;  %v291_v35 = vld [vmem:[%s8145_s2 + $0x7d0] sm:$0xff] }
 0x10d   :  { %3555 = vmatpush1.bf16.msra.mxu1 %v5228_v34  ;;  %v167_v34 = vld [vmem:[%s8145_s2 + $0x3f0] sm:$0xff]  ;;  %v5301_v19 = vcombine.high %v291_v35, %v295_v37  ;;  %v5300_v48 = vcombine.low %v291_v35, %v295_v37 }
 0x10e   :  { %3556 = vmatprep.subr.bf16.mxu1 %v5221_v41  ;;  %v3263_v55 = vpop.f32.mrf.mxu1  ;;  %v5180_v41 = vcombine.low %v171_v58, %v175_v27  ;;  %v5173_v42 = vcombine.high %v163_v33, %v167_v34  ;;  %v155_v43 = vld [vmem:[%s8145_s2 + $0x390] sm:$0xff]  ;;  %v5172_v47 = vcombine.low %v163_v33, %v167_v34 }
 0x10f   :  { %3516 = vmatpush1.bf16.msra.mxu0 %v5092_v46  ;;  %v287_v46 = vld [vmem:[%s8145_s2 + $0x7b0] sm:$0xff]  ;;  %v5164_v56 = vcombine.low %v155_v43, %v159_v44 }
 0x110   :  { %3517 = vmatprep.subr.bf16.mxu0 %v5085_v50  ;;  %v5293_v50 = vcombine.high %v283_v53, %v287_v46  ;;  %v275_v54 = vld [vmem:[%s8145_s2 + $0x750] sm:$0xff]  ;;  %v5292_v60 = vcombine.low %v283_v53, %v287_v46 }
 0x111   :  { %3557 = vmatpush1.bf16.msra.mxu1 %v5220_v49  ;;  %v5165_v49 = vcombine.high %v155_v43, %v159_v44  ;;  %v279_v55 = vld [vmem:[%s8145_s2 + $0x770] sm:$0xff] }
 0x112   :  { %3558 = vmatprep.subr.bf16.mxu1 %v5213_v51  ;;  %v147_v51 = vld [vmem:[%s8145_s2 + $0x350] sm:$0xff]  ;;  %v5284_v6 = vcombine.low %v275_v54, %v279_v55 }
 0x113   :  { %3518 = vmatpush1.bf16.msra.mxu0 %v5084_v62  ;;  %v5157_v62 = vcombine.high %v147_v51, %v151_v52  ;;  %v267_v2 = vld [vmem:[%s8145_s2 + $0x710] sm:$0xff]  ;;  %v5156_v4 = vcombine.low %v147_v51, %v151_v52 }
 0x114   :  { %3519 = vmatprep.subr.bf16.mxu0 %v5077_v0  ;;  %v139_v0 = vld [vmem:[%s8145_s2 + $0x310] sm:$0xff] }
 0x115   :  { %3559 = vmatpush1.bf16.msra.mxu1 %v5212_v63  ;;  %v5285_v63 = vcombine.high %v275_v54, %v279_v55  ;;  %v271_v3 = vld [vmem:[%s8145_s2 + $0x730] sm:$0xff] }
 0x116   :  { %3560 = vmatprep.subr.bf16.mxu1 %v5205_v1  ;;  %v143_v1 = vld [vmem:[%s8145_s2 + $0x330] sm:$0xff]  ;;  %v5276_v17 = vcombine.low %v267_v2, %v271_v3 }
 0x117   :  { %3520 = vmatpush1.bf16.msra.mxu0 %v5076_v8  ;;  %v5149_v8 = vcombine.high %v139_v0, %v143_v1  ;;  %v259_v13 = vld [vmem:[%s8145_s2 + $0x6d0] sm:$0xff]  ;;  %v5148_v15 = vcombine.low %v139_v0, %v143_v1 }
 0x118   :  { %3521 = vmatprep.subr.bf16.mxu0 %v5069_v11  ;;  %v131_v11 = vld [vmem:[%s8145_s2 + $0x2d0] sm:$0xff] }
 0x119   :  { %3561 = vmatpush1.bf16.msra.mxu1 %v5204_v10  ;;  %v5277_v10 = vcombine.high %v267_v2, %v271_v3  ;;  %v263_v14 = vld [vmem:[%s8145_s2 + $0x6f0] sm:$0xff] }
 0x11a   :  { %3562 = vmatprep.subr.bf16.mxu1 %v5197_v12  ;;  %v135_v12 = vld [vmem:[%s8145_s2 + $0x2f0] sm:$0xff]  ;;  %v5268_v27 = vcombine.low %v259_v13, %v263_v14 }
 0x11b   :  { %3522 = vmatpush1.bf16.msra.mxu0 %v5068_v18  ;;  %v5141_v18 = vcombine.high %v131_v11, %v135_v12  ;;  %v251_v24 = vld [vmem:[%s8145_s2 + $0x690] sm:$0xff]  ;;  %v5140_v58 = vcombine.low %v131_v11, %v135_v12 }
 0x11c   :  { %3523 = vmatprep.subr.bf16.mxu0 %v5061_v22  ;;  %v123_v22 = vld [vmem:[%s8145_s2 + $0x290] sm:$0xff] }
 0x11d   :  { %3563 = vmatpush1.bf16.msra.mxu1 %v5196_v20  ;;  %v5269_v20 = vcombine.high %v259_v13, %v263_v14  ;;  %v255_v25 = vld [vmem:[%s8145_s2 + $0x6b0] sm:$0xff] }
 0x11e   :  { %3564 = vmatprep.subr.bf16.mxu1 %v5189_v23  ;;  %v127_v23 = vld [vmem:[%s8145_s2 + $0x2b0] sm:$0xff]  ;;  %v5260_v37 = vcombine.low %v251_v24, %v255_v25 }
 0x11f   :  { %3524 = vmatpush1.bf16.msra.mxu0 %v5060_v28  ;;  %v5133_v28 = vcombine.high %v123_v22, %v127_v23  ;;  %v243_v33 = vld [vmem:[%s8145_s2 + $0x650] sm:$0xff]  ;;  %v5132_v35 = vcombine.low %v123_v22, %v127_v23 }
 0x120   :  { %3525 = vmatprep.subr.bf16.mxu0 %v5053_v31  ;;  %v115_v31 = vld [vmem:[%s8145_s2 + $0x250] sm:$0xff] }
 0x121   :  { %3565 = vmatpush1.bf16.msra.mxu1 %v5188_v30  ;;  %v5261_v30 = vcombine.high %v251_v24, %v255_v25  ;;  %v247_v34 = vld [vmem:[%s8145_s2 + $0x670] sm:$0xff] }
 0x122   :  { %3566 = vmatprep.subr.bf16.mxu1 %v5181_v32  ;;  %v119_v32 = vld [vmem:[%s8145_s2 + $0x270] sm:$0xff]  ;;  %v5252_v46 = vcombine.low %v243_v33, %v247_v34 }
 0x123   :  { %3526 = vmatpush1.bf16.msra.mxu0 %v5052_v39  ;;  %v5125_v39 = vcombine.high %v115_v31, %v119_v32  ;;  %v235_v43 = vld [vmem:[%s8145_s2 + $0x610] sm:$0xff]  ;;  %v5124_v53 = vcombine.low %v115_v31, %v119_v32 }
 0x124   :  { %3527 = vmatprep.subr.bf16.mxu0 %v5173_v42  ;;  %v107_v42 = vld [vmem:[%s8145_s2 + $0x210] sm:$0xff] }
 0x125   :  { %3567 = vmatpush1.bf16.msra.mxu1 %v5180_v41  ;;  %v5253_v41 = vcombine.high %v243_v33, %v247_v34  ;;  %v239_v44 = vld [vmem:[%s8145_s2 + $0x630] sm:$0xff] }
 0x126   :  { %3568 = vmatprep.subr.bf16.mxu1 %v5301_v19  ;;  %v111_v19 = vld [vmem:[%s8145_s2 + $0x230] sm:$0xff]  ;;  %v5244_v55 = vcombine.low %v235_v43, %v239_v44 }
 0x127   :  { %3528 = vmatpush2.bf16.msra.mxu0 %v5172_v47  ;;  %v5117_v47 = vcombine.high %v107_v42, %v111_v19  ;;  %v483_v51 = vld [vmem:[%s8145_s2 + $0xdd0] sm:$0xff]  ;;  %v5116_v54 = vcombine.low %v107_v42, %v111_v19 }
 0x128   :  { %3529 = vmatprep.subr.bf16.mxu0 %v5165_v49  ;;  %v355_v49 = vld [vmem:[%s8145_s2 + $0x9d0] sm:$0xff] }
 0x129   :  { %3569 = vmatpush2.bf16.msra.mxu1 %v5300_v48  ;;  %v5245_v48 = vcombine.high %v235_v43, %v239_v44  ;;  %v487_v52 = vld [vmem:[%s8145_s2 + $0xdf0] sm:$0xff] }
 0x12a   :  { %3570 = vmatprep.subr.bf16.mxu1 %v5293_v50  ;;  %v359_v50 = vld [vmem:[%s8145_s2 + $0x9f0] sm:$0xff]  ;;  %v5492_v3 = vcombine.low %v483_v51, %v487_v52 }
 0x12b   :  { %3530 = vmatpush2.bf16.msra.mxu0 %v5164_v56  ;;  %v5365_v56 = vcombine.high %v355_v49, %v359_v50  ;;  %v475_v0 = vld [vmem:[%s8145_s2 + $0xd90] sm:$0xff]  ;;  %v5364_v2 = vcombine.low %v355_v49, %v359_v50 }
 0x12c   :  { %3531 = vmatprep.subr.bf16.mxu0 %v5157_v62  ;;  %v347_v62 = vld [vmem:[%s8145_s2 + $0x990] sm:$0xff] }
 0x12d   :  { %3571 = vmatpush2.bf16.msra.mxu1 %v5292_v60  ;;  %v5493_v60 = vcombine.high %v483_v51, %v487_v52  ;;  %v479_v1 = vld [vmem:[%s8145_s2 + $0xdb0] sm:$0xff] }
 0x12e   :  { %3572 = vmatprep.subr.bf16.mxu1 %v5285_v63  ;;  %v351_v63 = vld [vmem:[%s8145_s2 + $0x9b0] sm:$0xff] }
 0x12f   :  { %3532 = vmatpush2.bf16.msra.mxu0 %v5156_v4  ;;  %v5357_v4 = vcombine.high %v347_v62, %v351_v63  ;;  %v467_v12 = vld [vmem:[%s8145_s2 + $0xd50] sm:$0xff] }
 0x130   :  { %3533 = vmatprep.subr.bf16.mxu0 %v5149_v8  ;;  %v339_v8 = vld [vmem:[%s8145_s2 + $0x950] sm:$0xff] }
 0x131   :  { %3573 = vmatpush2.bf16.msra.mxu1 %v5284_v6  ;;  %v5485_v6 = vcombine.high %v475_v0, %v479_v1  ;;  %v471_v13 = vld [vmem:[%s8145_s2 + $0xd70] sm:$0xff] }
 0x132   :  { %3574 = vmatprep.subr.bf16.mxu1 %v5277_v10  ;;  %v343_v10 = vld [vmem:[%s8145_s2 + $0x970] sm:$0xff] }
 0x133   :  { %3534 = vmatpush2.bf16.msra.mxu0 %v5148_v15  ;;  %v5349_v22 = vcombine.high %v339_v8, %v343_v10  ;;  %v5348_v32 = vcombine.low %v339_v8, %v343_v10  ;;  %v327_v42 = vld [vmem:[%s8145_s2 + $0x8f0] sm:$0xff] }
 0x134   :  { %3535 = vmatprep.subr.bf16.mxu0 %v5141_v18  ;;  %v451_v43 = vld [vmem:[%s8145_s2 + $0xcd0] sm:$0xff] }
 0x135   :  { %3575 = vmatpush2.bf16.msra.mxu1 %v5276_v17  ;;  %v5356_v17 = vcombine.low %v347_v62, %v351_v63  ;;  %v455_v44 = vld [vmem:[%s8145_s2 + $0xcf0] sm:$0xff] }
 0x136   :  { %3576 = vmatprep.subr.bf16.mxu1 %v5269_v20  ;;  %v5484_v20 = vcombine.low %v475_v0, %v479_v1  ;;  %v315_v49 = vld [vmem:[%s8145_s2 + $0x890] sm:$0xff] }
 0x137   :  { %3536 = vmatpush2.bf16.msra.mxu0 %v5140_v58  ;;  %v5477_v58 = vcombine.high %v467_v12, %v471_v13  ;;  %v319_v50 = vld [vmem:[%s8145_s2 + $0x8b0] sm:$0xff] }
 0x138   :  { %3537 = vmatprep.subr.bf16.mxu0 %v5133_v28  ;;  %v443_v51 = vld [vmem:[%s8145_s2 + $0xc90] sm:$0xff] }
 0x139   :  { %3577 = vmatpush2.bf16.msra.mxu1 %v5268_v27  ;;  %v335_v27 = vld [vmem:[%s8145_s2 + $0x930] sm:$0xff] }
 0x13a   :  { %3578 = vmatprep.subr.bf16.mxu1 %v5261_v30  ;;  %v463_v30 = vld [vmem:[%s8145_s2 + $0xd30] sm:$0xff] }
 0x13b   :  { %3538 = vmatpush2.bf16.msra.mxu0 %v5132_v35  ;;  %v5476_v35 = vcombine.low %v467_v12, %v471_v13  ;;  %v447_v52 = vld [vmem:[%s8145_s2 + $0xcb0] sm:$0xff] }
 0x13c   :  { %3539 = vmatprep.subr.bf16.mxu0 %v5125_v39  ;;  %v307_v62 = vld [vmem:[%s8145_s2 + $0x850] sm:$0xff] }
 0x13d   :  { %3579 = vmatpush2.bf16.msra.mxu1 %v5260_v37  ;;  %v311_v63 = vld [vmem:[%s8145_s2 + $0x870] sm:$0xff] }
 0x13e   :  { %3580 = vmatprep.subr.bf16.mxu1 %v5253_v41  ;;  %v323_v41 = vld [vmem:[%s8145_s2 + $0x8d0] sm:$0xff]  ;;  %v5316_v13 = vcombine.low %v307_v62, %v311_v63 }
 0x13f   :  { %3540 = vmatpush2.bf16.msra.mxu0 %v5124_v53  ;;  %v435_v0 = vld [vmem:[%s8145_s2 + $0xc50] sm:$0xff] }
 0x140   :  { %3541 = vmatprep.subr.bf16.mxu0 %v5117_v47  ;;  %v5333_v47 = vcombine.high %v323_v41, %v327_v42  ;;  %v439_v1 = vld [vmem:[%s8145_s2 + $0xc70] sm:$0xff] }
 0x141   :  { %3581 = vmatpush2.bf16.msra.mxu1 %v5252_v46  ;;  %v299_v8 = vld [vmem:[%s8145_s2 + $0x810] sm:$0xff] }
 0x142   :  { %3582 = vmatprep.subr.bf16.mxu1 %v5245_v48  ;;  %v5461_v48 = vcombine.high %v451_v43, %v455_v44  ;;  %v303_v10 = vld [vmem:[%s8145_s2 + $0x830] sm:$0xff] }
 0x143   :  { %3542 = vmatpush2.bf16.msra.mxu0 %v5116_v54  ;;  %v5332_v54 = vcombine.low %v323_v41, %v327_v42  ;;  %v431_v12 = vld [vmem:[%s8145_s2 + $0xc30] sm:$0xff] }
 0x144   :  { %3593 = vmatprep.subr.bf16.mxu0 %v5365_v56  ;;  %v5325_v56 = vcombine.high %v315_v49, %v319_v50  ;;  %v407_v41 = vld [vmem:[%s8145_s2 + $0xb70] sm:$0xff] }
 0x145   :  { %3583 = vmatpush2.bf16.msra.mxu1 %v5244_v55  ;;  %v5460_v55 = vcombine.low %v451_v43, %v455_v44  ;;  %v531_v42 = vld [vmem:[%s8145_s2 + $0xf50] sm:$0xff] }
 0x146   :  { %3634 = vmatprep.subr.bf16.mxu1 %v5493_v60  ;;  %v3299_v11 = vpop.f32.mrf.mxu0  ;;  %3544 = vmatmul.mubr.bf16.vlgmr.msra.gmra.mxu0 %v6232_v16  ;;  %v5453_v60 = vcombine.high %v443_v51, %v447_v52 }
 0x147   :  { %v3300_v14 = vadd.f32 %v3299_v11, %v6887_v38  ;;  %3594 = vmatpush1.bf16.msra.mxu0 %v5364_v2  ;;  %v331_v38 = vld [vmem:[%s8145_s2 + $0x910] sm:$0xff]  ;;  %3625 = vmatprep.mubr.bf16.mxu0 %v6262_v26  ;;  %v5324_v2 = vcombine.low %v315_v49, %v319_v50 }
 0x148   :  { %v3340_v15 = vpop.f32.mrf.mxu1  ;;  %3585 = vmatmul.mubr.bf16.vlgmr.msra.gmra.mxu1 %v6247_v21  ;;  %v3301_v18 = vpop.f32.mrf.mxu0  ;;  %3595 = vmatprep.subr.bf16.mxu0 %v5357_v4  ;;  %v5341_v37 = vcombine.high %v331_v38, %v335_v27  ;;  %v5340_v53 = vcombine.low %v331_v38, %v335_v27  ;;  %v5317_v4 = vcombine.high %v307_v62, %v311_v63  ;;  %v427_v11 = vld [vmem:[%s8145_s2 + $0xc10] sm:$0xff] }
 0x149   :  { %3635 = vmatpush1.bf16.msra.mxu1 %v5492_v3  ;;  %v3302_v23 = vadd.f32 %v3301_v18, %v6903_v45  ;;  %v7089_v24 = vadd.f32 %v3340_v15, %v3300_v14  ;;  %v459_v45 = vld [vmem:[%s8145_s2 + $0xd10] sm:$0xff]  ;;  %3666 = vmatprep.mubr.bf16.mxu1 %v6273_v29  ;;  %v5452_v3 = vcombine.low %v443_v51, %v447_v52 }
 0x14a   :  { %v3342_v25 = vpop.f32.mrf.mxu1  ;;  %3636 = vmatprep.subr.bf16.mxu1 %v5485_v6  ;;  %v3303_v28 = vpop.f32.mrf.mxu0  ;;  %v5469_v39 = vcombine.high %v459_v45, %v463_v30  ;;  %v5468_v46 = vcombine.low %v459_v45, %v463_v30  ;;  %v5445_v6 = vcombine.high %v435_v0, %v439_v1  ;;  %v5444_v14 = vcombine.low %v435_v0, %v439_v1  ;;  %v419_v18 = vld [vmem:[%s8145_s2 + $0xbd0] sm:$0xff] }
 0x14b   :  { %v7105_v31 = vadd.f32 %v3342_v25, %v3302_v23  ;;  %3596 = vmatpush1.bf16.msra.mxu0 %v5356_v17  ;;  %v5309_v15 = vcombine.high %v299_v8, %v303_v10  ;;  %v5437_v17 = vcombine.high %v427_v11, %v431_v12  ;;  %v551_v23 = vld [vmem:[%s8145_s2 + $0xff0] sm:$0xff]  ;;  %v5308_v25 = vcombine.low %v299_v8, %v303_v10 }
 0x14c   :  { %v3344_v33 = vpop.f32.mrf.mxu1  ;;  %v3304_v34 = vpop.f32.mrf.mxu0  ;;  %3597 = vmatprep.subr.bf16.mxu0 %v5349_v22  ;;  %v547_v22 = vld [vmem:[%s8145_s2 + $0xfd0] sm:$0xff]  ;;  %vm3839_vm4 = vcmp.ge.f32.partialorder %v7089_v24, 0.0 }
 0x14d   :  { %3637 = vmatpush1.bf16.msra.mxu1 %v5484_v20  ;;  %v423_v20 = vld [vmem:[%s8145_s2 + $0xbf0] sm:$0xff]  ;;  %v5557_v27 = vcombine.high %v547_v22, %v551_v23  ;;  %v5556_v34 = vcombine.low %v547_v22, %v551_v23  ;;  %vm3840_vm1 = vcmp.ge.f32.partialorder %v7105_v31, 0.0 }
 0x14e   :  { %3638 = vmatprep.subr.bf16.mxu1 %v5477_v58  ;;  %v3345_v19 = vpop.f32.mrf.mxu1  ;;  %v5436_v58 = vcombine.low %v427_v11, %v431_v12  ;;  %v5429_v38 = vcombine.high %v419_v18, %v423_v20  ;;  %v411_v28 = vld [vmem:[%s8145_s2 + $0xb90] sm:$0xff]  ;;  %v5428_v33 = vcombine.low %v419_v18, %v423_v20 }
 0x14f   :  { %3598 = vmatpush1.bf16.msra.mxu0 %v5348_v32  ;;  %v415_v45 = vld [vmem:[%s8145_s2 + $0xbb0] sm:$0xff] }
 0x150   :  { %3599 = vmatprep.subr.bf16.mxu0 %v5341_v37  ;;  %v539_v30 = vld [vmem:[%s8145_s2 + $0xf90] sm:$0xff]  ;;  %v5420_v43 = vcombine.low %v411_v28, %v415_v45 }
 0x151   :  { %3639 = vmatpush1.bf16.msra.mxu1 %v5476_v35  ;;  %v543_v32 = vld [vmem:[%s8145_s2 + $0xfb0] sm:$0xff]  ;;  %v5421_v35 = vcombine.high %v411_v28, %v415_v45 }
 0x152   :  { %3640 = vmatprep.subr.bf16.mxu1 %v5469_v39  ;;  %v5549_v37 = vcombine.high %v539_v30, %v543_v32  ;;  %v403_v39 = vld [vmem:[%s8145_s2 + $0xb50] sm:$0xff]  ;;  %v5548_v44 = vcombine.low %v539_v30, %v543_v32 }
 0x153   :  { %3600 = vmatpush1.bf16.msra.mxu0 %v5340_v53  ;;  %v535_v19 = vld [vmem:[%s8145_s2 + $0xf70] sm:$0xff]  ;;  %v5413_v53 = vcombine.high %v403_v39, %v407_v41  ;;  %v5412_v51 = vcombine.low %v403_v39, %v407_v41  ;;  %v228_v39 = vld [vmem:[%s8145_s2 + $0x5d8] sm:$0xff] }
 0x154   :  { %3601 = vmatprep.subr.bf16.mxu0 %v5333_v47  ;;  %v395_v47 = vld [vmem:[%s8145_s2 + $0xb10] sm:$0xff]  ;;  %v5540_v52 = vcombine.low %v531_v42, %v535_v19  ;;  %v232_v41 = vld [vmem:[%s8145_s2 + $0x5f8] sm:$0xff] }
 0x155   :  { %3641 = vmatpush1.bf16.msra.mxu1 %v5468_v46  ;;  %v5541_v46 = vcombine.high %v531_v42, %v535_v19  ;;  %v523_v49 = vld [vmem:[%s8145_s2 + $0xf10] sm:$0xff]  ;;  %v565_v19 = vsub.s32 2, %v6834_v59 }
 0x156   :  { %3642 = vmatprep.subr.bf16.mxu1 %v5461_v48  ;;  %v399_v48 = vld [vmem:[%s8145_s2 + $0xb30] sm:$0xff] }
 0x157   :  { %3602 = vmatpush1.bf16.msra.mxu0 %v5332_v54  ;;  %v527_v50 = vld [vmem:[%s8145_s2 + $0xf30] sm:$0xff]  ;;  %v5405_v54 = vcombine.high %v395_v47, %v399_v48  ;;  %v5404_v0 = vcombine.low %v395_v47, %v399_v48  ;;  %v92_v47 = vld [vmem:[%s8145_s2 + $0x198] sm:$0xff] }
 0x158   :  { %3603 = vmatprep.subr.bf16.mxu0 %v5325_v56  ;;  %v387_v56 = vld [vmem:[%s8145_s2 + $0xad0] sm:$0xff]  ;;  %v5532_v1 = vcombine.low %v523_v49, %v527_v50  ;;  %v96_v48 = vld [vmem:[%s8145_s2 + $0x1b8] sm:$0xff] }
 0x159   :  { %3643 = vmatpush1.bf16.msra.mxu1 %v5460_v55  ;;  %v5533_v55 = vcombine.high %v523_v49, %v527_v50  ;;  %v515_v62 = vld [vmem:[%s8145_s2 + $0xed0] sm:$0xff]  ;;  %v220_v49 = vld [vmem:[%s8145_s2 + $0x598] sm:$0xff] }
 0x15a   :  { %3644 = vmatprep.subr.bf16.mxu1 %v5453_v60  ;;  %v391_v60 = vld [vmem:[%s8145_s2 + $0xaf0] sm:$0xff]  ;;  %v224_v50 = vld [vmem:[%s8145_s2 + $0x5b8] sm:$0xff] }
 0x15b   :  { %3604 = vmatpush1.bf16.msra.mxu0 %v5324_v2  ;;  %v519_v63 = vld [vmem:[%s8145_s2 + $0xef0] sm:$0xff]  ;;  %v5397_v2 = vcombine.high %v387_v56, %v391_v60  ;;  %v5396_v11 = vcombine.low %v387_v56, %v391_v60  ;;  %v5231_v60 = vcombine.high %v220_v49, %v224_v50 }
 0x15c   :  { %3605 = vmatprep.subr.bf16.mxu0 %v5317_v4  ;;  %v379_v4 = vld [vmem:[%s8145_s2 + $0xa90] sm:$0xff]  ;;  %v5524_v12 = vcombine.low %v515_v62, %v519_v63 }
 0x15d   :  { %3645 = vmatpush1.bf16.msra.mxu1 %v5452_v3  ;;  %v5525_v3 = vcombine.high %v515_v62, %v519_v63  ;;  %v507_v8 = vld [vmem:[%s8145_s2 + $0xe90] sm:$0xff]  ;;  %v84_v62 = vld [vmem:[%s8145_s2 + $0x158] sm:$0xff] }
 0x15e   :  { %3646 = vmatprep.subr.bf16.mxu1 %v5445_v6  ;;  %v383_v6 = vld [vmem:[%s8145_s2 + $0xab0] sm:$0xff]  ;;  %v88_v63 = vld [vmem:[%s8145_s2 + $0x178] sm:$0xff] }
 0x15f   :  { %3606 = vmatpush1.bf16.msra.mxu0 %v5316_v13  ;;  %v511_v10 = vld [vmem:[%s8145_s2 + $0xeb0] sm:$0xff]  ;;  %v5389_v13 = vcombine.high %v379_v4, %v383_v6  ;;  %v5388_v22 = vcombine.low %v379_v4, %v383_v6  ;;  %v5102_v4 = vcombine.low %v92_v47, %v96_v48 }
 0x160   :  { %3607 = vmatprep.subr.bf16.mxu0 %v5309_v15  ;;  %v371_v15 = vld [vmem:[%s8145_s2 + $0xa50] sm:$0xff]  ;;  %v5516_v23 = vcombine.low %v507_v8, %v511_v10 }
 0x161   :  { %3647 = vmatpush1.bf16.msra.mxu1 %v5444_v14  ;;  %v5517_v14 = vcombine.high %v507_v8, %v511_v10  ;;  %v499_v18 = vld [vmem:[%s8145_s2 + $0xe50] sm:$0xff]  ;;  %v5230_v8 = vcombine.low %v220_v49, %v224_v50  ;;  %v5095_v10 = vcombine.high %v84_v62, %v88_v63  ;;  %v180_v49 = vld [vmem:[%s8145_s2 + $0x458] sm:$0xff] }
 0x162   :  { %3648 = vmatprep.subr.bf16.mxu1 %v5437_v17  ;;  %v375_v17 = vld [vmem:[%s8145_s2 + $0xa70] sm:$0xff]  ;;  %v184_v50 = vld [vmem:[%s8145_s2 + $0x478] sm:$0xff] }
 0x163   :  { %3608 = vmatpush1.bf16.msra.mxu0 %v5308_v25  ;;  %v503_v20 = vld [vmem:[%s8145_s2 + $0xe70] sm:$0xff]  ;;  %v5381_v25 = vcombine.high %v371_v15, %v375_v17  ;;  %v5380_v30 = vcombine.low %v371_v15, %v375_v17  ;;  %v76_v15 = vld [vmem:[%s8145_s2 + $0x118] sm:$0xff] }
 0x164   :  { %3609 = vmatprep.subr.bf16.mxu0 %v5429_v38  ;;  %v363_v38 = vld [vmem:[%s8145_s2 + $0xa10] sm:$0xff]  ;;  %v5508_v32 = vcombine.low %v499_v18, %v503_v20  ;;  %v80_v17 = vld [vmem:[%s8145_s2 + $0x138] sm:$0xff] }
 0x165   :  { %3649 = vmatpush1.bf16.msra.mxu1 %v5436_v58  ;;  %v5509_v58 = vcombine.high %v499_v18, %v503_v20  ;;  %v491_v28 = vld [vmem:[%s8145_s2 + $0xe10] sm:$0xff]  ;;  %v204_v20 = vld [vmem:[%s8145_s2 + $0x518] sm:$0xff] }
 0x166   :  { %3650 = vmatprep.subr.bf16.mxu1 %v5557_v27  ;;  %v367_v27 = vld [vmem:[%s8145_s2 + $0xa30] sm:$0xff] }
 0x167   :  { %3610 = vmatpush2.bf16.msra.mxu0 %v5428_v33  ;;  %v495_v45 = vld [vmem:[%s8145_s2 + $0xe30] sm:$0xff]  ;;  %v5373_v33 = vcombine.high %v363_v38, %v367_v27  ;;  %v5372_v42 = vcombine.low %v363_v38, %v367_v27 }
 0x168   :  { %3611 = vmatprep.subr.bf16.mxu0 %v5421_v35  ;;  %v100_v35 = vld [vmem:[%s8145_s2 + $0x1d8] sm:$0xff] }
 0x169   :  { %3651 = vmatpush2.bf16.msra.mxu1 %v5556_v34  ;;  %v5501_v34 = vcombine.high %v491_v28, %v495_v45 }
 0x16a   :  { %3652 = vmatprep.subr.bf16.mxu1 %v5549_v37  ;;  %v104_v37 = vld [vmem:[%s8145_s2 + $0x1f8] sm:$0xff] }
 0x16b   :  { %3612 = vmatpush2.bf16.msra.mxu0 %v5420_v43  ;;  %v5500_v43 = vcombine.low %v491_v28, %v495_v45  ;;  %v5087_v45 = vcombine.high %v76_v15, %v80_v17 }
 0x16c   :  { %3613 = vmatprep.subr.bf16.mxu0 %v5413_v53  ;;  %v569_v53 = vsub.s32 3, %v6834_v59 }
 0x16d   :  { %3653 = vmatpush2.bf16.msra.mxu1 %v5548_v44  ;;  %v5111_v44 = vcombine.high %v100_v35, %v104_v37 }
 0x16e   :  { %3654 = vmatprep.subr.bf16.mxu1 %v5541_v46  ;;  %v5239_v46 = vcombine.high %v228_v39, %v232_v41  ;;  %v570_v56 = vrot.slane %v6852_v7, %v569_v53  ;;  %v52_v53 = vld [vmem:[%s8145_s2 + $0x58] sm:$0xff] }
 0x16f   :  { %3614 = vmatpush2.bf16.msra.mxu0 %v5412_v51  ;;  %v566_v51 = vrot.slane %v6852_v7, %v565_v19  ;;  %v216_v7 = vld [vmem:[%s8145_s2 + $0x578] sm:$0xff] }
 0x170   :  { %3615 = vmatprep.subr.bf16.mxu0 %v5405_v54  ;;  %v5238_v54 = vcombine.low %v228_v39, %v232_v41  ;;  %v192_v19 = vld [vmem:[%s8145_s2 + $0x4b8] sm:$0xff] }
 0x171   :  { %3655 = vmatpush2.bf16.msra.mxu1 %v5540_v52  ;;  %v5110_v52 = vcombine.low %v100_v35, %v104_v37  ;;  %v60_v35 = vld [vmem:[%s8145_s2 + $0x98] sm:$0xff] }
 0x172   :  { %3656 = vmatprep.subr.bf16.mxu1 %v5533_v55  ;;  %v5103_v55 = vcombine.high %v92_v47, %v96_v48  ;;  %v64_v37 = vld [vmem:[%s8145_s2 + $0xb8] sm:$0xff] }
 0x173   :  { %3616 = vmatpush2.bf16.msra.mxu0 %v5404_v0  ;;  %v5071_v48 = vcombine.high %v60_v35, %v64_v37 }
 0x174   :  { %3617 = vmatprep.subr.bf16.mxu0 %v5397_v2 }
 0x175   :  { %3657 = vmatpush2.bf16.msra.mxu1 %v5532_v1  ;;  %v212_v1 = vld [vmem:[%s8145_s2 + $0x558] sm:$0xff] }
 0x176   :  { %3658 = vmatprep.subr.bf16.mxu1 %v5525_v3  ;;  %v5222_v28 = vcombine.low %v212_v1, %v216_v7 }
 0x177   :  { %3618 = vmatpush2.bf16.msra.mxu0 %v5396_v11 }
 0x178   :  { %3619 = vmatprep.subr.bf16.mxu0 %v5389_v13 }
 0x179   :  { %3659 = vmatpush2.bf16.msra.mxu1 %v5524_v12 }
 0x17a   :  { %3660 = vmatprep.subr.bf16.mxu1 %v5517_v14  ;;  %v5223_v14 = vcombine.high %v212_v1, %v216_v7  ;;  %v164_v7 = vld [vmem:[%s8145_s2 + $0x3d8] sm:$0xff] }
 0x17b   :  { %3620 = vmatpush2.bf16.msra.mxu0 %v5388_v22  ;;  %v208_v22 = vld [vmem:[%s8145_s2 + $0x538] sm:$0xff] }
 0x17c   :  { %3621 = vmatprep.subr.bf16.mxu0 %v5381_v25  ;;  %v5094_v25 = vcombine.low %v84_v62, %v88_v63  ;;  %v5214_v39 = vcombine.low %v204_v20, %v208_v22  ;;  %v172_v62 = vld [vmem:[%s8145_s2 + $0x418] sm:$0xff] }
 0x17d   :  { %3661 = vmatpush2.bf16.msra.mxu1 %v5516_v23  ;;  %v176_v63 = vld [vmem:[%s8145_s2 + $0x438] sm:$0xff] }
 0x17e   :  { %3662 = vmatprep.subr.bf16.mxu1 %v5509_v58  ;;  %v68_v58 = vld [vmem:[%s8145_s2 + $0xd8] sm:$0xff] }
 0x17f   :  { %3622 = vmatpush2.bf16.msra.mxu0 %v5380_v30  ;;  %v5215_v30 = vcombine.high %v204_v20, %v208_v22  ;;  %v288_v20 = vld [vmem:[%s8145_s2 + $0x7b8] sm:$0xff] }
 0x180   :  { %3623 = vmatprep.subr.bf16.mxu0 %v5373_v33 }
 0x181   :  { %3663 = vmatpush2.bf16.msra.mxu1 %v5508_v32  ;;  %v200_v32 = vld [vmem:[%s8145_s2 + $0x4f8] sm:$0xff] }
 0x182   :  { %3664 = vmatprep.subr.bf16.mxu1 %v5501_v34  ;;  %v5086_v34 = vcombine.low %v76_v15, %v80_v17  ;;  %v5182_v15 = vcombine.low %v172_v62, %v176_v63 }
 0x183   :  { %3624 = vmatpush2.bf16.msra.mxu0 %v5372_v42  ;;  %v188_v42 = vld [vmem:[%s8145_s2 + $0x498] sm:$0xff] }
 0x184   :  { %3675 = vmatprep.subr.bf16.mxu0 %v5111_v44 }
 0x185   :  { %3665 = vmatpush2.bf16.msra.mxu1 %v5500_v43 }
 0x186   :  { %3716 = vmatprep.subr.bf16.mxu1 %v5239_v46  ;;  %v3381_v0 = vpop.f32.mrf.mxu0  ;;  %3626 = vmatmul.mubr.bf16.vlgmr.msra.gmra.mxu0 %v6454_v36  ;;  %v56_v46 = vld [vmem:[%s8145_s2 + $0x78] sm:$0xff] }
 0x187   :  { %v3382_v2 = vadd.f32 %v3381_v0, %v566_v51  ;;  %3676 = vmatpush1.bf16.msra.mxu0 %v5110_v52  ;;  %3707 = vmatprep.mubr.bf16.mxu0 %v6097_v57  ;;  %v72_v57 = vld [vmem:[%s8145_s2 + $0xf8] sm:$0xff]  ;;  %v5199_v51 = vcombine.high %v188_v42, %v192_v19  ;;  %v5070_v52 = vcombine.low %v60_v35, %v64_v37 }
 0x188   :  { %v3422_v3 = vpop.f32.mrf.mxu1  ;;  %3667 = vmatmul.mubr.bf16.vlgmr.msra.gmra.mxu1 %v6464_v40  ;;  %v3383_v6 = vpop.f32.mrf.mxu0  ;;  %3677 = vmatprep.subr.bf16.mxu0 %v5103_v55  ;;  %v5079_v41 = vcombine.high %v68_v58, %v72_v57  ;;  %v5078_v44 = vcombine.low %v68_v58, %v72_v57  ;;  %v48_v55 = vld [vmem:[%s8145_s2 + $0x38] sm:$0xff]  ;;  %v5191_v0 = vcombine.high %v180_v49, %v184_v50 }
 0x189   :  { %3717 = vmatpush1.bf16.msra.mxu1 %v5238_v54  ;;  %v3384_v11 = vadd.f32 %v3383_v6, %v570_v56  ;;  %v7293_v12 = vadd.f32 %v3422_v3, %v3382_v2  ;;  %3748 = vmatprep.mubr.bf16.mxu1 %v6112_v61  ;;  %v196_v61 = vld [vmem:[%s8145_s2 + $0x4d8] sm:$0xff]  ;;  %v5198_v56 = vcombine.low %v188_v42, %v192_v19 }
 0x18a   :  { %v3424_v13 = vpop.f32.mrf.mxu1  ;;  %3718 = vmatprep.subr.bf16.mxu1 %v5231_v60  ;;  %v3385_v18 = vpop.f32.mrf.mxu0  ;;  %v5207_v43 = vcombine.high %v196_v61, %v200_v32  ;;  %v5206_v47 = vcombine.low %v196_v61, %v200_v32  ;;  %v44_v54 = vld [vmem:[%s8145_s2 + $0x18] sm:$0xff]  ;;  %v5063_v60 = vcombine.high %v52_v53, %v56_v46  ;;  %v5062_v1 = vcombine.low %v52_v53, %v56_v46 }
 0x18b   :  { %v7309_v23 = vadd.f32 %v3424_v13, %v3384_v11  ;;  %3678 = vmatpush1.bf16.msra.mxu0 %v5102_v4  ;;  %v168_v2 = vld [vmem:[%s8145_s2 + $0x3f8] sm:$0xff]  ;;  %v5190_v3 = vcombine.low %v180_v49, %v184_v50  ;;  %v5055_v4 = vcombine.high %v44_v54, %v48_v55  ;;  %v5054_v11 = vcombine.low %v44_v54, %v48_v55 }
 0x18c   :  { %v3426_v38 = vpop.f32.mrf.mxu1  ;;  %v3386_v27 = vpop.f32.mrf.mxu0  ;;  %3679 = vmatprep.subr.bf16.mxu0 %v5095_v10  ;;  %v292_v6 = vld [vmem:[%s8145_s2 + $0x7d8] sm:$0xff]  ;;  %v5183_v10 = vcombine.high %v172_v62, %v176_v63  ;;  %v5175_v17 = vcombine.high %v164_v7, %v168_v2 }
 0x18d   :  { %3719 = vmatpush1.bf16.msra.mxu1 %v5230_v8  ;;  %v296_v8 = vld [vmem:[%s8145_s2 + $0x7f8] sm:$0xff] }
 0x18e   :  { %3720 = vmatprep.subr.bf16.mxu1 %v5223_v14  ;;  %v3427_v33 = vpop.f32.mrf.mxu1  ;;  %v156_v13 = vld [vmem:[%s8145_s2 + $0x398] sm:$0xff]  ;;  %v5303_v22 = vcombine.high %v292_v6, %v296_v8  ;;  %v5302_v38 = vcombine.low %v292_v6, %v296_v8 }
 0x18f   :  { %3680 = vmatpush1.bf16.msra.mxu0 %v5094_v25  ;;  %v160_v14 = vld [vmem:[%s8145_s2 + $0x3b8] sm:$0xff]  ;;  %v5174_v25 = vcombine.low %v164_v7, %v168_v2 }
 0x190   :  { %3681 = vmatprep.subr.bf16.mxu0 %v5087_v45  ;;  %v284_v18 = vld [vmem:[%s8145_s2 + $0x798] sm:$0xff]  ;;  %v5167_v27 = vcombine.high %v156_v13, %v160_v14 }
 0x191   :  { %3721 = vmatpush1.bf16.msra.mxu1 %v5222_v28  ;;  %v148_v58 = vld [vmem:[%s8145_s2 + $0x358] sm:$0xff]  ;;  %v5295_v61 = vcombine.high %v284_v18, %v288_v20 }
 0x192   :  { %3722 = vmatprep.subr.bf16.mxu1 %v5215_v30  ;;  %v152_v57 = vld [vmem:[%s8145_s2 + $0x378] sm:$0xff]  ;;  %v5166_v30 = vcombine.low %v156_v13, %v160_v14 }
 0x193   :  { %3682 = vmatpush1.bf16.msra.mxu0 %v5086_v34  ;;  %v276_v28 = vld [vmem:[%s8145_s2 + $0x758] sm:$0xff]  ;;  %v5294_v34 = vcombine.low %v284_v18, %v288_v20  ;;  %v5159_v35 = vcombine.high %v148_v58, %v152_v57  ;;  %v5158_v42 = vcombine.low %v148_v58, %v152_v57 }
 0x194   :  { %3683 = vmatprep.subr.bf16.mxu0 %v5079_v41  ;;  %v280_v45 = vld [vmem:[%s8145_s2 + $0x778] sm:$0xff] }
 0x195   :  { %3723 = vmatpush1.bf16.msra.mxu1 %v5214_v39  ;;  %v140_v32 = vld [vmem:[%s8145_s2 + $0x318] sm:$0xff]  ;;  %v5287_v41 = vcombine.high %v276_v28, %v280_v45 }
 0x196   :  { %3724 = vmatprep.subr.bf16.mxu1 %v5207_v43  ;;  %v144_v33 = vld [vmem:[%s8145_s2 + $0x338] sm:$0xff] }
 0x197   :  { %3684 = vmatpush1.bf16.msra.mxu0 %v5078_v44  ;;  %v268_v37 = vld [vmem:[%s8145_s2 + $0x718] sm:$0xff]  ;;  %v5286_v44 = vcombine.low %v276_v28, %v280_v45  ;;  %v5151_v53 = vcombine.high %v140_v32, %v144_v33  ;;  %v5150_v49 = vcombine.low %v140_v32, %v144_v33 }
 0x198   :  { %3685 = vmatprep.subr.bf16.mxu0 %v5071_v48  ;;  %v272_v39 = vld [vmem:[%s8145_s2 + $0x738] sm:$0xff] }
 0x199   :  { %3725 = vmatpush1.bf16.msra.mxu1 %v5206_v47  ;;  %v132_v19 = vld [vmem:[%s8145_s2 + $0x2d8] sm:$0xff]  ;;  %v5279_v48 = vcombine.high %v268_v37, %v272_v39 }
 0x19a   :  { %3726 = vmatprep.subr.bf16.mxu1 %v5199_v51  ;;  %v136_v43 = vld [vmem:[%s8145_s2 + $0x2f8] sm:$0xff] }
 0x19b   :  { %3686 = vmatpush1.bf16.msra.mxu0 %v5070_v52  ;;  %v260_v46 = vld [vmem:[%s8145_s2 + $0x6d8] sm:$0xff]  ;;  %v5278_v52 = vcombine.low %v268_v37, %v272_v39  ;;  %v5143_v54 = vcombine.high %v132_v19, %v136_v43  ;;  %v5142_v62 = vcombine.low %v132_v19, %v136_v43 }
 0x19c   :  { %3687 = vmatprep.subr.bf16.mxu0 %v5063_v60  ;;  %v264_v47 = vld [vmem:[%s8145_s2 + $0x6f8] sm:$0xff] }
 0x19d   :  { %3727 = vmatpush1.bf16.msra.mxu1 %v5198_v56  ;;  %v124_v50 = vld [vmem:[%s8145_s2 + $0x298] sm:$0xff]  ;;  %v5271_v60 = vcombine.high %v260_v46, %v264_v47 }
 0x19e   :  { %3728 = vmatprep.subr.bf16.mxu1 %v5191_v0  ;;  %v128_v51 = vld [vmem:[%s8145_s2 + $0x2b8] sm:$0xff] }
 0x19f   :  { %3688 = vmatpush1.bf16.msra.mxu0 %v5062_v1  ;;  %v252_v55 = vld [vmem:[%s8145_s2 + $0x698] sm:$0xff]  ;;  %v5270_v1 = vcombine.low %v260_v46, %v264_v47  ;;  %v5135_v7 = vcombine.high %v124_v50, %v128_v51  ;;  %v5134_v6 = vcombine.low %v124_v50, %v128_v51 }
 0x1a0   :  { %3689 = vmatprep.subr.bf16.mxu0 %v5055_v4  ;;  %v256_v56 = vld [vmem:[%s8145_s2 + $0x6b8] sm:$0xff] }
 0x1a1   :  { %3729 = vmatpush1.bf16.msra.mxu1 %v5190_v3  ;;  %v116_v63 = vld [vmem:[%s8145_s2 + $0x258] sm:$0xff]  ;;  %v5263_v4 = vcombine.high %v252_v55, %v256_v56 }
 0x1a2   :  { %3730 = vmatprep.subr.bf16.mxu1 %v5183_v10  ;;  %v120_v0 = vld [vmem:[%s8145_s2 + $0x278] sm:$0xff] }
 0x1a3   :  { %3690 = vmatpush1.bf16.msra.mxu0 %v5054_v11  ;;  %v244_v2 = vld [vmem:[%s8145_s2 + $0x658] sm:$0xff]  ;;  %v5262_v11 = vcombine.low %v252_v55, %v256_v56  ;;  %v5127_v13 = vcombine.high %v116_v63, %v120_v0  ;;  %v5126_v18 = vcombine.low %v116_v63, %v120_v0 }
 0x1a4   :  { %3691 = vmatprep.subr.bf16.mxu0 %v5175_v17  ;;  %v248_v3 = vld [vmem:[%s8145_s2 + $0x678] sm:$0xff] }
 0x1a5   :  { %3731 = vmatpush1.bf16.msra.mxu1 %v5182_v15  ;;  %v108_v8 = vld [vmem:[%s8145_s2 + $0x218] sm:$0xff]  ;;  %v5255_v17 = vcombine.high %v244_v2, %v248_v3 }
 0x1a6   :  { %3732 = vmatprep.subr.bf16.mxu1 %v5303_v22  ;;  %v112_v10 = vld [vmem:[%s8145_s2 + $0x238] sm:$0xff] }
 0x1a7   :  { %3692 = vmatpush2.bf16.msra.mxu0 %v5174_v25  ;;  %v236_v14 = vld [vmem:[%s8145_s2 + $0x618] sm:$0xff]  ;;  %v5254_v25 = vcombine.low %v244_v2, %v248_v3  ;;  %v5119_v58 = vcombine.high %v108_v8, %v112_v10  ;;  %v5118_v28 = vcombine.low %v108_v8, %v112_v10 }
 0x1a8   :  { %3693 = vmatprep.subr.bf16.mxu0 %v5167_v27  ;;  %v240_v15 = vld [vmem:[%s8145_s2 + $0x638] sm:$0xff] }
 0x1a9   :  { %3733 = vmatpush2.bf16.msra.mxu1 %v5302_v38  ;;  %v356_v20 = vld [vmem:[%s8145_s2 + $0x9d8] sm:$0xff]  ;;  %v5247_v38 = vcombine.high %v236_v14, %v240_v15  ;;  %v5246_v45 = vcombine.low %v236_v14, %v240_v15 }
 0x1aa   :  { %3734 = vmatprep.subr.bf16.mxu1 %v5295_v61  ;;  %v360_v22 = vld [vmem:[%s8145_s2 + $0x9f8] sm:$0xff] }
 0x1ab   :  { %3694 = vmatpush2.bf16.msra.mxu0 %v5166_v30  ;;  %v484_v57 = vld [vmem:[%s8145_s2 + $0xdd8] sm:$0xff]  ;;  %v5367_v61 = vcombine.high %v356_v20, %v360_v22  ;;  %v5366_v37 = vcombine.low %v356_v20, %v360_v22 }
 0x1ac   :  { %3695 = vmatprep.subr.bf16.mxu0 %v5159_v35  ;;  %v488_v27 = vld [vmem:[%s8145_s2 + $0xdf8] sm:$0xff] }
 0x1ad   :  { %3735 = vmatpush2.bf16.msra.mxu1 %v5294_v34  ;;  %v5495_v30 = vcombine.high %v484_v57, %v488_v27  ;;  %v348_v32 = vld [vmem:[%s8145_s2 + $0x998] sm:$0xff]  ;;  %v5494_v39 = vcombine.low %v484_v57, %v488_v27 }
 0x1ae   :  { %3736 = vmatprep.subr.bf16.mxu1 %v5287_v41  ;;  %v352_v33 = vld [vmem:[%s8145_s2 + $0x9b8] sm:$0xff] }
 0x1af   :  { %3696 = vmatpush2.bf16.msra.mxu0 %v5158_v42  ;;  %v476_v34 = vld [vmem:[%s8145_s2 + $0xd98] sm:$0xff]  ;;  %v5359_v41 = vcombine.high %v348_v32, %v352_v33 }
 0x1b0   :  { %3697 = vmatprep.subr.bf16.mxu0 %v5151_v53  ;;  %v480_v35 = vld [vmem:[%s8145_s2 + $0xdb8] sm:$0xff] }
 0x1b1   :  { %3737 = vmatpush2.bf16.msra.mxu1 %v5286_v44  ;;  %v5487_v42 = vcombine.high %v476_v34, %v480_v35  ;;  %v340_v19 = vld [vmem:[%s8145_s2 + $0x958] sm:$0xff]  ;;  %v5486_v51 = vcombine.low %v476_v34, %v480_v35 }
 0x1b2   :  { %3738 = vmatprep.subr.bf16.mxu1 %v5279_v48  ;;  %v344_v43 = vld [vmem:[%s8145_s2 + $0x978] sm:$0xff] }
 0x1b3   :  { %3698 = vmatpush2.bf16.msra.mxu0 %v5150_v49  ;;  %v468_v53 = vld [vmem:[%s8145_s2 + $0xd58] sm:$0xff]  ;;  %v5358_v49 = vcombine.low %v348_v32, %v352_v33  ;;  %v5350_v0 = vcombine.low %v340_v19, %v344_v43 }
 0x1b4   :  { %3699 = vmatprep.subr.bf16.mxu0 %v5143_v54  ;;  %v472_v46 = vld [vmem:[%s8145_s2 + $0xd78] sm:$0xff] }
 0x1b5   :  { %3739 = vmatpush2.bf16.msra.mxu1 %v5278_v52  ;;  %v5479_v56 = vcombine.high %v468_v53, %v472_v46  ;;  %v452_v8 = vld [vmem:[%s8145_s2 + $0xcd8] sm:$0xff] }
 0x1b6   :  { %3740 = vmatprep.subr.bf16.mxu1 %v5271_v60  ;;  %v456_v10 = vld [vmem:[%s8145_s2 + $0xcf8] sm:$0xff] }
 0x1b7   :  { %3700 = vmatpush2.bf16.msra.mxu0 %v5142_v62  ;;  %v464_v62 = vld [vmem:[%s8145_s2 + $0xd38] sm:$0xff]  ;;  %v5463_v15 = vcombine.high %v452_v8, %v456_v10 }
 0x1b8   :  { %3701 = vmatprep.subr.bf16.mxu0 %v5135_v7  ;;  %v444_v20 = vld [vmem:[%s8145_s2 + $0xc98] sm:$0xff] }
 0x1b9   :  { %3741 = vmatpush2.bf16.msra.mxu1 %v5270_v1  ;;  %v448_v22 = vld [vmem:[%s8145_s2 + $0xcb8] sm:$0xff] }
 0x1ba   :  { %3742 = vmatprep.subr.bf16.mxu1 %v5263_v4  ;;  %v324_v4 = vld [vmem:[%s8145_s2 + $0x8d8] sm:$0xff]  ;;  %v5454_v32 = vcombine.low %v444_v20, %v448_v22 }
 0x1bb   :  { %3702 = vmatpush2.bf16.msra.mxu0 %v5134_v6  ;;  %v308_v27 = vld [vmem:[%s8145_s2 + $0x858] sm:$0xff] }
 0x1bc   :  { %3703 = vmatprep.subr.bf16.mxu0 %v5127_v13  ;;  %v300_v35 = vld [vmem:[%s8145_s2 + $0x818] sm:$0xff] }
 0x1bd   :  { %3743 = vmatpush2.bf16.msra.mxu1 %v5262_v11 }
 0x1be   :  { %3744 = vmatprep.subr.bf16.mxu1 %v5255_v17  ;;  %v316_v17 = vld [vmem:[%s8145_s2 + $0x898] sm:$0xff] }
 0x1bf   :  { %3704 = vmatpush2.bf16.msra.mxu0 %v5126_v18  ;;  %v320_v18 = vld [vmem:[%s8145_s2 + $0x8b8] sm:$0xff] }
 0x1c0   :  { %3705 = vmatprep.subr.bf16.mxu0 %v5119_v58  ;;  %v5462_v58 = vcombine.low %v452_v8, %v456_v10  ;;  %v5327_v57 = vcombine.high %v316_v17, %v320_v18  ;;  %v400_v8 = vld [vmem:[%s8145_s2 + $0xb38] sm:$0xff] }
 0x1c1   :  { %3745 = vmatpush2.bf16.msra.mxu1 %v5254_v25  ;;  %v524_v10 = vld [vmem:[%s8145_s2 + $0xf18] sm:$0xff] }
 0x1c2   :  { %3746 = vmatprep.subr.bf16.mxu1 %v5247_v38  ;;  %v5455_v38 = vcombine.high %v444_v20, %v448_v22  ;;  %v392_v20 = vld [vmem:[%s8145_s2 + $0xaf8] sm:$0xff] }
 0x1c3   :  { %3706 = vmatpush2.bf16.msra.mxu0 %v5118_v28  ;;  %v312_v28 = vld [vmem:[%s8145_s2 + $0x878] sm:$0xff] }
 0x1c4   :  { %3757 = vmatprep.subr.bf16.mxu0 %v5367_v61  ;;  %v440_v61 = vld [vmem:[%s8145_s2 + $0xc78] sm:$0xff]  ;;  %v5319_v33 = vcombine.high %v308_v27, %v312_v28 }
 0x1c5   :  { %3747 = vmatpush2.bf16.msra.mxu1 %v5246_v45  ;;  %v436_v45 = vld [vmem:[%s8145_s2 + $0xc58] sm:$0xff] }
 0x1c6   :  { %3798 = vmatprep.subr.bf16.mxu1 %v5495_v30  ;;  %v3463_v44 = vpop.f32.mrf.mxu0  ;;  %3708 = vmatmul.mubr.bf16.vlgmr.msra.gmra.mxu0 %v6232_v16  ;;  %v5351_v16 = vcombine.high %v340_v19, %v344_v43  ;;  %v5326_v30 = vcombine.low %v316_v17, %v320_v18  ;;  %v5447_v34 = vcombine.high %v436_v45, %v440_v61  ;;  %v388_v18 = vld [vmem:[%s8145_s2 + $0xad8] sm:$0xff] }
 0x1c7   :  { %v3464_v47 = vadd.f32 %v3463_v44, %v7293_v12  ;;  %3758 = vmatpush1.bf16.msra.mxu0 %v5366_v37  ;;  %v332_v12 = vld [vmem:[%s8145_s2 + $0x918] sm:$0xff]  ;;  %3789 = vmatprep.mubr.bf16.mxu0 %v6262_v26  ;;  %v5478_v26 = vcombine.low %v468_v53, %v472_v46  ;;  %v5446_v19 = vcombine.low %v436_v45, %v440_v61 }
 0x1c8   :  { %v3504_v48 = vpop.f32.mrf.mxu1  ;;  %3749 = vmatmul.mubr.bf16.vlgmr.msra.gmra.mxu1 %v6247_v21  ;;  %v3465_v50 = vpop.f32.mrf.mxu0  ;;  %3759 = vmatprep.subr.bf16.mxu0 %v5359_v41  ;;  %v336_v21 = vld [vmem:[%s8145_s2 + $0x938] sm:$0xff] }
 0x1c9   :  { %3799 = vmatpush1.bf16.msra.mxu1 %v5494_v39  ;;  %v3466_v52 = vadd.f32 %v3465_v50, %v7309_v23  ;;  %v7495_v54 = vadd.f32 %v3504_v48, %v3464_v47  ;;  %v460_v23 = vld [vmem:[%s8145_s2 + $0xd18] sm:$0xff]  ;;  %3830 = vmatprep.mubr.bf16.mxu1 %v6273_v29  ;;  %v5343_v2 = vcombine.high %v332_v12, %v336_v21 }
 0x1ca   :  { %v3506_v55 = vpop.f32.mrf.mxu1  ;;  %3800 = vmatprep.subr.bf16.mxu1 %v5487_v42  ;;  %v3467_v60 = vpop.f32.mrf.mxu0  ;;  %v5471_v3 = vcombine.high %v460_v23, %v464_v62  ;;  %v328_v29 = vld [vmem:[%s8145_s2 + $0x8f8] sm:$0xff]  ;;  %v5342_v11 = vcombine.low %v332_v12, %v336_v21  ;;  %v5470_v13 = vcombine.low %v460_v23, %v464_v62  ;;  %v5318_v42 = vcombine.low %v308_v27, %v312_v28 }
 0x1cb   :  { %v7511_v63 = vadd.f32 %v3506_v55, %v3466_v52  ;;  %3760 = vmatpush1.bf16.msra.mxu0 %v5358_v49  ;;  %v5335_v14 = vcombine.high %v324_v4, %v328_v29  ;;  %v5334_v25 = vcombine.low %v324_v4, %v328_v29  ;;  %v304_v37 = vld [vmem:[%s8145_s2 + $0x838] sm:$0xff]  ;;  %vm3841_vm11 = vcmp.ge.f32.partialorder %v7495_v54, 0.0 }
 0x1cc   :  { %v3508_v1 = vpop.f32.mrf.mxu1  ;;  %v3468_v7 = vpop.f32.mrf.mxu0  ;;  %3761 = vmatprep.subr.bf16.mxu0 %v5351_v16  ;;  %v428_v39 = vld [vmem:[%s8145_s2 + $0xc18] sm:$0xff]  ;;  %v5311_v43 = vcombine.high %v300_v35, %v304_v37  ;;  %v5310_v49 = vcombine.low %v300_v35, %v304_v37 }
 0x1cd   :  { %3801 = vmatpush1.bf16.msra.mxu1 %v5486_v51  ;;  %v432_v41 = vld [vmem:[%s8145_s2 + $0xc38] sm:$0xff]  ;;  %vm3842_vm9 = vcmp.ge.f32.partialorder %v7511_v63, 0.0 }
 0x1ce   :  { %3802 = vmatprep.subr.bf16.mxu1 %v5479_v56  ;;  %v3509_v6 = vpop.f32.mrf.mxu1  ;;  %v5439_v44 = vcombine.high %v428_v39, %v432_v41  ;;  %v420_v53 = vld [vmem:[%s8145_s2 + $0xbd8] sm:$0xff]  ;;  %v5438_v50 = vcombine.low %v428_v39, %v432_v41 }
 0x1cf   :  { %3762 = vmatpush1.bf16.msra.mxu0 %v5350_v0  ;;  %v424_v46 = vld [vmem:[%s8145_s2 + $0xbf8] sm:$0xff] }
 0x1d0   :  { %3763 = vmatprep.subr.bf16.mxu0 %v5343_v2  ;;  %v548_v47 = vld [vmem:[%s8145_s2 + $0xfd8] sm:$0xff]  ;;  %v5431_v51 = vcombine.high %v420_v53, %v424_v46  ;;  %v5430_v21 = vcombine.low %v420_v53, %v424_v46 }
 0x1d1   :  { %3803 = vmatpush1.bf16.msra.mxu1 %v5478_v26  ;;  %v552_v48 = vld [vmem:[%s8145_s2 + $0xff8] sm:$0xff] }
 0x1d2   :  { %3804 = vmatprep.subr.bf16.mxu1 %v5471_v3  ;;  %v5559_v16 = vcombine.high %v548_v47, %v552_v48  ;;  %v412_v52 = vld [vmem:[%s8145_s2 + $0xb98] sm:$0xff]  ;;  %v5558_v60 = vcombine.low %v548_v47, %v552_v48 }
 0x1d3   :  { %3764 = vmatpush1.bf16.msra.mxu0 %v5342_v11  ;;  %v416_v55 = vld [vmem:[%s8145_s2 + $0xbb8] sm:$0xff] }
 0x1d4   :  { %3765 = vmatprep.subr.bf16.mxu0 %v5335_v14  ;;  %v540_v56 = vld [vmem:[%s8145_s2 + $0xf98] sm:$0xff]  ;;  %v5423_v23 = vcombine.high %v412_v52, %v416_v55  ;;  %v5422_v2 = vcombine.low %v412_v52, %v416_v55 }
 0x1d5   :  { %3805 = vmatpush1.bf16.msra.mxu1 %v5470_v13  ;;  %v544_v12 = vld [vmem:[%s8145_s2 + $0xfb8] sm:$0xff] }
 0x1d6   :  { %3806 = vmatprep.subr.bf16.mxu1 %v5463_v15  ;;  %v5551_v62 = vcombine.high %v540_v56, %v544_v12  ;;  %v404_v0 = vld [vmem:[%s8145_s2 + $0xb58] sm:$0xff]  ;;  %v5550_v3 = vcombine.low %v540_v56, %v544_v12  ;;  %v573_v56 = vsub.s32 4, %v6834_v59 }
 0x1d7   :  { %3766 = vmatpush1.bf16.msra.mxu0 %v5334_v25  ;;  %v408_v1 = vld [vmem:[%s8145_s2 + $0xb78] sm:$0xff] }
 0x1d8   :  { %3767 = vmatprep.subr.bf16.mxu0 %v5327_v57  ;;  %v532_v7 = vld [vmem:[%s8145_s2 + $0xf58] sm:$0xff]  ;;  %v5415_v4 = vcombine.high %v404_v0, %v408_v1  ;;  %v5414_v13 = vcombine.low %v404_v0, %v408_v1 }
 0x1d9   :  { %3807 = vmatpush1.bf16.msra.mxu1 %v5462_v58  ;;  %v536_v26 = vld [vmem:[%s8145_s2 + $0xf78] sm:$0xff] }
 0x1da   :  { %3808 = vmatprep.subr.bf16.mxu1 %v5455_v38  ;;  %v5543_v29 = vcombine.high %v532_v7, %v536_v26  ;;  %v396_v6 = vld [vmem:[%s8145_s2 + $0xb18] sm:$0xff]  ;;  %v5542_v14 = vcombine.low %v532_v7, %v536_v26  ;;  %v5399_v38 = vcombine.high %v388_v18, %v392_v20  ;;  %v3848_v7 = vmul.f32 0.01, %v7105_v31 }
 0x1db   :  { %3768 = vmatpush1.bf16.msra.mxu0 %v5326_v30  ;;  %v528_v11 = vld [vmem:[%s8145_s2 + $0xf38] sm:$0xff]  ;;  %v5407_v15 = vcombine.high %v396_v6, %v400_v8  ;;  %v5406_v58 = vcombine.low %v396_v6, %v400_v8 }
 0x1dc   :  { %3769 = vmatprep.subr.bf16.mxu0 %v5319_v33  ;;  %v5535_v17 = vcombine.high %v524_v10, %v528_v11  ;;  %v516_v22 = vld [vmem:[%s8145_s2 + $0xed8] sm:$0xff]  ;;  %v5534_v57 = vcombine.low %v524_v10, %v528_v11  ;;  %v3856_v10 = vsel %vm3840_vm1, %v7105_v31, %v3848_v7  ;;  %v5745_v31 = vld [vmem:[%s8148_s6 + $0x60] ss:$8 sps:$4 sm:$0xff]  }
 0x1dd   :  { %3809 = vmatpush1.bf16.msra.mxu1 %v5454_v32  ;;  %v520_v25 = vld [vmem:[%s8145_s2 + $0xef8] sm:$0xff]  ;;  %v5398_v32 = vcombine.low %v388_v18, %v392_v20 }
 0x1de   :  { %3810 = vmatprep.subr.bf16.mxu1 %v5447_v34  ;;  %v5527_v27 = vcombine.high %v516_v22, %v520_v25  ;;  %v380_v28 = vld [vmem:[%s8145_s2 + $0xa98] sm:$0xff]  ;;  %v5526_v33 = vcombine.low %v516_v22, %v520_v25  ;;  %v5753_v22 = vld [vmem:[%s8148_s6 + $0x44] ss:$8 sps:$4 sm:$0xff]   ;;  %v5751_v25 = vld [vmem:[%s8148_s6 + $0x40] ss:$8 sps:$4 sm:$0xff]  }
 0x1df   :  { %3770 = vmatpush1.bf16.msra.mxu0 %v5318_v42  ;;  %v384_v45 = vld [vmem:[%s8145_s2 + $0xab8] sm:$0xff] }
 0x1e0   :  { %3771 = vmatprep.subr.bf16.mxu0 %v5311_v43  ;;  %v508_v61 = vld [vmem:[%s8145_s2 + $0xe98] sm:$0xff]  ;;  %v5391_v34 = vcombine.high %v380_v28, %v384_v45 }
 0x1e1   :  { %3811 = vmatpush1.bf16.msra.mxu1 %v5446_v19  ;;  %v512_v30 = vld [vmem:[%s8145_s2 + $0xeb8] sm:$0xff]  ;;  %v5390_v19 = vcombine.low %v380_v28, %v384_v45 }
 0x1e2   :  { %3812 = vmatprep.subr.bf16.mxu1 %v5439_v44  ;;  %v5519_v35 = vcombine.high %v508_v61, %v512_v30  ;;  %v372_v37 = vld [vmem:[%s8145_s2 + $0xa58] sm:$0xff]  ;;  %v5518_v43 = vcombine.low %v508_v61, %v512_v30  ;;  %v5765_v61 = vld [vmem:[%s8148_s6 + $0x4] ss:$8 sps:$4 sm:$0xff]   ;;  %v5763_v30 = vld [vmem:[%s8148_s6] ss:$8 sps:$4 sm:$0xff]  }
 0x1e3   :  { %3772 = vmatpush1.bf16.msra.mxu0 %v5310_v49  ;;  %v376_v39 = vld [vmem:[%s8145_s2 + $0xa78] sm:$0xff] }
 0x1e4   :  { %3773 = vmatprep.subr.bf16.mxu0 %v5431_v51  ;;  %v500_v41 = vld [vmem:[%s8145_s2 + $0xe58] sm:$0xff]  ;;  %v5383_v44 = vcombine.high %v372_v37, %v376_v39 }
 0x1e5   :  { %3813 = vmatpush1.bf16.msra.mxu1 %v5438_v50  ;;  %v504_v42 = vld [vmem:[%s8145_s2 + $0xe78] sm:$0xff]  ;;  %v5382_v50 = vcombine.low %v372_v37, %v376_v39 }
 0x1e6   :  { %3814 = vmatprep.subr.bf16.mxu1 %v5559_v16  ;;  %v5511_v53 = vcombine.high %v500_v41, %v504_v42  ;;  %v364_v46 = vld [vmem:[%s8145_s2 + $0xa18] sm:$0xff]  ;;  %v5510_v51 = vcombine.low %v500_v41, %v504_v42  ;;  %v5777_v41 = vld [vmem:[%s8148_s6 + $0xc4] ss:$8 sps:$4 sm:$0xff]   ;;  %v5775_v42 = vld [vmem:[%s8148_s6 + $0xc0] ss:$8 sps:$4 sm:$0xff]  }
 0x1e7   :  { %3774 = vmatpush2.bf16.msra.mxu0 %v5430_v21  ;;  %v368_v47 = vld [vmem:[%s8145_s2 + $0xa38] sm:$0xff]  ;;  %v3900_v21 = vld [vmem:[%s8149_s4] sm:$0x3] }
 0x1e8   :  { %3775 = vmatprep.subr.bf16.mxu0 %v5423_v23  ;;  %v492_v48 = vld [vmem:[%s8145_s2 + $0xe18] sm:$0xff]  ;;  %v5375_v16 = vcombine.high %v364_v46, %v368_v47  ;;  %v5374_v55 = vcombine.low %v364_v46, %v368_v47  ;;  %v3914_v0 = vsel %vm3912_vm0, %v3900_v21, 0  ;;  %v5781_v47 = vld [vmem:[%s8148_s6 + $0xa0] ss:$8 sps:$4 sm:$0xff]  }
 0x1e9   :  { %3815 = vmatpush2.bf16.msra.mxu1 %v5558_v60  ;;  %v496_v49 = vld [vmem:[%s8145_s2 + $0xe38] sm:$0xff]  ;;  %v7664_v60 = vld [vmem:[%s8147_s3] sm:$0xff] }
 0x1ea   :  { %3816 = vmatprep.subr.bf16.mxu1 %v5551_v62  ;;  %v5503_v52 = vcombine.high %v492_v48, %v496_v49  ;;  %v5502_v12 = vcombine.low %v492_v48, %v496_v49  ;;  %v574_v23 = vrot.slane %v7664_v60, %v573_v56  ;;  %v5947_v62 = vmov 0.0   ;;  %v5744_v1 = vld [vmem:[%s8148_s6 + $0x74] ss:$8 sps:$4 sm:$0xff]   ;;  %v5748_v20 = vld [vmem:[%s8148_s6 + $0x50] ss:$8 sps:$4 sm:$0xff]  }
 0x1eb   :  { %3776 = vmatpush2.bf16.msra.mxu0 %v5422_v2  ;;  %v5750_v18 = vld [vmem:[%s8148_s6 + $0x54] ss:$8 sps:$4 sm:$0xff]   ;;  %v5760_v45 = vld [vmem:[%s8148_s6 + $0x10] ss:$8 sps:$4 sm:$0xff]  }
 0x1ec   :  { %3777 = vmatprep.subr.bf16.mxu0 %v5415_v4  ;;  %v5762_v28 = vld [vmem:[%s8148_s6 + $0x14] ss:$8 sps:$4 sm:$0xff]   ;;  %v5772_v39 = vld [vmem:[%s8148_s6 + $0xd0] ss:$8 sps:$4 sm:$0xff]  }
 0x1ed   :  { %3817 = vmatpush2.bf16.msra.mxu1 %v5550_v3  ;;  %v5774_v37 = vld [vmem:[%s8148_s6 + $0xd4] ss:$8 sps:$4 sm:$0xff]  }
 0x1ee   :  { %3818 = vmatprep.subr.bf16.mxu1 %v5543_v29  ;;  %v5786_v48 = vld [vmem:[%s8148_s6 + $0x94] ss:$8 sps:$4 sm:$0xff]  }
 0x1ef   :  { %3778 = vmatpush2.bf16.msra.mxu0 %v5414_v13 }
 0x1f0   :  { %3779 = vmatprep.subr.bf16.mxu0 %v5407_v15  ;;  %v5716_v15 = vpack.c.bf16 %v3856_v10, %v3856_v10 }
 0x1f1   :  { %3819 = vmatpush2.bf16.msra.mxu1 %v5542_v14  ;;  %v5747_v14 = vld [vmem:[%s8148_s6 + $0x64] ss:$8 sps:$4 sm:$0xff]  }
 0x1f2   :  { %3820 = vmatprep.subr.bf16.mxu1 %v5535_v17 }
 0x1f3   :  { %3780 = vmatpush2.bf16.msra.mxu0 %v5406_v58  ;;  %v5756_v58 = vld [vmem:[%s8148_s6 + $0x34] ss:$8 sps:$4 sm:$0xff]  }
 0x1f4   :  { %3781 = vmatprep.subr.bf16.mxu0 %v5399_v38  ;;  %v5759_v38 = vld [vmem:[%s8148_s6 + $0x24] ss:$8 sps:$4 sm:$0xff]  }
 0x1f5   :  { %3821 = vmatpush2.bf16.msra.mxu1 %v5534_v57  ;;  %v5754_v57 = vld [vmem:[%s8148_s6 + $0x30] ss:$8 sps:$4 sm:$0xff]  }
 0x1f6   :  { %3822 = vmatprep.subr.bf16.mxu1 %v5527_v27  ;;  %v5757_v27 = vld [vmem:[%s8148_s6 + $0x20] ss:$8 sps:$4 sm:$0xff]  }
 0x1f7   :  { %3782 = vmatpush2.bf16.msra.mxu0 %v5398_v32  ;;  %v5768_v32 = vld [vmem:[%s8148_s6 + $0xf4] ss:$8 sps:$4 sm:$0xff]  }
 0x1f8   :  { %3783 = vmatprep.subr.bf16.mxu0 %v5391_v34  ;;  %v5771_v34 = vld [vmem:[%s8148_s6 + $0xe4] ss:$8 sps:$4 sm:$0xff]  }
 0x1f9   :  { %3823 = vmatpush2.bf16.msra.mxu1 %v5526_v33  ;;  %v5766_v33 = vld [vmem:[%s8148_s6 + $0xf0] ss:$8 sps:$4 sm:$0xff]  }
 0x1fa   :  { %3824 = vmatprep.subr.bf16.mxu1 %v5519_v35  ;;  %v5769_v35 = vld [vmem:[%s8148_s6 + $0xe0] ss:$8 sps:$4 sm:$0xff]  }
 0x1fb   :  { %3784 = vmatpush2.bf16.msra.mxu0 %v5390_v19  ;;  %v5780_v19 = vld [vmem:[%s8148_s6 + $0xb4] ss:$8 sps:$4 sm:$0xff]  }
 0x1fc   :  { %3785 = vmatprep.subr.bf16.mxu0 %v5383_v44  ;;  %v5778_v44 = vld [vmem:[%s8148_s6 + $0xb0] ss:$8 sps:$4 sm:$0xff]  }
 0x1fd   :  { %3825 = vmatpush2.bf16.msra.mxu1 %v5518_v43  ;;  %v577_v43 = vsub.s32 5, %v6834_v59 }
 0x1fe   :  { %3826 = vmatprep.subr.bf16.mxu1 %v5511_v53  ;;  %v5783_v53 = vld [vmem:[%s8148_s6 + $0xa4] ss:$8 sps:$4 sm:$0xff]  }
 0x1ff   :  { %3786 = vmatpush2.bf16.msra.mxu0 %v5382_v50  ;;  %v578_v46 = vrot.slane %v7664_v60, %v577_v43  ;;  %v5784_v50 = vld [vmem:[%s8148_s6 + $0x90] ss:$8 sps:$4 sm:$0xff]   ;;  %v5822_v43 = vld [vmem:[%s8148_s6 + $0x2d4] ss:$8 sps:$4 sm:$0xff]  }
 0x200   :  { %3787 = vmatprep.subr.bf16.mxu0 %v5375_v16  ;;  %v3847_v16 = vmul.f32 0.01, %v7089_v24 }
 0x201   :  { %3827 = vmatpush2.bf16.msra.mxu1 %v5510_v51  ;;  %v5789_v51 = vld [vmem:[%s8148_s6 + $0x84] ss:$8 sps:$4 sm:$0xff]  }
 0x202   :  { %3828 = vmatprep.subr.bf16.mxu1 %v5503_v52 }
 0x203   :  { %3788 = vmatpush2.bf16.msra.mxu0 %v5374_v55 }
 0x204   :  { %5725 = vmatprep.subr.bf16.mxu0 %v5947_v62 }
 0x205   :  { %3829 = vmatpush2.bf16.msra.mxu1 %v5502_v12  ;;  %v5787_v12 = vld [vmem:[%s8148_s6 + $0x80] ss:$8 sps:$4 sm:$0xff]  }
 0x206   :  { %v3545_v26 = vpop.f32.mrf.mxu0  ;;  %3790 = vmatmul.mubr.bf16.vlgmr.msra.gmra.mxu0 %v6454_v36  ;;  %v5742_v36 = vld [vmem:[%s8148_s6 + $0x70] ss:$8 sps:$4 sm:$0xff]  }
 0x207   :  { %v3546_v2 = vadd.f32 %v3545_v26, %v574_v23  ;;  %5726 = vmatpush3.bf16.msra.mxu0 %v3914_v0  ;;  %5727 = vmatprep.mubr.msk.bf16.mxu0 %vm5948_vm2, %v5947_v62  ;;  %v5792_v23 = vld [vmem:[%s8148_s6 + $0x274] ss:$8 sps:$4 sm:$0xff]   ;;  %v3855_v62 = vsel %vm3839_vm4, %v7089_v24, %v3847_v16  ;;  %v581_v16 = vsub.s32 6, %v6834_v59 }
 0x208   :  { %v3586_v3 = vpop.f32.mrf.mxu1  ;;  %3831 = vmatmul.mubr.bf16.vlgmr.msra.gmra.mxu1 %v6464_v40  ;;  %v7674_v4 = vpop.f32.mrf.mxu0  ;;  %4856 = vmatprep.subr.bf16.mxu0 %v5744_v1  ;;  %v3899_v40 = vld [vmem:[%s8150_s1] sm:$0xf]  ;;  %v5840_v24 = vld [vmem:[%s8151_s7 + $0x34] ss:$8 sps:$4 sm:$0xff]  }
 0x209   :  { %v7676_v29 = vadd.f32 %v3586_v3, %v3546_v2  ;;  %v3548_v49 = vadd.f32 %v7674_v4, %v578_v46  ;;  %v5790_v2 = vld [vmem:[%s8148_s6 + $0x270] ss:$8 sps:$4 sm:$0xff]   ;;  %v5795_v3 = vld [vmem:[%s8148_s6 + $0x264] ss:$8 sps:$4 sm:$0xff]   ;;  %4155 = vmatprep.subr.bf16.mxu1 %v5840_v24  ;;  %v5823_v46 = vld [vmem:[%s8148_s6 + $0x2c0] ss:$8 sps:$4 sm:$0xff]  }
 0x20a   :  { %v7678_v6 = vpop.f32.mrf.mxu1  ;;  %v3549_v8 = vpop.f32.mrf.mxu0 }
 0x20b   :  { %v3589_v55 = vadd.f32 %v7678_v6, %v3548_v49  ;;  %v5715_v6 = vpack.c.bf16 %v3855_v62, %v3855_v62  ;;  %v5831_v49 = vld [vmem:[%s8148_s6 + $0x2a4] ss:$8 sps:$4 sm:$0xff]  }
 0x20c   :  { %v3590_v11 = vpop.f32.mrf.mxu1  ;;  %v3550_v13 = vpop.f32.mrf.mxu0 }
 0x20d   :  { %v5793_v11 = vld [vmem:[%s8148_s6 + $0x260] ss:$8 sps:$4 sm:$0xff]  }
 0x20e   :  { %v3591_v17 = vpop.f32.mrf.mxu1  ;;  %5728 = vmatmul.mubr.msk.bf16.vlgmr.msra.gmra.mxu0 %vm3908_vm3, %v3899_v40  ;;  %v5838_v40 = vld [vmem:[%s8151_s7 + $0x30] ss:$8 sps:$4 sm:$0xff]  }
 0x20f   :  { %4857 = vmatpush1.bf16.msra.mxu0 %v5742_v36  ;;  %4888 = vmatprep.mubr.bf16.mxu0 %v5716_v15  ;;  %v5798_v15 = vld [vmem:[%s8148_s6 + $0x254] ss:$8 sps:$4 sm:$0xff]   ;;  %v5843_v17 = vld [vmem:[%s8151_s7 + $0x24] ss:$8 sps:$4 sm:$0xff]  }
 0x210   :  { %4858 = vmatprep.subr.bf16.mxu0 %v5747_v14  ;;  %4156 = vmatpush1.bf16.msra.mxu1 %v5838_v40 }
 0x211   :  { %4157 = vmatprep.subr.bf16.mxu1 %v5843_v17 }
 0x213   :  { %4859 = vmatpush1.bf16.msra.mxu0 %v5745_v31  ;;  %v5841_v31 = vld [vmem:[%s8151_s7 + $0x20] ss:$8 sps:$4 sm:$0xff]  }
 0x214   :  { %4860 = vmatprep.subr.bf16.mxu0 %v5750_v18  ;;  %v5796_v18 = vld [vmem:[%s8148_s6 + $0x250] ss:$8 sps:$4 sm:$0xff]   ;;  %4158 = vmatpush1.bf16.msra.mxu1 %v5841_v31 }
 0x217   :  { %4861 = vmatpush1.bf16.msra.mxu0 %v5748_v20  ;;  %v5801_v20 = vld [vmem:[%s8148_s6 + $0x244] ss:$8 sps:$4 sm:$0xff]  }
 0x218   :  { %4862 = vmatprep.subr.bf16.mxu0 %v5753_v22  ;;  %v5846_v22 = vld [vmem:[%s8151_s7 + $0x14] ss:$8 sps:$4 sm:$0xff]  }
 0x219   :  { %4159 = vmatprep.subr.bf16.mxu1 %v5846_v22 }
 0x21b   :  { %4863 = vmatpush1.bf16.msra.mxu0 %v5751_v25  ;;  %v5844_v25 = vld [vmem:[%s8151_s7 + $0x10] ss:$8 sps:$4 sm:$0xff]  }
 0x21c   :  { %4864 = vmatprep.subr.bf16.mxu0 %v5756_v58  ;;  %v5849_v58 = vld [vmem:[%s8151_s7 + $0x4] ss:$8 sps:$4 sm:$0xff]   ;;  %4160 = vmatpush1.bf16.msra.mxu1 %v5844_v25 }
 0x21d   :  { %4161 = vmatprep.subr.bf16.mxu1 %v5849_v58 }
 0x21f   :  { %4865 = vmatpush1.bf16.msra.mxu0 %v5754_v57  ;;  %v5799_v57 = vld [vmem:[%s8148_s6 + $0x240] ss:$8 sps:$4 sm:$0xff]  }
 0x220   :  { %4866 = vmatprep.subr.bf16.mxu0 %v5759_v38  ;;  %v5847_v38 = vld [vmem:[%s8151_s7] ss:$8 sps:$4 sm:$0xff]  }
 0x221   :  { %4162 = vmatpush1.bf16.msra.mxu1 %v5847_v38  ;;  %v5564_v38 = vld [vmem:[%s8152_s5] ss:$0 sm:$0xff] }
 0x223   :  { %4867 = vmatpush1.bf16.msra.mxu0 %v5757_v27  ;;  %v5804_v27 = vld [vmem:[%s8148_s6 + $0x234] ss:$8 sps:$4 sm:$0xff]  }
 0x224   :  { %4868 = vmatprep.subr.bf16.mxu0 %v5762_v28  ;;  %v5852_v28 = vld [vmem:[%s8148_s6 + $0x174] ss:$8 sps:$4 sm:$0xff]  }
 0x225   :  { %4897 = vmatprep.subr.bf16.mxu1 %v5852_v28 }
 0x227   :  { %4869 = vmatpush1.bf16.msra.mxu0 %v5760_v45  ;;  %v5949_v45 = vmov 0  }
 0x228   :  { %4870 = vmatprep.subr.bf16.mxu0 %v5765_v61  ;;  %4179 = vmatprep.mubr.bf16.mxu1 %v5949_v45  ;;  %v5802_v61 = vld [vmem:[%s8148_s6 + $0x230] ss:$8 sps:$4 sm:$0xff]  }
 0x22b   :  { %4871 = vmatpush1.bf16.msra.mxu0 %v5763_v30  ;;  %v5807_v30 = vld [vmem:[%s8148_s6 + $0x224] ss:$8 sps:$4 sm:$0xff]  }
 0x22c   :  { %4872 = vmatprep.subr.bf16.mxu0 %v5768_v32  ;;  %v5805_v32 = vld [vmem:[%s8148_s6 + $0x220] ss:$8 sps:$4 sm:$0xff]  }
 0x22f   :  { %4873 = vmatpush2.bf16.msra.mxu0 %v5766_v33  ;;  %v5810_v33 = vld [vmem:[%s8148_s6 + $0x214] ss:$8 sps:$4 sm:$0xff]  }
 0x230   :  { %4874 = vmatprep.subr.bf16.mxu0 %v5771_v34  ;;  %v5808_v34 = vld [vmem:[%s8148_s6 + $0x210] ss:$8 sps:$4 sm:$0xff]  }
 0x233   :  { %4875 = vmatpush2.bf16.msra.mxu0 %v5769_v35  ;;  %v5813_v35 = vld [vmem:[%s8148_s6 + $0x204] ss:$8 sps:$4 sm:$0xff]  }
 0x234   :  { %4876 = vmatprep.subr.bf16.mxu0 %v5774_v37  ;;  %v5811_v37 = vld [vmem:[%s8148_s6 + $0x200] ss:$8 sps:$4 sm:$0xff]  }
 0x237   :  { %4877 = vmatpush2.bf16.msra.mxu0 %v5772_v39  ;;  %v5816_v39 = vld [vmem:[%s8148_s6 + $0x2f4] ss:$8 sps:$4 sm:$0xff]  }
 0x238   :  { %4878 = vmatprep.subr.bf16.mxu0 %v5777_v41  ;;  %v5814_v41 = vld [vmem:[%s8148_s6 + $0x2f0] ss:$8 sps:$4 sm:$0xff]  }
 0x23b   :  { %4879 = vmatpush2.bf16.msra.mxu0 %v5775_v42  ;;  %v5819_v42 = vld [vmem:[%s8148_s6 + $0x2e4] ss:$8 sps:$4 sm:$0xff]  }
 0x23c   :  { %4880 = vmatprep.subr.bf16.mxu0 %v5780_v19  ;;  %v5817_v19 = vld [vmem:[%s8148_s6 + $0x2e0] ss:$8 sps:$4 sm:$0xff]  }
 0x23f   :  { %4881 = vmatpush2.bf16.msra.mxu0 %v5778_v44  ;;  %v5820_v44 = vld [vmem:[%s8148_s6 + $0x2d0] ss:$8 sps:$4 sm:$0xff]  }
 0x240   :  { %4882 = vmatprep.subr.bf16.mxu0 %v5783_v53  ;;  %v5825_v53 = vld [vmem:[%s8148_s6 + $0x2c4] ss:$8 sps:$4 sm:$0xff]  }
 0x243   :  { %4883 = vmatpush2.bf16.msra.mxu0 %v5781_v47  ;;  %v5828_v47 = vld [vmem:[%s8148_s6 + $0x2b4] ss:$8 sps:$4 sm:$0xff]  }
 0x244   :  { %4884 = vmatprep.subr.bf16.mxu0 %v5786_v48  ;;  %v5826_v48 = vld [vmem:[%s8148_s6 + $0x2b0] ss:$8 sps:$4 sm:$0xff]  }
 0x246   :  { %v7779_v52 = vpop.f32.mrf.mxu0 }
 0x247   :  { %4885 = vmatpush2.bf16.msra.mxu0 %v5784_v50  ;;  %v3628_v50 = vadd.f32 %v7779_v52, %v7676_v29  ;;  %v5832_v29 = vld [vmem:[%s8148_s6 + $0x290] ss:$8 sps:$4 sm:$0xff]   ;;  %v582_v52 = vrot.slane %v7664_v60, %v581_v16  ;;  %v5870_v16 = vld [vmem:[%s8148_s6 + $0x114] ss:$8 sps:$4 sm:$0xff]  }
 0x248   :  { %v7782_v56 = vpop.f32.mrf.mxu1  ;;  %v3629_v21 = vpop.f32.mrf.mxu0  ;;  %4886 = vmatprep.subr.bf16.mxu0 %v5789_v51  ;;  %v5829_v51 = vld [vmem:[%s8148_s6 + $0x2a0] ss:$8 sps:$4 sm:$0xff]  }
 0x249   :  { %v3630_v0 = vadd.f32 %v3629_v21, %v3589_v55  ;;  %v5834_v55 = vld [vmem:[%s8148_s6 + $0x294] ss:$8 sps:$4 sm:$0xff]   ;;  %v585_v21 = vsub.s32 7, %v6834_v59 }
 0x24a   :  { %v3670_v1 = vpop.f32.mrf.mxu1  ;;  %v3631_v7 = vpop.f32.mrf.mxu0 }
 0x24b   :  { %v3671_v26 = vadd.f32 %v3670_v1, %v3630_v0  ;;  %4887 = vmatpush2.bf16.msra.mxu0 %v5787_v12  ;;  %v3669_v12 = vadd.f32 %v7782_v56, %v3628_v50  ;;  %v586_v0 = vrot.slane %v7664_v60, %v585_v21  ;;  %v5867_v50 = vld [vmem:[%s8148_s6 + $0x124] ss:$8 sps:$4 sm:$0xff]   ;;  %v5871_v21 = vld [vmem:[%s8148_s6 + $0x100] ss:$8 sps:$4 sm:$0xff]  }
 0x24c   :  { %v3672_v4 = vpop.f32.mrf.mxu1  ;;  %v3632_v8 = vpop.f32.mrf.mxu0  ;;  %4938 = vmatprep.subr.bf16.mxu0 %v5792_v23  ;;  %v5837_v23 = vld [vmem:[%s8148_s6 + $0x284] ss:$8 sps:$4 sm:$0xff]  }
 0x24d   :  { %vm3844_vm5 = vcmp.ge.f32.partialorder %v3671_v26, 0.0  ;;  %v3852_v10 = vmul.f32 0.01, %v3671_v26  ;;  %v3851_v62 = vmul.f32 0.01, %v3669_v12  ;;  %vm3843_vm6 = vcmp.ge.f32.partialorder %v3669_v12, 0.0 }
 0x24e   :  { %v3673_v36 = vpop.f32.mrf.mxu1  ;;  %4889 = vmatmul.mubr.bf16.vlgmr.msra.gmra.mxu0 %v5715_v6 }
 0x24f   :  { %4939 = vmatpush1.bf16.msra.mxu0 %v5790_v2  ;;  %v3860_v13 = vsel %vm3844_vm5, %v3671_v26, %v3852_v10  ;;  %v5835_v26 = vld [vmem:[%s8148_s6 + $0x280] ss:$8 sps:$4 sm:$0xff]  }
 0x250   :  { %4940 = vmatprep.subr.bf16.mxu0 %v5795_v3  ;;  %v5720_v14 = vpack.c.bf16 %v3860_v13, %v3860_v13  ;;  %v3859_v3 = vsel %vm3843_vm6, %v3669_v12, %v3851_v62  ;;  %v5873_v12 = vld [vmem:[%s8148_s6 + $0x104] ss:$8 sps:$4 sm:$0xff]   ;;  %v5877_v62 = vld [vmem:[%s8148_s6 + $0x1e0] ss:$8 sps:$4 sm:$0xff]  }
 0x251   :  { %v5719_v60 = vpack.c.bf16 %v3859_v3, %v3859_v3  ;;  %v5891_v3 = vld [vmem:[%s8148_s6 + $0x1a4] ss:$8 sps:$4 sm:$0xff]  }
 0x252   :  { %4970 = vmatprep.mubr.bf16.mxu0 %v5720_v14 }
 0x253   :  { %4941 = vmatpush1.bf16.msra.mxu0 %v5793_v11 }
 0x254   :  { %4942 = vmatprep.subr.bf16.mxu0 %v5798_v15 }
 0x257   :  { %4943 = vmatpush1.bf16.msra.mxu0 %v5796_v18 }
 0x258   :  { %4944 = vmatprep.subr.bf16.mxu0 %v5801_v20 }
 0x25b   :  { %4945 = vmatpush1.bf16.msra.mxu0 %v5799_v57 }
 0x25c   :  { %4946 = vmatprep.subr.bf16.mxu0 %v5804_v27 }
 0x25f   :  { %4947 = vmatpush1.bf16.msra.mxu0 %v5802_v61 }
 0x260   :  { %4948 = vmatprep.subr.bf16.mxu0 %v5807_v30 }
 0x263   :  { %4949 = vmatpush1.bf16.msra.mxu0 %v5805_v32 }
 0x264   :  { %4950 = vmatprep.subr.bf16.mxu0 %v5810_v33 }
 0x267   :  { %4951 = vmatpush1.bf16.msra.mxu0 %v5808_v34 }
 0x268   :  { %4952 = vmatprep.subr.bf16.mxu0 %v5813_v35 }
 0x26b   :  { %4953 = vmatpush1.bf16.msra.mxu0 %v5811_v37  ;;  %v3850_v37 = vmul.f32 0.01, %v7511_v63 }
 0x26c   :  { %4954 = vmatprep.subr.bf16.mxu0 %v5816_v39 }
 0x26d   :  { %v3858_v39 = vsel %vm3842_vm9, %v7511_v63, %v3850_v37  ;;  %v5858_v63 = vld [vmem:[%s8148_s6 + $0x154] ss:$8 sps:$4 sm:$0xff]   ;;  %v5919_v37 = vld [vmem:[%s8148_s6 + $0x300] ss:$8 sps:$4 sm:$0xff]  }
 0x26f   :  { %4955 = vmatpush2.bf16.msra.mxu0 %v5814_v41  ;;  %v5850_v41 = vld [vmem:[%s8148_s6 + $0x170] ss:$8 sps:$4 sm:$0xff]  }
 0x270   :  { %4956 = vmatprep.subr.bf16.mxu0 %v5819_v42  ;;  %v5855_v42 = vld [vmem:[%s8148_s6 + $0x164] ss:$8 sps:$4 sm:$0xff]  }
 0x273   :  { %4957 = vmatpush2.bf16.msra.mxu0 %v5817_v19 }
 0x274   :  { %4958 = vmatprep.subr.bf16.mxu0 %v5822_v43  ;;  %v5718_v43 = vpack.c.bf16 %v3858_v39, %v3858_v39  ;;  %v5924_v39 = vld [vmem:[%s8148_s6 + $0x3f4] ss:$8 sps:$4 sm:$0xff]  }
 0x277   :  { %4959 = vmatpush2.bf16.msra.mxu0 %v5820_v44  ;;  %v5853_v44 = vld [vmem:[%s8148_s6 + $0x160] ss:$8 sps:$4 sm:$0xff]  }
 0x278   :  { %4960 = vmatprep.subr.bf16.mxu0 %v5825_v53  ;;  %v5856_v53 = vld [vmem:[%s8148_s6 + $0x150] ss:$8 sps:$4 sm:$0xff]  }
 0x27b   :  { %4961 = vmatpush2.bf16.msra.mxu0 %v5823_v46  ;;  %v5861_v46 = vld [vmem:[%s8148_s6 + $0x144] ss:$8 sps:$4 sm:$0xff]  }
 0x27c   :  { %4962 = vmatprep.subr.bf16.mxu0 %v5828_v47  ;;  %v5859_v47 = vld [vmem:[%s8148_s6 + $0x140] ss:$8 sps:$4 sm:$0xff]  }
 0x27f   :  { %4963 = vmatpush2.bf16.msra.mxu0 %v5826_v48  ;;  %v5864_v48 = vld [vmem:[%s8148_s6 + $0x134] ss:$8 sps:$4 sm:$0xff]  }
 0x280   :  { %4964 = vmatprep.subr.bf16.mxu0 %v5831_v49  ;;  %v5862_v49 = vld [vmem:[%s8148_s6 + $0x130] ss:$8 sps:$4 sm:$0xff]  }
 0x283   :  { %4965 = vmatpush2.bf16.msra.mxu0 %v5829_v51  ;;  %v5865_v51 = vld [vmem:[%s8148_s6 + $0x120] ss:$8 sps:$4 sm:$0xff]  }
 0x284   :  { %4966 = vmatprep.subr.bf16.mxu0 %v5834_v55  ;;  %v5868_v55 = vld [vmem:[%s8148_s6 + $0x110] ss:$8 sps:$4 sm:$0xff]  }
 0x286   :  { %v3709_v1 = vpop.f32.mrf.mxu0 }
 0x287   :  { %v3710_v56 = vadd.f32 %v3709_v1, %v582_v52  ;;  %4967 = vmatpush2.bf16.msra.mxu0 %v5832_v29  ;;  %v5876_v29 = vld [vmem:[%s8148_s6 + $0x1f4] ss:$8 sps:$4 sm:$0xff]   ;;  %v5874_v52 = vld [vmem:[%s8148_s6 + $0x1f0] ss:$8 sps:$4 sm:$0xff]  }
 0x288   :  { %v3750_v7 = vpop.f32.mrf.mxu1  ;;  %v3711_v2 = vpop.f32.mrf.mxu0  ;;  %4968 = vmatprep.subr.bf16.mxu0 %v5837_v23  ;;  %v5879_v23 = vld [vmem:[%s8148_s6 + $0x1e4] ss:$8 sps:$4 sm:$0xff]   ;;  %v5880_v1 = vld [vmem:[%s8148_s6 + $0x1d0] ss:$8 sps:$4 sm:$0xff]  }
 0x289   :  { %v3712_v4 = vadd.f32 %v3711_v2, %v586_v0  ;;  %v3751_v6 = vadd.f32 %v3750_v7, %v3710_v56  ;;  %v5882_v0 = vld [vmem:[%s8148_s6 + $0x1d4] ss:$8 sps:$4 sm:$0xff]   ;;  %v5885_v56 = vld [vmem:[%s8148_s6 + $0x1c4] ss:$8 sps:$4 sm:$0xff]   ;;  %v5883_v7 = vld [vmem:[%s8148_s6 + $0x1c0] ss:$8 sps:$4 sm:$0xff]  }
 0x28a   :  { %v3752_v8 = vpop.f32.mrf.mxu1  ;;  %v3713_v24 = vpop.f32.mrf.mxu0  ;;  %v5886_v2 = vld [vmem:[%s8148_s6 + $0x1b0] ss:$8 sps:$4 sm:$0xff]  }
 0x28b   :  { %v3753_v10 = vadd.f32 %v3752_v8, %v3712_v4  ;;  %4969 = vmatpush2.bf16.msra.mxu0 %v5835_v26  ;;  %v5888_v26 = vld [vmem:[%s8148_s6 + $0x1b4] ss:$8 sps:$4 sm:$0xff]  }
 0x28c   :  { %v3754_v36 = vpop.f32.mrf.mxu1  ;;  %v3714_v40 = vpop.f32.mrf.mxu0  ;;  %v5894_v24 = vld [vmem:[%s8148_s6 + $0x194] ss:$8 sps:$4 sm:$0xff]  }
 0x28d   :  { %v5892_v36 = vld [vmem:[%s8148_s6 + $0x190] ss:$8 sps:$4 sm:$0xff]   ;;  %v5897_v40 = vld [vmem:[%s8148_s6 + $0x184] ss:$8 sps:$4 sm:$0xff]  }
 0x28e   :  { %v3755_v11 = vpop.f32.mrf.mxu1  ;;  %4971 = vmatmul.mubr.bf16.vlgmr.msra.gmra.mxu0 %v5719_v60 }
 0x28f   :  { %v3849_v11 = vmul.f32 0.01, %v7495_v54 }
 0x2c6   :  { %v3791_v13 = vpop.f32.mrf.mxu0 }
 0x2c7   :  { %v3792_v14 = vadd.f32 %v3791_v13, %v3751_v6  ;;  %v5889_v6 = vld [vmem:[%s8148_s6 + $0x1a0] ss:$8 sps:$4 sm:$0xff]  }
 0x2c8   :  { %v3832_v15 = vpop.f32.mrf.mxu1  ;;  %v3793_v17 = vpop.f32.mrf.mxu0 }
 0x2c9   :  { %v3794_v31 = vadd.f32 %v3793_v17, %v3753_v10  ;;  %v7918_v18 = vadd.f32 %v3832_v15, %v3792_v14  ;;  %v5895_v14 = vld [vmem:[%s8148_s6 + $0x180] ss:$8 sps:$4 sm:$0xff]   ;;  %v5900_v15 = vld [vmem:[%s8148_s6 + $0x374] ss:$8 sps:$4 sm:$0xff]   ;;  %v3857_v17 = vsel %vm3841_vm11, %v7495_v54, %v3849_v11 }
 0x2ca   :  { %v3834_v20 = vpop.f32.mrf.mxu1  ;;  %v3795_v22 = vpop.f32.mrf.mxu0  ;;  %v5901_v54 = vld [vmem:[%s8148_s6 + $0x360] ss:$8 sps:$4 sm:$0xff]  }
 0x2cb   :  { %v7920_v25 = vadd.f32 %v3834_v20, %v3794_v31  ;;  %v5898_v20 = vld [vmem:[%s8148_s6 + $0x370] ss:$8 sps:$4 sm:$0xff]   ;;  %v5717_v22 = vpack.c.bf16 %v3857_v17, %v3857_v17  ;;  %vm3845_vm13 = vcmp.ge.f32.partialorder %v7918_v18, 0.0 }
 0x2cc   :  { %v3836_v58 = vpop.f32.mrf.mxu1  ;;  %v3796_v57 = vpop.f32.mrf.mxu0 }
 0x2cd   :  { %v3854_v13 = vmul.f32 0.01, %v7920_v25  ;;  %vm3846_vm12 = vcmp.ge.f32.partialorder %v7920_v25, 0.0  ;;  %v5903_v58 = vld [vmem:[%s8148_s6 + $0x364] ss:$8 sps:$4 sm:$0xff]  }
 0x2ce   :  { %v3837_v27 = vpop.f32.mrf.mxu1  ;;  %v3950_v28 = vpop.f32.mrf.mxu0 }
 0x2cf   :  { %v3951_v45 = vadd.f32 %v5564_v38, %v3950_v28  ;;  %v3862_v31 = vsel %vm3846_vm12, %v7920_v25, %v3854_v13  ;;  %v5906_v25 = vld [vmem:[%s8148_s6 + $0x354] ss:$8 sps:$4 sm:$0xff]   ;;  %v5904_v38 = vld [vmem:[%s8148_s6 + $0x350] ss:$8 sps:$4 sm:$0xff]   ;;  %v5909_v27 = vld [vmem:[%s8148_s6 + $0x344] ss:$8 sps:$4 sm:$0xff]  }
 0x2d0   :  { %v5729_v61 = vpop.f32.mrf.mxu0  ;;  %v5722_v57 = vpack.c.bf16 %v3862_v31, %v3862_v31  ;;  %v5907_v28 = vld [vmem:[%s8148_s6 + $0x340] ss:$8 sps:$4 sm:$0xff]  }
 0x2d1   :  { %vm3956_vm7 = vcmp.ge.f32.partialorder %v3951_v45, 0.0  ;;  %v3957_v30 = vmul.f32 0.01, %v3951_v45  ;;  %v5910_v61 = vld [vmem:[%s8148_s6 + $0x330] ss:$8 sps:$4 sm:$0xff]  }
 0x2d2   :  { %v3953_v32 = vpop.f32.mrf.mxu0 }
 0x2d3   :  { %v3958_v33 = vsel %vm3956_vm7, %v3951_v45, %v3957_v30  ;;  %v5912_v45 = vld [vmem:[%s8148_s6 + $0x334] ss:$8 sps:$4 sm:$0xff]   ;;  %v5915_v30 = vld [vmem:[%s8148_s6 + $0x324] ss:$8 sps:$4 sm:$0xff]   ;;  %v5913_v32 = vld [vmem:[%s8148_s6 + $0x320] ss:$8 sps:$4 sm:$0xff]  }
 0x2d4   :  { %v3959_v34 = vpack.c.bf16 %v3958_v33, %v3958_v33  ;;  %v5730_v35 = vpop.f32.mrf.mxu0  ;;  %v5918_v33 = vld [vmem:[%s8148_s6 + $0x314] ss:$8 sps:$4 sm:$0xff]  }
 0x2d5   :  { %v5921_v35 = vld [vmem:[%s8148_s6 + $0x304] ss:$8 sps:$4 sm:$0xff]  }
 0x2d6   :  { %3961 = vst.msk [vmem:[#allocation3] sm:$0xf] %vm3960_vm8, %v3959_v34  ;;  %v5916_v34 = vld [vmem:[%s8148_s6 + $0x310] ss:$8 sps:$4 sm:$0xff]  }
 0x2dd   :  { %v4094_v19 = vld [vmem:[#allocation3] sm:$0xf] }
 0x2de   :  { %5574 = vmatmul.mubr.msk.bf16.vlgmr.msra.gmra.mxu1 %vm4143_vm10, %v4094_v19  ;;  %v5925_v19 = vld [vmem:[%s8148_s6 + $0x3e0] ss:$8 sps:$4 sm:$0xff]  }
 0x2df   :  { %4898 = vmatpush1.bf16.msra.mxu1 %v5850_v41  ;;  %4929 = vmatprep.mubr.bf16.mxu1 %v5718_v43  ;;  %v5922_v41 = vld [vmem:[%s8148_s6 + $0x3f0] ss:$8 sps:$4 sm:$0xff]   ;;  %v5930_v43 = vld [vmem:[%s8148_s6 + $0x3d4] ss:$8 sps:$4 sm:$0xff]  }
 0x2e0   :  { %4899 = vmatprep.subr.bf16.mxu1 %v5855_v42  ;;  %v5927_v42 = vld [vmem:[%s8148_s6 + $0x3e4] ss:$8 sps:$4 sm:$0xff]  }
 0x2e3   :  { %4900 = vmatpush1.bf16.msra.mxu1 %v5853_v44  ;;  %v5928_v44 = vld [vmem:[%s8148_s6 + $0x3d0] ss:$8 sps:$4 sm:$0xff]  }
 0x2e4   :  { %4901 = vmatprep.subr.bf16.mxu1 %v5858_v63  ;;  %v5933_v63 = vld [vmem:[%s8148_s6 + $0x3c4] ss:$8 sps:$4 sm:$0xff]  }
 0x2e7   :  { %4902 = vmatpush1.bf16.msra.mxu1 %v5856_v53  ;;  %v5931_v53 = vld [vmem:[%s8148_s6 + $0x3c0] ss:$8 sps:$4 sm:$0xff]  }
 0x2e8   :  { %4903 = vmatprep.subr.bf16.mxu1 %v5861_v46  ;;  %v5936_v46 = vld [vmem:[%s8148_s6 + $0x3b4] ss:$8 sps:$4 sm:$0xff]  }
 0x2eb   :  { %4904 = vmatpush1.bf16.msra.mxu1 %v5859_v47  ;;  %v5934_v47 = vld [vmem:[%s8148_s6 + $0x3b0] ss:$8 sps:$4 sm:$0xff]  }
 0x2ec   :  { %4905 = vmatprep.subr.bf16.mxu1 %v5864_v48  ;;  %v5939_v48 = vld [vmem:[%s8148_s6 + $0x3a4] ss:$8 sps:$4 sm:$0xff]  }
 0x2ef   :  { %4906 = vmatpush1.bf16.msra.mxu1 %v5862_v49 }
 0x2f0   :  { %4907 = vmatprep.subr.bf16.mxu1 %v5867_v50  ;;  %v5937_v50 = vld [vmem:[%s8148_s6 + $0x3a0] ss:$8 sps:$4 sm:$0xff]  }
 0x2f3   :  { %4908 = vmatpush1.bf16.msra.mxu1 %v5865_v51 }
 0x2f4   :  { %4909 = vmatprep.subr.bf16.mxu1 %v5870_v16  ;;  %v5942_v16 = vld [vmem:[%s8148_s6 + $0x394] ss:$8 sps:$4 sm:$0xff]  }
 0x2f7   :  { %4910 = vmatpush1.bf16.msra.mxu1 %v5868_v55 }
 0x2f8   :  { %4911 = vmatprep.subr.bf16.mxu1 %v5873_v12  ;;  %v5940_v12 = vld [vmem:[%s8148_s6 + $0x390] ss:$8 sps:$4 sm:$0xff]  }
 0x2fb   :  { %4912 = vmatpush1.bf16.msra.mxu1 %v5871_v21 }
 0x2fc   :  { %4913 = vmatprep.subr.bf16.mxu1 %v5876_v29  ;;  %v5945_v29 = vld [vmem:[%s8148_s6 + $0x384] ss:$8 sps:$4 sm:$0xff]  }
 0x2ff   :  { %4914 = vmatpush2.bf16.msra.mxu1 %v5874_v52  ;;  %v3853_v52 = vmul.f32 0.01, %v7918_v18 }
 0x300   :  { %4915 = vmatprep.subr.bf16.mxu1 %v5879_v23  ;;  %v5943_v23 = vld [vmem:[%s8148_s6 + $0x380] ss:$8 sps:$4 sm:$0xff]  }
 0x303   :  { %4916 = vmatpush2.bf16.msra.mxu1 %v5877_v62  ;;  %v3861_v62 = vsel %vm3845_vm13, %v7918_v18, %v3853_v52  ;;  %v5020_v18 = vld [vmem:[%s8153_s8] sm:$0x3] }
 0x304   :  { %4917 = vmatprep.subr.bf16.mxu1 %v5882_v0  ;;  %v5721_v0 = vpack.c.bf16 %v3861_v62, %v3861_v62  ;;  %v5025_v13 = vrot.slane %v5020_v18, %v557_v5  ;;  %v5029_v31 = vrot.slane %v5020_v18, %v561_v9 }
 0x307   :  { %4918 = vmatpush2.bf16.msra.mxu1 %v5880_v1 }
 0x308   :  { %4919 = vmatprep.subr.bf16.mxu1 %v5885_v56 }
 0x30b   :  { %4920 = vmatpush2.bf16.msra.mxu1 %v5883_v7 }
 0x30c   :  { %4921 = vmatprep.subr.bf16.mxu1 %v5888_v26 }
 0x30e   :  { %v8006_v4 = vpop.f32.mrf.mxu0 }
 0x30f   :  { %4922 = vmatpush2.bf16.msra.mxu1 %v5886_v2 }
 0x310   :  { %v8011_v8 = vpop.f32.mrf.mxu0  ;;  %4923 = vmatprep.subr.bf16.mxu1 %v5891_v3 }
 0x312   :  { %v4894_v10 = vpop.f32.mrf.mxu0 }
 0x313   :  { %4924 = vmatpush2.bf16.msra.mxu1 %v5889_v6 }
 0x314   :  { %v4895_v60 = vpop.f32.mrf.mxu0  ;;  %4925 = vmatprep.subr.bf16.mxu1 %v5894_v24 }
 0x317   :  { %4926 = vmatpush2.bf16.msra.mxu1 %v5892_v36 }
 0x318   :  { %4927 = vmatprep.subr.bf16.mxu1 %v5897_v40 }
 0x31b   :  { %4928 = vmatpush2.bf16.msra.mxu1 %v5895_v14 }
 0x31c   :  { %4979 = vmatprep.subr.bf16.mxu1 %v5900_v15 }
 0x31e   :  { %4930 = vmatmul.mubr.bf16.vlgmr.msra.gmra.mxu1 %v5717_v22 }
 0x31f   :  { %4980 = vmatpush1.bf16.msra.mxu1 %v5898_v20  ;;  %5011 = vmatprep.mubr.bf16.mxu1 %v5722_v57 }
 0x320   :  { %4981 = vmatprep.subr.bf16.mxu1 %v5903_v58 }
 0x323   :  { %4982 = vmatpush1.bf16.msra.mxu1 %v5901_v54 }
 0x324   :  { %4983 = vmatprep.subr.bf16.mxu1 %v5906_v25 }
 0x327   :  { %4984 = vmatpush1.bf16.msra.mxu1 %v5904_v38 }
 0x328   :  { %4985 = vmatprep.subr.bf16.mxu1 %v5909_v27 }
 0x32b   :  { %4986 = vmatpush1.bf16.msra.mxu1 %v5907_v28 }
 0x32c   :  { %4987 = vmatprep.subr.bf16.mxu1 %v5912_v45 }
 0x32f   :  { %4988 = vmatpush1.bf16.msra.mxu1 %v5910_v61 }
 0x330   :  { %4989 = vmatprep.subr.bf16.mxu1 %v5915_v30 }
 0x333   :  { %4990 = vmatpush1.bf16.msra.mxu1 %v5913_v32 }
 0x334   :  { %4991 = vmatprep.subr.bf16.mxu1 %v5918_v33 }
 0x337   :  { %4992 = vmatpush1.bf16.msra.mxu1 %v5916_v34 }
 0x338   :  { %4993 = vmatprep.subr.bf16.mxu1 %v5921_v35 }
 0x33b   :  { %4994 = vmatpush1.bf16.msra.mxu1 %v5919_v37 }
 0x33c   :  { %4995 = vmatprep.subr.bf16.mxu1 %v5924_v39 }
 0x33f   :  { %4996 = vmatpush2.bf16.msra.mxu1 %v5922_v41 }
 0x340   :  { %4997 = vmatprep.subr.bf16.mxu1 %v5927_v42 }
 0x343   :  { %4998 = vmatpush2.bf16.msra.mxu1 %v5925_v19 }
 0x344   :  { %4999 = vmatprep.subr.bf16.mxu1 %v5930_v43 }
 0x347   :  { %5000 = vmatpush2.bf16.msra.mxu1 %v5928_v44 }
 0x348   :  { %5001 = vmatprep.subr.bf16.mxu1 %v5933_v63 }
 0x34b   :  { %5002 = vmatpush2.bf16.msra.mxu1 %v5931_v53 }
 0x34c   :  { %5003 = vmatprep.subr.bf16.mxu1 %v5936_v46 }
 0x34e   :  { %v4972_v49 = vpop.f32.mrf.mxu0 }
 0x34f   :  { %5004 = vmatpush2.bf16.msra.mxu1 %v5934_v47 }
 0x350   :  { %v4974_v51 = vpop.f32.mrf.mxu0  ;;  %5005 = vmatprep.subr.bf16.mxu1 %v5939_v48 }
 0x352   :  { %v4976_v55 = vpop.f32.mrf.mxu0 }
 0x353   :  { %5006 = vmatpush2.bf16.msra.mxu1 %v5937_v50 }
 0x354   :  { %v4977_v21 = vpop.f32.mrf.mxu0  ;;  %5007 = vmatprep.subr.bf16.mxu1 %v5942_v16 }
 0x357   :  { %5008 = vmatpush2.bf16.msra.mxu1 %v5940_v12 }
 0x358   :  { %5009 = vmatprep.subr.bf16.mxu1 %v5945_v29 }
 0x35b   :  { %5010 = vmatpush2.bf16.msra.mxu1 %v5943_v23 }
 0x35e   :  { %5012 = vmatmul.mubr.bf16.vlgmr.msra.gmra.mxu1 %v5721_v0 }
 0x39e   :  { %v4181_v1 = vpop.f32.mrf.mxu1 }
 0x39f   :  { %v4891_v10 = vadd.f32 %v8006_v4, %v4181_v1 }
 0x3a0   :  { %v4183_v56 = vpop.f32.mrf.mxu1 }
 0x3a1   :  { %v4893_v36 = vadd.f32 %v8011_v8, %v4183_v56 }
 0x3a2   :  { %v4185_v7 = vpop.f32.mrf.mxu1 }
 0x3a4   :  { %v4186_v26 = vpop.f32.mrf.mxu1 }
 0x3de   :  { %v4931_v2 = vpop.f32.mrf.mxu1 }
 0x3df   :  { %v4932_v60 = vadd.f32 %v4931_v2, %v4891_v10 }
 0x3e0   :  { %v4933_v3 = vpop.f32.mrf.mxu1 }
 0x3e1   :  { %v4934_v40 = vadd.f32 %v4933_v3, %v4893_v36  ;;  %v4973_v11 = vadd.f32 %v4972_v49, %v4932_v60 }
 0x3e2   :  { %v4935_v6 = vpop.f32.mrf.mxu1 }
 0x3e3   :  { %v4975_v17 = vadd.f32 %v4974_v51, %v4934_v40 }
 0x3e4   :  { %v4936_v24 = vpop.f32.mrf.mxu1 }
 0x41e   :  { %v5013_v14 = vpop.f32.mrf.mxu1 }
 0x41f   :  { %v5014_v15 = vadd.f32 %v5013_v14, %v4973_v11 }
 0x420   :  { %v5015_v20 = vpop.f32.mrf.mxu1 }
 0x421   :  { %v5032_v4 = vadd.f32 %v5025_v13, %v5014_v15  ;;  %v5016_v22 = vadd.f32 %v5015_v20, %v4975_v17 }
 0x422   :  { %v5017_v8 = vpop.f32.mrf.mxu1 }
 0x423   :  { %5034 = vst [vmem:[%s8154_s9] sm:$0xff] %v5032_v4  ;;  %v5033_v58 = vadd.f32 %v5029_v31, %v5016_v22 }
 0x424   :  { %v5018_v57 = vpop.f32.mrf.mxu1 }
 0x425   :  { %5035 = vst [vmem:[%s8154_s9 + $0x8] sm:$0xff] %v5033_v58 }

</bundles_post_ra>
